<compile_context>
chip_gen: v5e
topology: v5e:2x2
jax: 0.10.0
libtpu: 0.0.40
codegen_flags: <defaults>
</compile_context>

<pallas_src>
import functools

import numpy as np
import jax
import jax.numpy as jnp
from jax.experimental import pallas as pl
from jax.experimental.pallas import tpu as pltpu

LN_EPS = 1e-12  # reference EncoderLayer/DecoderLayer default eps


# ------------------------------ in-kernel math ------------------------------

def _layer_norm(x, g, b, eps):
    mu = jnp.mean(x, axis=-1, keepdims=True)
    var = jnp.mean((x - mu) ** 2, axis=-1, keepdims=True)
    return (x - mu) * jax.lax.rsqrt(var + eps) * g + b


def _attention_heads(x_q, x_kv, m_ref, wq_ref, bq_ref, wk_ref, bk_ref, wv_ref,
                     bv_ref, wo_ref, bo_ref, *, B, S, n_heads, head_dim):
    """Full multi-head attention inside the kernel.

    x_q / x_kv: (B*S, H) values.  Weights are stacked per head on the leading
    axis: wq/wk/wv (nh, H, hd), biases (nh, 1, hd), wo (nh, hd, H), bo (1, H).
    The output projection distributes over the head concatenation, so the
    result is accumulated as sum_h ctx_h @ Wo_h — no lane-dim slicing/concat.
    """
    inv_scale = 1.0 / (float(head_dim) ** 0.5)
    out = jnp.zeros_like(x_q) + bo_ref[...]
    for h in range(n_heads):
        q = jnp.dot(x_q, wq_ref[h], preferred_element_type=jnp.float32) + bq_ref[h]
        k = jnp.dot(x_kv, wk_ref[h], preferred_element_type=jnp.float32) + bk_ref[h]
        v = jnp.dot(x_kv, wv_ref[h], preferred_element_type=jnp.float32) + bv_ref[h]
        ctx_parts = []
        for b in range(B):
            qb = q[b * S:(b + 1) * S, :]
            kb = k[b * S:(b + 1) * S, :]
            vb = v[b * S:(b + 1) * S, :]
            s = jax.lax.dot_general(qb, kb, (((1,), (1,)), ((), ())),
                                    preferred_element_type=jnp.float32) * inv_scale
            s = jnp.where(m_ref[b] > 0.5, jnp.float32(-1e9), s)  # masked_fill
            mx = jnp.max(s, axis=-1, keepdims=True)
            e = jnp.exp(s - mx)
            p = e * pl.reciprocal(jnp.sum(e, axis=-1, keepdims=True), approx=True)
            ctx_parts.append(jnp.dot(p, vb, preferred_element_type=jnp.float32))
        ctx_h = jnp.concatenate(ctx_parts, axis=0)  # (B*S, head_dim)
        out = out + jnp.dot(ctx_h, wo_ref[h], preferred_element_type=jnp.float32)
    return out


# -------------------------------- kernels -----------------------------------

def _encoder_layer_kernel(x_ref, m_ref,
                          wq_ref, bq_ref, wk_ref, bk_ref, wv_ref, bv_ref,
                          wo_ref, bo_ref,
                          g1_ref, gb1_ref, w1_ref, fb1_ref, w2_ref, fb2_ref,
                          g2_ref, gb2_ref,
                          o_ref, *, B, S, n_heads, head_dim, eps):
    x = x_ref[...]
    attn = _attention_heads(x, x, m_ref, wq_ref, bq_ref, wk_ref, bk_ref,
                            wv_ref, bv_ref, wo_ref, bo_ref,
                            B=B, S=S, n_heads=n_heads, head_dim=head_dim)
    h1 = _layer_norm(x + attn, g1_ref[...], gb1_ref[...], eps)          # residual + LN1
    f = jnp.maximum(jnp.dot(h1, w1_ref[...],
                            preferred_element_type=jnp.float32) + fb1_ref[...], 0.0)
    f = jnp.dot(f, w2_ref[...], preferred_element_type=jnp.float32) + fb2_ref[...]
    o_ref[...] = _layer_norm(f + h1, g2_ref[...], gb2_ref[...], eps)    # residual + LN2


def _decoder_layer_kernel(x_ref, enc_ref, m_ref,
                          g1_ref, gb1_ref,
                          wq_ref, bq_ref, wk_ref, bk_ref, wv_ref, bv_ref,
                          wo_ref, bo_ref,
                          g2_ref, gb2_ref, w1_ref, fb1_ref, w2_ref, fb2_ref,
                          g3_ref, gb3_ref,
                          o_ref, *, B, S, n_heads, head_dim, eps):
    # Reference DecoderLayer semantics.  Its masked self-attention output is
    # discarded in the reference, so that dead computation is removed here.
    q_in = _layer_norm(x_ref[...], g1_ref[...], gb1_ref[...], eps)      # layer_norm1(dec_input)
    enc = enc_ref[...]
    attn = _attention_heads(q_in, enc, m_ref, wq_ref, bq_ref, wk_ref, bk_ref,
                            wv_ref, bv_ref, wo_ref, bo_ref,
                            B=B, S=S, n_heads=n_heads, head_dim=head_dim)
    h2 = _layer_norm(attn, g2_ref[...], gb2_ref[...], eps)              # no residual (reference)
    f = jnp.maximum(jnp.dot(h2, w1_ref[...],
                            preferred_element_type=jnp.float32) + fb1_ref[...], 0.0)
    f = jnp.dot(f, w2_ref[...], preferred_element_type=jnp.float32) + fb2_ref[...]
    o_ref[...] = _layer_norm(f, g3_ref[...], gb3_ref[...], eps)         # no residual (reference)


def _classifier_kernel(x_ref, w_ref, b_ref, o_ref, *, B, S):
    logits = jnp.dot(x_ref[...], w_ref[...],
                     preferred_element_type=jnp.float32) + b_ref[...]   # (B*S, V)
    # log_softmax over dim=1 (sequence axis) as in the reference: reduce over
    # the S rows of each batch block (sublane-axis reduction, no transposes).
    parts = []
    for b in range(B):
        lb = logits[b * S:(b + 1) * S, :]
        mx = jnp.max(lb, axis=0, keepdims=True)
        z = lb - mx
        parts.append(z - jnp.log(jnp.sum(jnp.exp(z), axis=0, keepdims=True)))
    o_ref[...] = jnp.concatenate(parts, axis=0)


# --------------------------- pallas_call wrapper -----------------------------

def _zero_map(nd):
    return lambda i: (0,) * nd


def _full_call(kernel, out_shape, *args):
    """Run `kernel` once with every operand fully resident in VMEM (tiny shapes)."""
    in_specs = [pl.BlockSpec(a.shape, _zero_map(a.ndim)) for a in args]
    out_specs = pl.BlockSpec(out_shape.shape, _zero_map(len(out_shape.shape)))
    return pl.pallas_call(
        kernel,
        out_shape=out_shape,
        grid=(1,),
        in_specs=in_specs,
        out_specs=out_specs,
        compiler_params=pltpu.CompilerParams(dimension_semantics=("arbitrary",)),
    )(*args)


# ------------------------------- model glue ---------------------------------

def positional_encoding_table(max_seq_len, hidden_dim):
    pos = np.arange(max_seq_len, dtype=np.float64)[:, None]
    i = np.arange(hidden_dim, dtype=np.float64)[None, :]
    angle = pos / np.power(10000.0, 2.0 * (i // 2) / hidden_dim)
    table = angle.copy()
    table[:, 0::2] = np.sin(angle[:, 0::2])
    table[:, 1::2] = np.cos(angle[:, 1::2])
    return jnp.asarray(table, dtype=jnp.float32)


def _split_head_params(p, n_heads, head_dim):
    """Stack MHA weights per head on a leading axis (done under jit, negligible)."""
    H_in = p["wq"].shape[0]
    H_out = p["wo"].shape[1]

    def per_head_w(w):        # (H, nh*hd) -> (nh, H, hd)
        return w.reshape(H_in, n_heads, head_dim).transpose(1, 0, 2)

    def per_head_b(b):        # (nh*hd,) -> (nh, 1, hd)
        return b.reshape(n_heads, 1, head_dim)

    return (per_head_w(p["wq"]), per_head_b(p["bq"]),
            per_head_w(p["wk"]), per_head_b(p["bk"]),
            per_head_w(p["wv"]), per_head_b(p["bv"]),
            p["wo"].reshape(n_heads, head_dim, H_out),   # (nh, hd, H)
            p["bo"].reshape(1, H_out))


def encoder_forward(p, enc_input, cfg):
    B, S = enc_input.shape
    H = cfg["hidden_dim"]
    nh, hd = cfg["enc_heads"], cfg["enc_head_dim"]
    pos = jnp.arange(S, dtype=enc_input.dtype)
    x = (jnp.take(p["src_emb"], enc_input, axis=0)
         + jnp.take(p["pe_table"], pos, axis=0)[None, :, :])
    # (B, S, S) padding mask — never broadcast to (B, heads, S, S) in HBM.
    mask = jnp.broadcast_to((enc_input == cfg["padding_id"])[:, None, :],
                            (B, S, S)).astype(jnp.float32)
    x2d = x.reshape(B * S, H)
    for lp in p["layers"]:
        heads = _split_head_params(lp["self_attn"], nh, hd)
        x2d = _full_call(
            functools.partial(_encoder_layer_kernel,
                              B=B, S=S, n_heads=nh, head_dim=hd, eps=LN_EPS),
            jax.ShapeDtypeStruct((B * S, H), jnp.float32),
            x2d, mask, *heads,
            lp["ln1_g"].reshape(1, H), lp["ln1_b"].reshape(1, H),
            lp["ffn_w1"], lp["ffn_b1"].reshape(1, -1),
            lp["ffn_w2"], lp["ffn_b2"].reshape(1, -1),
            lp["ln2_g"].reshape(1, H), lp["ln2_b"].reshape(1, H))
    return x2d  # (B*S, H)


def decoder_forward(p, dec_input, enc_out2d, cfg):
    B, S = dec_input.shape
    H = cfg["hidden_dim"]
    nh, hd = cfg["dec_heads"], cfg["dec_head_dim"]
    pos = jnp.arange(S, dtype=dec_input.dtype)
    x = (jnp.take(p["src_emb"], dec_input, axis=0)
         + jnp.take(p["pe_table"], pos, axis=0)[None, :, :])
    pad = jnp.broadcast_to((dec_input == cfg["padding_id"])[:, None, :], (B, S, S))
    look_ahead = jnp.triu(jnp.ones((S, S), dtype=bool), k=1)[None, :, :]
    self_mask = (pad | look_ahead).astype(jnp.float32)
    # Reference bug kept: Decoder passes its masks to DecoderLayer in SWAPPED
    # positional order, so the enc-dec attention receives the combined
    # (padding | look-ahead) mask; the plain padding mask only fed the dead
    # masked-self-attention, which is removed (its output is discarded).
    x2d = x.reshape(B * S, H)
    for lp in p["layers"]:
        heads = _split_head_params(lp["enc_dec_attn"], nh, hd)
        x2d = _full_call(
            functools.partial(_decoder_layer_kernel,
                              B=B, S=S, n_heads=nh, head_dim=hd, eps=LN_EPS),
            jax.ShapeDtypeStruct((B * S, H), jnp.float32),
            x2d, enc_out2d, self_mask,
            lp["ln1_g"].reshape(1, H), lp["ln1_b"].reshape(1, H),
            *heads,
            lp["ln2_g"].reshape(1, H), lp["ln2_b"].reshape(1, H),
            lp["ffn_w1"], lp["ffn_b1"].reshape(1, -1),
            lp["ffn_w2"], lp["ffn_b2"].reshape(1, -1),
            lp["ln3_g"].reshape(1, H), lp["ln3_b"].reshape(1, H))
    V = p["cls_w"].shape[1]
    out2d = _full_call(
        functools.partial(_classifier_kernel, B=B, S=S),
        jax.ShapeDtypeStruct((B * S, V), jnp.float32),
        x2d, p["cls_w"], p["cls_b"].reshape(1, V))
    return out2d.reshape(B, S, V)


def transformer_forward(params, enc_input, dec_input, cfg):
    enc_out2d = encoder_forward(params["encoder"], enc_input, cfg)
    return decoder_forward(params["decoder"], dec_input, enc_out2d, cfg)


# ------------------------------ parameter init ------------------------------

def init_linear_params(key, in_dim, out_dim):
    k1, k2 = jax.random.split(key)
    bound = 1.0 / np.sqrt(in_dim)
    w = jax.random.uniform(k1, (in_dim, out_dim), jnp.float32, -bound, bound)
    b = jax.random.uniform(k2, (out_dim,), jnp.float32, -bound, bound)
    return w, b


def init_mha_params(key, hidden_dim, n_heads, head_dim):
    ks = jax.random.split(key, 4)
    p = {}
    p["wq"], p["bq"] = init_linear_params(ks[0], hidden_dim, n_heads * head_dim)
    p["wk"], p["bk"] = init_linear_params(ks[1], hidden_dim, n_heads * head_dim)
    p["wv"], p["bv"] = init_linear_params(ks[2], hidden_dim, n_heads * head_dim)
    p["wo"], p["bo"] = init_linear_params(ks[3], n_heads * head_dim, hidden_dim)
    return p


def init_enc_layer(key, hidden_dim, n_heads, head_dim, ff_dim):
    ks = jax.random.split(key, 3)
    p = {"self_attn": init_mha_params(ks[0], hidden_dim, n_heads, head_dim)}
    p["ffn_w1"], p["ffn_b1"] = init_linear_params(ks[1], hidden_dim, ff_dim)
    p["ffn_w2"], p["ffn_b2"] = init_linear_params(ks[2], ff_dim, hidden_dim)
    for i in (1, 2):
        p[f"ln{i}_g"] = jnp.ones((hidden_dim,), jnp.float32)
        p[f"ln{i}_b"] = jnp.zeros((hidden_dim,), jnp.float32)
    return p


def init_dec_layer(key, hidden_dim, n_heads, head_dim, ff_dim):
    ks = jax.random.split(key, 4)
    p = {"self_attn": init_mha_params(ks[0], hidden_dim, n_heads, head_dim),
         "enc_dec_attn": init_mha_params(ks[1], hidden_dim, n_heads, head_dim)}
    p["ffn_w1"], p["ffn_b1"] = init_linear_params(ks[2], hidden_dim, ff_dim)
    p["ffn_w2"], p["ffn_b2"] = init_linear_params(ks[3], ff_dim, hidden_dim)
    for i in (1, 2, 3):
        p[f"ln{i}_g"] = jnp.ones((hidden_dim,), jnp.float32)
        p[f"ln{i}_b"] = jnp.zeros((hidden_dim,), jnp.float32)
    return p


def init_transformer_params(key, cfg):
    H = cfg["hidden_dim"]
    ke, kd = jax.random.split(key)

    ke_emb, *ke_layers = jax.random.split(ke, cfg["enc_layers"] + 1)
    enc = {
        "src_emb": jax.random.normal(ke_emb, (cfg["enc_d_input"], H), jnp.float32),
        "pe_table": positional_encoding_table(cfg["max_seq_len"], H),
        "layers": [init_enc_layer(k, H, cfg["enc_heads"], cfg["enc_head_dim"],
                                  cfg["enc_ff_dim"]) for k in ke_layers],
    }

    kd_emb, kd_cls, *kd_layers = jax.random.split(kd, cfg["dec_layers"] + 2)
    cls_w, cls_b = init_linear_params(kd_cls, H, cfg["dec_d_input"])
    dec = {
        "src_emb": jax.random.normal(kd_emb, (cfg["dec_d_input"], H), jnp.float32),
        "pe_table": positional_encoding_table(cfg["max_seq_len"], H),
        "cls_w": cls_w,
        "cls_b": cls_b,
        "layers": [init_dec_layer(k, H, cfg["dec_heads"], cfg["dec_head_dim"],
                                  cfg["dec_ff_dim"]) for k in kd_layers],
    }
    return {"encoder": enc, "decoder": dec}


# ---------------------------------- main ------------------------------------

if __name__ == "__main__":
    cfg = dict(enc_d_input=13, enc_layers=2, enc_heads=2, enc_head_dim=16, enc_ff_dim=64,
               dec_d_input=11, dec_layers=2, dec_heads=2, dec_head_dim=16, dec_ff_dim=64,
               hidden_dim=32, max_seq_len=8, padding_id=3)

    key = jax.random.PRNGKey(0)
    kp, ke, kd = jax.random.split(key, 3)
    params = init_transformer_params(kp, cfg)

    B, S = 2, cfg["max_seq_len"]
    enc_input = jax.random.randint(ke, (B, S), 0, cfg["enc_d_input"], dtype=jnp.int32)
    dec_input = jax.random.randint(kd, (B, S), 0, cfg["dec_d_input"], dtype=jnp.int32)

    # Whole forward pass under one jit (cfg captured statically via closure).
    fwd = jax.jit(lambda p, e, d: transformer_forward(p, e, d, cfg))

    out = jax.block_until_ready(fwd(params, enc_input, dec_input))

    assert out.shape == (B, S, cfg["dec_d_input"]), out.shape
    assert bool(jnp.all(jnp.isfinite(out)))
    print("KERNEL_OK")
</pallas_src>

<mosaic_0001>
module attributes {stable_mosaic.version = 11 : i64} {
  func.func @_encoder_layer_kernel(%arg0: i32, %arg1: memref<16x32xf32, #tpu.memory_space<vmem>>, %arg2: memref<2x8x8xf32, #tpu.memory_space<vmem>>, %arg3: memref<2x32x16xf32, #tpu.memory_space<vmem>>, %arg4: memref<2x1x16xf32, #tpu.memory_space<vmem>>, %arg5: memref<2x32x16xf32, #tpu.memory_space<vmem>>, %arg6: memref<2x1x16xf32, #tpu.memory_space<vmem>>, %arg7: memref<2x32x16xf32, #tpu.memory_space<vmem>>, %arg8: memref<2x1x16xf32, #tpu.memory_space<vmem>>, %arg9: memref<2x16x32xf32, #tpu.memory_space<vmem>>, %arg10: memref<1x32xf32, #tpu.memory_space<vmem>>, %arg11: memref<1x32xf32, #tpu.memory_space<vmem>>, %arg12: memref<1x32xf32, #tpu.memory_space<vmem>>, %arg13: memref<32x64xf32, #tpu.memory_space<vmem>>, %arg14: memref<1x64xf32, #tpu.memory_space<vmem>>, %arg15: memref<64x32xf32, #tpu.memory_space<vmem>>, %arg16: memref<1x32xf32, #tpu.memory_space<vmem>>, %arg17: memref<1x32xf32, #tpu.memory_space<vmem>>, %arg18: memref<1x32xf32, #tpu.memory_space<vmem>>, %arg19: memref<16x32xf32, #tpu.memory_space<vmem>>) attributes {dimension_semantics = [#tpu.dimension_semantics<arbitrary>], iteration_bounds = array<i64: 1>, scalar_prefetch = 0 : i64, scratch_operands = 0 : i64, tpu.core_type = #tpu.core_type<tc>, window_params = [{pipeline_mode = #tpu.pipeline_mode<synchronous>, transform_indices = @transform_0, window_bounds = array<i64: 16, 32>}, {pipeline_mode = #tpu.pipeline_mode<synchronous>, transform_indices = @transform_1, window_bounds = array<i64: 2, 8, 8>}, {pipeline_mode = #tpu.pipeline_mode<synchronous>, transform_indices = @transform_2, window_bounds = array<i64: 2, 32, 16>}, {pipeline_mode = #tpu.pipeline_mode<synchronous>, transform_indices = @transform_3, window_bounds = array<i64: 2, 1, 16>}, {pipeline_mode = #tpu.pipeline_mode<synchronous>, transform_indices = @transform_4, window_bounds = array<i64: 2, 32, 16>}, {pipeline_mode = #tpu.pipeline_mode<synchronous>, transform_indices = @transform_5, window_bounds = array<i64: 2, 1, 16>}, {pipeline_mode = #tpu.pipeline_mode<synchronous>, transform_indices = @transform_6, window_bounds = array<i64: 2, 32, 16>}, {pipeline_mode = #tpu.pipeline_mode<synchronous>, transform_indices = @transform_7, window_bounds = array<i64: 2, 1, 16>}, {pipeline_mode = #tpu.pipeline_mode<synchronous>, transform_indices = @transform_8, window_bounds = array<i64: 2, 16, 32>}, {pipeline_mode = #tpu.pipeline_mode<synchronous>, transform_indices = @transform_9, window_bounds = array<i64: 1, 32>}, {pipeline_mode = #tpu.pipeline_mode<synchronous>, transform_indices = @transform_10, window_bounds = array<i64: 1, 32>}, {pipeline_mode = #tpu.pipeline_mode<synchronous>, transform_indices = @transform_11, window_bounds = array<i64: 1, 32>}, {pipeline_mode = #tpu.pipeline_mode<synchronous>, transform_indices = @transform_12, window_bounds = array<i64: 32, 64>}, {pipeline_mode = #tpu.pipeline_mode<synchronous>, transform_indices = @transform_13, window_bounds = array<i64: 1, 64>}, {pipeline_mode = #tpu.pipeline_mode<synchronous>, transform_indices = @transform_14, window_bounds = array<i64: 64, 32>}, {pipeline_mode = #tpu.pipeline_mode<synchronous>, transform_indices = @transform_15, window_bounds = array<i64: 1, 32>}, {pipeline_mode = #tpu.pipeline_mode<synchronous>, transform_indices = @transform_16, window_bounds = array<i64: 1, 32>}, {pipeline_mode = #tpu.pipeline_mode<synchronous>, transform_indices = @transform_17, window_bounds = array<i64: 1, 32>}, {pipeline_mode = #tpu.pipeline_mode<synchronous>, transform_indices = @transform_18, window_bounds = array<i64: 16, 32>}]} {
    %c0 = arith.constant 0 : index
    %c0_0 = arith.constant 0 : index
    %0 = vector.load %arg1[%c0, %c0_0] : memref<16x32xf32, #tpu.memory_space<vmem>>, vector<16x32xf32>
    %cst = arith.constant 0.000000e+00 : f32
    %1 = vector.broadcast %cst : f32 to vector<16x32xf32>
    %c0_1 = arith.constant 0 : index
    %c0_2 = arith.constant 0 : index
    %2 = vector.load %arg10[%c0_1, %c0_2] : memref<1x32xf32, #tpu.memory_space<vmem>>, vector<1x32xf32>
    %3 = vector.broadcast %2 : vector<1x32xf32> to vector<16x32xf32>
    %4 = arith.addf %1, %3 : vector<16x32xf32>
    %c0_3 = arith.constant 0 : index
    %c0_4 = arith.constant 0 : index
    %c0_5 = arith.constant 0 : index
    %5 = vector.load %arg3[%c0_3, %c0_4, %c0_5] : memref<2x32x16xf32, #tpu.memory_space<vmem>>, vector<1x32x16xf32>
    %6 = vector.shape_cast %5 : vector<1x32x16xf32> to vector<32x16xf32>
    %cst_6 = arith.constant dense<0.000000e+00> : vector<16x16xf32>
    %7 = tpu.matmul %0, %6, %cst_6 {dimension_numbers = #tpu.dot_dimension_numbers<[1], [0], [0], [1], [0, 0, 1, 1], [], []>} : vector<16x32xf32>, vector<32x16xf32>, vector<16x16xf32> -> vector<16x16xf32>
    %c0_7 = arith.constant 0 : index
    %c0_8 = arith.constant 0 : index
    %c0_9 = arith.constant 0 : index
    %8 = vector.load %arg4[%c0_7, %c0_8, %c0_9] : memref<2x1x16xf32, #tpu.memory_space<vmem>>, vector<1x1x16xf32>
    %9 = vector.shape_cast %8 : vector<1x1x16xf32> to vector<1x16xf32>
    %10 = vector.broadcast %9 : vector<1x16xf32> to vector<16x16xf32>
    %11 = arith.addf %7, %10 : vector<16x16xf32>
    %c0_10 = arith.constant 0 : index
    %c0_11 = arith.constant 0 : index
    %c0_12 = arith.constant 0 : index
    %12 = vector.load %arg5[%c0_10, %c0_11, %c0_12] : memref<2x32x16xf32, #tpu.memory_space<vmem>>, vector<1x32x16xf32>
    %13 = vector.shape_cast %12 : vector<1x32x16xf32> to vector<32x16xf32>
    %cst_13 = arith.constant dense<0.000000e+00> : vector<16x16xf32>
    %14 = tpu.matmul %0, %13, %cst_13 {dimension_numbers = #tpu.dot_dimension_numbers<[1], [0], [0], [1], [0, 0, 1, 1], [], []>} : vector<16x32xf32>, vector<32x16xf32>, vector<16x16xf32> -> vector<16x16xf32>
    %c0_14 = arith.constant 0 : index
    %c0_15 = arith.constant 0 : index
    %c0_16 = arith.constant 0 : index
    %15 = vector.load %arg6[%c0_14, %c0_15, %c0_16] : memref<2x1x16xf32, #tpu.memory_space<vmem>>, vector<1x1x16xf32>
    %16 = vector.shape_cast %15 : vector<1x1x16xf32> to vector<1x16xf32>
    %17 = vector.broadcast %16 : vector<1x16xf32> to vector<16x16xf32>
    %18 = arith.addf %14, %17 : vector<16x16xf32>
    %c0_17 = arith.constant 0 : index
    %c0_18 = arith.constant 0 : index
    %c0_19 = arith.constant 0 : index
    %19 = vector.load %arg7[%c0_17, %c0_18, %c0_19] : memref<2x32x16xf32, #tpu.memory_space<vmem>>, vector<1x32x16xf32>
    %20 = vector.shape_cast %19 : vector<1x32x16xf32> to vector<32x16xf32>
    %cst_20 = arith.constant dense<0.000000e+00> : vector<16x16xf32>
    %21 = tpu.matmul %0, %20, %cst_20 {dimension_numbers = #tpu.dot_dimension_numbers<[1], [0], [0], [1], [0, 0, 1, 1], [], []>} : vector<16x32xf32>, vector<32x16xf32>, vector<16x16xf32> -> vector<16x16xf32>
    %c0_21 = arith.constant 0 : index
    %c0_22 = arith.constant 0 : index
    %c0_23 = arith.constant 0 : index
    %22 = vector.load %arg8[%c0_21, %c0_22, %c0_23] : memref<2x1x16xf32, #tpu.memory_space<vmem>>, vector<1x1x16xf32>
    %23 = vector.shape_cast %22 : vector<1x1x16xf32> to vector<1x16xf32>
    %24 = vector.broadcast %23 : vector<1x16xf32> to vector<16x16xf32>
    %25 = arith.addf %21, %24 : vector<16x16xf32>
    %26 = vector.extract_strided_slice %11 {offsets = [0, 0], sizes = [8, 16], strides = [1, 1]} : vector<16x16xf32> to vector<8x16xf32>
    %27 = vector.extract_strided_slice %18 {offsets = [0, 0], sizes = [8, 16], strides = [1, 1]} : vector<16x16xf32> to vector<8x16xf32>
    %28 = vector.extract_strided_slice %25 {offsets = [0, 0], sizes = [8, 16], strides = [1, 1]} : vector<16x16xf32> to vector<8x16xf32>
    %cst_24 = arith.constant dense<0.000000e+00> : vector<8x8xf32>
    %29 = tpu.matmul %26, %27, %cst_24 {dimension_numbers = #tpu.dot_dimension_numbers<[1], [1], [0], [0], [0, 0, 1, 0], [], []>} : vector<8x16xf32>, vector<8x16xf32>, vector<8x8xf32> -> vector<8x8xf32>
    %cst_25 = arith.constant 2.500000e-01 : f32
    %30 = vector.broadcast %cst_25 : f32 to vector<8x8xf32>
    %31 = arith.mulf %29, %30 : vector<8x8xf32>
    %c0_26 = arith.constant 0 : index
    %c0_27 = arith.constant 0 : index
    %c0_28 = arith.constant 0 : index
    %32 = vector.load %arg2[%c0_26, %c0_27, %c0_28] : memref<2x8x8xf32, #tpu.memory_space<vmem>>, vector<1x8x8xf32>
    %33 = vector.shape_cast %32 : vector<1x8x8xf32> to vector<8x8xf32>
    %cst_29 = arith.constant 5.000000e-01 : f32
    %34 = vector.broadcast %cst_29 : f32 to vector<8x8xf32>
    %35 = arith.cmpf ogt, %33, %34 : vector<8x8xf32>
    %cst_30 = arith.constant -1.000000e+09 : f32
    %36 = vector.broadcast %cst_30 : f32 to vector<8x8xf32>
    %37 = arith.select %35, %36, %31 : vector<8x8xi1>, vector<8x8xf32>
    %cst_31 = arith.constant dense<0xFF800000> : vector<8xf32>
    %38 = vector.multi_reduction <maximumf>, %37, %cst_31 [1] : vector<8x8xf32> to vector<8xf32>
    %39 = vector.shape_cast %38 : vector<8xf32> to vector<8x1xf32>
    %40 = vector.broadcast %39 : vector<8x1xf32> to vector<8x8xf32>
    %41 = arith.subf %37, %40 : vector<8x8xf32>
    %42 = math.exp %41 : vector<8x8xf32>
    %cst_32 = arith.constant dense<0.000000e+00> : vector<8xf32>
    %43 = vector.multi_reduction <add>, %42, %cst_32 [1] : vector<8x8xf32> to vector<8xf32>
    %44 = vector.shape_cast %43 : vector<8xf32> to vector<8x1xf32>
    %45 = tpu.reciprocal %44 {approx = true} : vector<8x1xf32> -> vector<8x1xf32>
    %46 = vector.broadcast %45 : vector<8x1xf32> to vector<8x8xf32>
    %47 = arith.mulf %42, %46 : vector<8x8xf32>
    %cst_33 = arith.constant dense<0.000000e+00> : vector<8x16xf32>
    %48 = tpu.matmul %47, %28, %cst_33 {dimension_numbers = #tpu.dot_dimension_numbers<[1], [0], [0], [1], [0, 0, 1, 1], [], []>} : vector<8x8xf32>, vector<8x16xf32>, vector<8x16xf32> -> vector<8x16xf32>
    %49 = vector.extract_strided_slice %11 {offsets = [8, 0], sizes = [8, 16], strides = [1, 1]} : vector<16x16xf32> to vector<8x16xf32>
    %50 = vector.extract_strided_slice %18 {offsets = [8, 0], sizes = [8, 16], strides = [1, 1]} : vector<16x16xf32> to vector<8x16xf32>
    %51 = vector.extract_strided_slice %25 {offsets = [8, 0], sizes = [8, 16], strides = [1, 1]} : vector<16x16xf32> to vector<8x16xf32>
    %cst_34 = arith.constant dense<0.000000e+00> : vector<8x8xf32>
    %52 = tpu.matmul %49, %50, %cst_34 {dimension_numbers = #tpu.dot_dimension_numbers<[1], [1], [0], [0], [0, 0, 1, 0], [], []>} : vector<8x16xf32>, vector<8x16xf32>, vector<8x8xf32> -> vector<8x8xf32>
    %cst_35 = arith.constant 2.500000e-01 : f32
    %53 = vector.broadcast %cst_35 : f32 to vector<8x8xf32>
    %54 = arith.mulf %52, %53 : vector<8x8xf32>
    %c1 = arith.constant 1 : index
    %c0_36 = arith.constant 0 : index
    %c0_37 = arith.constant 0 : index
    %55 = vector.load %arg2[%c1, %c0_36, %c0_37] : memref<2x8x8xf32, #tpu.memory_space<vmem>>, vector<1x8x8xf32>
    %56 = vector.shape_cast %55 : vector<1x8x8xf32> to vector<8x8xf32>
    %cst_38 = arith.constant 5.000000e-01 : f32
    %57 = vector.broadcast %cst_38 : f32 to vector<8x8xf32>
    %58 = arith.cmpf ogt, %56, %57 : vector<8x8xf32>
    %cst_39 = arith.constant -1.000000e+09 : f32
    %59 = vector.broadcast %cst_39 : f32 to vector<8x8xf32>
    %60 = arith.select %58, %59, %54 : vector<8x8xi1>, vector<8x8xf32>
    %cst_40 = arith.constant dense<0xFF800000> : vector<8xf32>
    %61 = vector.multi_reduction <maximumf>, %60, %cst_40 [1] : vector<8x8xf32> to vector<8xf32>
    %62 = vector.shape_cast %61 : vector<8xf32> to vector<8x1xf32>
    %63 = vector.broadcast %62 : vector<8x1xf32> to vector<8x8xf32>
    %64 = arith.subf %60, %63 : vector<8x8xf32>
    %65 = math.exp %64 : vector<8x8xf32>
    %cst_41 = arith.constant dense<0.000000e+00> : vector<8xf32>
    %66 = vector.multi_reduction <add>, %65, %cst_41 [1] : vector<8x8xf32> to vector<8xf32>
    %67 = vector.shape_cast %66 : vector<8xf32> to vector<8x1xf32>
    %68 = tpu.reciprocal %67 {approx = true} : vector<8x1xf32> -> vector<8x1xf32>
    %69 = vector.broadcast %68 : vector<8x1xf32> to vector<8x8xf32>
    %70 = arith.mulf %65, %69 : vector<8x8xf32>
    %cst_42 = arith.constant dense<0.000000e+00> : vector<8x16xf32>
    %71 = tpu.matmul %70, %51, %cst_42 {dimension_numbers = #tpu.dot_dimension_numbers<[1], [0], [0], [1], [0, 0, 1, 1], [], []>} : vector<8x8xf32>, vector<8x16xf32>, vector<8x16xf32> -> vector<8x16xf32>
    %72 = tpu.concatenate %48, %71 in 0 : vector<8x16xf32>, vector<8x16xf32> -> vector<16x16xf32>
    %c0_43 = arith.constant 0 : index
    %c0_44 = arith.constant 0 : index
    %c0_45 = arith.constant 0 : index
    %73 = vector.load %arg9[%c0_43, %c0_44, %c0_45] : memref<2x16x32xf32, #tpu.memory_space<vmem>>, vector<1x16x32xf32>
    %74 = vector.shape_cast %73 : vector<1x16x32xf32> to vector<16x32xf32>
    %cst_46 = arith.constant dense<0.000000e+00> : vector<16x32xf32>
    %75 = tpu.matmul %72, %74, %cst_46 {dimension_numbers = #tpu.dot_dimension_numbers<[1], [0], [0], [1], [0, 0, 1, 1], [], []>} : vector<16x16xf32>, vector<16x32xf32>, vector<16x32xf32> -> vector<16x32xf32>
    %76 = arith.addf %4, %75 : vector<16x32xf32>
    %c1_47 = arith.constant 1 : index
    %c0_48 = arith.constant 0 : index
    %c0_49 = arith.constant 0 : index
    %77 = vector.load %arg3[%c1_47, %c0_48, %c0_49] : memref<2x32x16xf32, #tpu.memory_space<vmem>>, vector<1x32x16xf32>
    %78 = vector.shape_cast %77 : vector<1x32x16xf32> to vector<32x16xf32>
    %cst_50 = arith.constant dense<0.000000e+00> : vector<16x16xf32>
    %79 = tpu.matmul %0, %78, %cst_50 {dimension_numbers = #tpu.dot_dimension_numbers<[1], [0], [0], [1], [0, 0, 1, 1], [], []>} : vector<16x32xf32>, vector<32x16xf32>, vector<16x16xf32> -> vector<16x16xf32>
    %c1_51 = arith.constant 1 : index
    %c0_52 = arith.constant 0 : index
    %c0_53 = arith.constant 0 : index
    %80 = vector.load %arg4[%c1_51, %c0_52, %c0_53] : memref<2x1x16xf32, #tpu.memory_space<vmem>>, vector<1x1x16xf32>
    %81 = vector.shape_cast %80 : vector<1x1x16xf32> to vector<1x16xf32>
    %82 = vector.broadcast %81 : vector<1x16xf32> to vector<16x16xf32>
    %83 = arith.addf %79, %82 : vector<16x16xf32>
    %c1_54 = arith.constant 1 : index
    %c0_55 = arith.constant 0 : index
    %c0_56 = arith.constant 0 : index
    %84 = vector.load %arg5[%c1_54, %c0_55, %c0_56] : memref<2x32x16xf32, #tpu.memory_space<vmem>>, vector<1x32x16xf32>
    %85 = vector.shape_cast %84 : vector<1x32x16xf32> to vector<32x16xf32>
    %cst_57 = arith.constant dense<0.000000e+00> : vector<16x16xf32>
    %86 = tpu.matmul %0, %85, %cst_57 {dimension_numbers = #tpu.dot_dimension_numbers<[1], [0], [0], [1], [0, 0, 1, 1], [], []>} : vector<16x32xf32>, vector<32x16xf32>, vector<16x16xf32> -> vector<16x16xf32>
    %c1_58 = arith.constant 1 : index
    %c0_59 = arith.constant 0 : index
    %c0_60 = arith.constant 0 : index
    %87 = vector.load %arg6[%c1_58, %c0_59, %c0_60] : memref<2x1x16xf32, #tpu.memory_space<vmem>>, vector<1x1x16xf32>
    %88 = vector.shape_cast %87 : vector<1x1x16xf32> to vector<1x16xf32>
    %89 = vector.broadcast %88 : vector<1x16xf32> to vector<16x16xf32>
    %90 = arith.addf %86, %89 : vector<16x16xf32>
    %c1_61 = arith.constant 1 : index
    %c0_62 = arith.constant 0 : index
    %c0_63 = arith.constant 0 : index
    %91 = vector.load %arg7[%c1_61, %c0_62, %c0_63] : memref<2x32x16xf32, #tpu.memory_space<vmem>>, vector<1x32x16xf32>
    %92 = vector.shape_cast %91 : vector<1x32x16xf32> to vector<32x16xf32>
    %cst_64 = arith.constant dense<0.000000e+00> : vector<16x16xf32>
    %93 = tpu.matmul %0, %92, %cst_64 {dimension_numbers = #tpu.dot_dimension_numbers<[1], [0], [0], [1], [0, 0, 1, 1], [], []>} : vector<16x32xf32>, vector<32x16xf32>, vector<16x16xf32> -> vector<16x16xf32>
    %c1_65 = arith.constant 1 : index
    %c0_66 = arith.constant 0 : index
    %c0_67 = arith.constant 0 : index
    %94 = vector.load %arg8[%c1_65, %c0_66, %c0_67] : memref<2x1x16xf32, #tpu.memory_space<vmem>>, vector<1x1x16xf32>
    %95 = vector.shape_cast %94 : vector<1x1x16xf32> to vector<1x16xf32>
    %96 = vector.broadcast %95 : vector<1x16xf32> to vector<16x16xf32>
    %97 = arith.addf %93, %96 : vector<16x16xf32>
    %98 = vector.extract_strided_slice %83 {offsets = [0, 0], sizes = [8, 16], strides = [1, 1]} : vector<16x16xf32> to vector<8x16xf32>
    %99 = vector.extract_strided_slice %90 {offsets = [0, 0], sizes = [8, 16], strides = [1, 1]} : vector<16x16xf32> to vector<8x16xf32>
    %100 = vector.extract_strided_slice %97 {offsets = [0, 0], sizes = [8, 16], strides = [1, 1]} : vector<16x16xf32> to vector<8x16xf32>
    %cst_68 = arith.constant dense<0.000000e+00> : vector<8x8xf32>
    %101 = tpu.matmul %98, %99, %cst_68 {dimension_numbers = #tpu.dot_dimension_numbers<[1], [1], [0], [0], [0, 0, 1, 0], [], []>} : vector<8x16xf32>, vector<8x16xf32>, vector<8x8xf32> -> vector<8x8xf32>
    %cst_69 = arith.constant 2.500000e-01 : f32
    %102 = vector.broadcast %cst_69 : f32 to vector<8x8xf32>
    %103 = arith.mulf %101, %102 : vector<8x8xf32>
    %c0_70 = arith.constant 0 : index
    %c0_71 = arith.constant 0 : index
    %c0_72 = arith.constant 0 : index
    %104 = vector.load %arg2[%c0_70, %c0_71, %c0_72] : memref<2x8x8xf32, #tpu.memory_space<vmem>>, vector<1x8x8xf32>
    %105 = vector.shape_cast %104 : vector<1x8x8xf32> to vector<8x8xf32>
    %cst_73 = arith.constant 5.000000e-01 : f32
    %106 = vector.broadcast %cst_73 : f32 to vector<8x8xf32>
    %107 = arith.cmpf ogt, %105, %106 : vector<8x8xf32>
    %cst_74 = arith.constant -1.000000e+09 : f32
    %108 = vector.broadcast %cst_74 : f32 to vector<8x8xf32>
    %109 = arith.select %107, %108, %103 : vector<8x8xi1>, vector<8x8xf32>
    %cst_75 = arith.constant dense<0xFF800000> : vector<8xf32>
    %110 = vector.multi_reduction <maximumf>, %109, %cst_75 [1] : vector<8x8xf32> to vector<8xf32>
    %111 = vector.shape_cast %110 : vector<8xf32> to vector<8x1xf32>
    %112 = vector.broadcast %111 : vector<8x1xf32> to vector<8x8xf32>
    %113 = arith.subf %109, %112 : vector<8x8xf32>
    %114 = math.exp %113 : vector<8x8xf32>
    %cst_76 = arith.constant dense<0.000000e+00> : vector<8xf32>
    %115 = vector.multi_reduction <add>, %114, %cst_76 [1] : vector<8x8xf32> to vector<8xf32>
    %116 = vector.shape_cast %115 : vector<8xf32> to vector<8x1xf32>
    %117 = tpu.reciprocal %116 {approx = true} : vector<8x1xf32> -> vector<8x1xf32>
    %118 = vector.broadcast %117 : vector<8x1xf32> to vector<8x8xf32>
    %119 = arith.mulf %114, %118 : vector<8x8xf32>
    %cst_77 = arith.constant dense<0.000000e+00> : vector<8x16xf32>
    %120 = tpu.matmul %119, %100, %cst_77 {dimension_numbers = #tpu.dot_dimension_numbers<[1], [0], [0], [1], [0, 0, 1, 1], [], []>} : vector<8x8xf32>, vector<8x16xf32>, vector<8x16xf32> -> vector<8x16xf32>
    %121 = vector.extract_strided_slice %83 {offsets = [8, 0], sizes = [8, 16], strides = [1, 1]} : vector<16x16xf32> to vector<8x16xf32>
    %122 = vector.extract_strided_slice %90 {offsets = [8, 0], sizes = [8, 16], strides = [1, 1]} : vector<16x16xf32> to vector<8x16xf32>
    %123 = vector.extract_strided_slice %97 {offsets = [8, 0], sizes = [8, 16], strides = [1, 1]} : vector<16x16xf32> to vector<8x16xf32>
    %cst_78 = arith.constant dense<0.000000e+00> : vector<8x8xf32>
    %124 = tpu.matmul %121, %122, %cst_78 {dimension_numbers = #tpu.dot_dimension_numbers<[1], [1], [0], [0], [0, 0, 1, 0], [], []>} : vector<8x16xf32>, vector<8x16xf32>, vector<8x8xf32> -> vector<8x8xf32>
    %cst_79 = arith.constant 2.500000e-01 : f32
    %125 = vector.broadcast %cst_79 : f32 to vector<8x8xf32>
    %126 = arith.mulf %124, %125 : vector<8x8xf32>
    %c1_80 = arith.constant 1 : index
    %c0_81 = arith.constant 0 : index
    %c0_82 = arith.constant 0 : index
    %127 = vector.load %arg2[%c1_80, %c0_81, %c0_82] : memref<2x8x8xf32, #tpu.memory_space<vmem>>, vector<1x8x8xf32>
    %128 = vector.shape_cast %127 : vector<1x8x8xf32> to vector<8x8xf32>
    %cst_83 = arith.constant 5.000000e-01 : f32
    %129 = vector.broadcast %cst_83 : f32 to vector<8x8xf32>
    %130 = arith.cmpf ogt, %128, %129 : vector<8x8xf32>
    %cst_84 = arith.constant -1.000000e+09 : f32
    %131 = vector.broadcast %cst_84 : f32 to vector<8x8xf32>
    %132 = arith.select %130, %131, %126 : vector<8x8xi1>, vector<8x8xf32>
    %cst_85 = arith.constant dense<0xFF800000> : vector<8xf32>
    %133 = vector.multi_reduction <maximumf>, %132, %cst_85 [1] : vector<8x8xf32> to vector<8xf32>
    %134 = vector.shape_cast %133 : vector<8xf32> to vector<8x1xf32>
    %135 = vector.broadcast %134 : vector<8x1xf32> to vector<8x8xf32>
    %136 = arith.subf %132, %135 : vector<8x8xf32>
    %137 = math.exp %136 : vector<8x8xf32>
    %cst_86 = arith.constant dense<0.000000e+00> : vector<8xf32>
    %138 = vector.multi_reduction <add>, %137, %cst_86 [1] : vector<8x8xf32> to vector<8xf32>
    %139 = vector.shape_cast %138 : vector<8xf32> to vector<8x1xf32>
    %140 = tpu.reciprocal %139 {approx = true} : vector<8x1xf32> -> vector<8x1xf32>
    %141 = vector.broadcast %140 : vector<8x1xf32> to vector<8x8xf32>
    %142 = arith.mulf %137, %141 : vector<8x8xf32>
    %cst_87 = arith.constant dense<0.000000e+00> : vector<8x16xf32>
    %143 = tpu.matmul %142, %123, %cst_87 {dimension_numbers = #tpu.dot_dimension_numbers<[1], [0], [0], [1], [0, 0, 1, 1], [], []>} : vector<8x8xf32>, vector<8x16xf32>, vector<8x16xf32> -> vector<8x16xf32>
    %144 = tpu.concatenate %120, %143 in 0 : vector<8x16xf32>, vector<8x16xf32> -> vector<16x16xf32>
    %c1_88 = arith.constant 1 : index
    %c0_89 = arith.constant 0 : index
    %c0_90 = arith.constant 0 : index
    %145 = vector.load %arg9[%c1_88, %c0_89, %c0_90] : memref<2x16x32xf32, #tpu.memory_space<vmem>>, vector<1x16x32xf32>
    %146 = vector.shape_cast %145 : vector<1x16x32xf32> to vector<16x32xf32>
    %cst_91 = arith.constant dense<0.000000e+00> : vector<16x32xf32>
    %147 = tpu.matmul %144, %146, %cst_91 {dimension_numbers = #tpu.dot_dimension_numbers<[1], [0], [0], [1], [0, 0, 1, 1], [], []>} : vector<16x16xf32>, vector<16x32xf32>, vector<16x32xf32> -> vector<16x32xf32>
    %148 = arith.addf %76, %147 : vector<16x32xf32>
    %149 = arith.addf %0, %148 : vector<16x32xf32>
    %c0_92 = arith.constant 0 : index
    %c0_93 = arith.constant 0 : index
    %150 = vector.load %arg11[%c0_92, %c0_93] : memref<1x32xf32, #tpu.memory_space<vmem>>, vector<1x32xf32>
    %c0_94 = arith.constant 0 : index
    %c0_95 = arith.constant 0 : index
    %151 = vector.load %arg12[%c0_94, %c0_95] : memref<1x32xf32, #tpu.memory_space<vmem>>, vector<1x32xf32>
    %cst_96 = arith.constant dense<0.000000e+00> : vector<16xf32>
    %152 = vector.multi_reduction <add>, %149, %cst_96 [1] : vector<16x32xf32> to vector<16xf32>
    %153 = vector.shape_cast %152 : vector<16xf32> to vector<16x1xf32>
    %cst_97 = arith.constant 3.200000e+01 : f32
    %154 = vector.broadcast %cst_97 : f32 to vector<16x1xf32>
    %155 = arith.divf %153, %154 : vector<16x1xf32>
    %156 = vector.broadcast %155 : vector<16x1xf32> to vector<16x32xf32>
    %157 = arith.subf %149, %156 : vector<16x32xf32>
    %158 = arith.mulf %157, %157 : vector<16x32xf32>
    %cst_98 = arith.constant dense<0.000000e+00> : vector<16xf32>
    %159 = vector.multi_reduction <add>, %158, %cst_98 [1] : vector<16x32xf32> to vector<16xf32>
    %160 = vector.shape_cast %159 : vector<16xf32> to vector<16x1xf32>
    %cst_99 = arith.constant 3.200000e+01 : f32
    %161 = vector.broadcast %cst_99 : f32 to vector<16x1xf32>
    %162 = arith.divf %160, %161 : vector<16x1xf32>
    %163 = vector.broadcast %155 : vector<16x1xf32> to vector<16x32xf32>
    %164 = arith.subf %149, %163 : vector<16x32xf32>
    %cst_100 = arith.constant 9.99999996E-13 : f32
    %165 = vector.broadcast %cst_100 : f32 to vector<16x1xf32>
    %166 = arith.addf %162, %165 : vector<16x1xf32>
    %167 = math.rsqrt %166 : vector<16x1xf32>
    %168 = vector.broadcast %167 : vector<16x1xf32> to vector<16x32xf32>
    %169 = arith.mulf %164, %168 : vector<16x32xf32>
    %170 = vector.broadcast %150 : vector<1x32xf32> to vector<16x32xf32>
    %171 = arith.mulf %169, %170 : vector<16x32xf32>
    %172 = vector.broadcast %151 : vector<1x32xf32> to vector<16x32xf32>
    %173 = arith.addf %171, %172 : vector<16x32xf32>
    %c0_101 = arith.constant 0 : index
    %c0_102 = arith.constant 0 : index
    %174 = vector.load %arg13[%c0_101, %c0_102] : memref<32x64xf32, #tpu.memory_space<vmem>>, vector<32x64xf32>
    %cst_103 = arith.constant dense<0.000000e+00> : vector<16x64xf32>
    %175 = tpu.matmul %173, %174, %cst_103 {dimension_numbers = #tpu.dot_dimension_numbers<[1], [0], [0], [1], [0, 0, 1, 1], [], []>} : vector<16x32xf32>, vector<32x64xf32>, vector<16x64xf32> -> vector<16x64xf32>
    %c0_104 = arith.constant 0 : index
    %c0_105 = arith.constant 0 : index
    %176 = vector.load %arg14[%c0_104, %c0_105] : memref<1x64xf32, #tpu.memory_space<vmem>>, vector<1x64xf32>
    %177 = vector.broadcast %176 : vector<1x64xf32> to vector<16x64xf32>
    %178 = arith.addf %175, %177 : vector<16x64xf32>
    %cst_106 = arith.constant 0.000000e+00 : f32
    %179 = vector.broadcast %cst_106 : f32 to vector<16x64xf32>
    %180 = arith.maximumf %178, %179 : vector<16x64xf32>
    %c0_107 = arith.constant 0 : index
    %c0_108 = arith.constant 0 : index
    %181 = vector.load %arg15[%c0_107, %c0_108] : memref<64x32xf32, #tpu.memory_space<vmem>>, vector<64x32xf32>
    %cst_109 = arith.constant dense<0.000000e+00> : vector<16x32xf32>
    %182 = tpu.matmul %180, %181, %cst_109 {dimension_numbers = #tpu.dot_dimension_numbers<[1], [0], [0], [1], [0, 0, 1, 1], [], []>} : vector<16x64xf32>, vector<64x32xf32>, vector<16x32xf32> -> vector<16x32xf32>
    %c0_110 = arith.constant 0 : index
    %c0_111 = arith.constant 0 : index
    %183 = vector.load %arg16[%c0_110, %c0_111] : memref<1x32xf32, #tpu.memory_space<vmem>>, vector<1x32xf32>
    %184 = vector.broadcast %183 : vector<1x32xf32> to vector<16x32xf32>
    %185 = arith.addf %182, %184 : vector<16x32xf32>
    %186 = arith.addf %185, %173 : vector<16x32xf32>
    %c0_112 = arith.constant 0 : index
    %c0_113 = arith.constant 0 : index
    %187 = vector.load %arg17[%c0_112, %c0_113] : memref<1x32xf32, #tpu.memory_space<vmem>>, vector<1x32xf32>
    %c0_114 = arith.constant 0 : index
    %c0_115 = arith.constant 0 : index
    %188 = vector.load %arg18[%c0_114, %c0_115] : memref<1x32xf32, #tpu.memory_space<vmem>>, vector<1x32xf32>
    %cst_116 = arith.constant dense<0.000000e+00> : vector<16xf32>
    %189 = vector.multi_reduction <add>, %186, %cst_116 [1] : vector<16x32xf32> to vector<16xf32>
    %190 = vector.shape_cast %189 : vector<16xf32> to vector<16x1xf32>
    %cst_117 = arith.constant 3.200000e+01 : f32
    %191 = vector.broadcast %cst_117 : f32 to vector<16x1xf32>
    %192 = arith.divf %190, %191 : vector<16x1xf32>
    %193 = vector.broadcast %192 : vector<16x1xf32> to vector<16x32xf32>
    %194 = arith.subf %186, %193 : vector<16x32xf32>
    %195 = arith.mulf %194, %194 : vector<16x32xf32>
    %cst_118 = arith.constant dense<0.000000e+00> : vector<16xf32>
    %196 = vector.multi_reduction <add>, %195, %cst_118 [1] : vector<16x32xf32> to vector<16xf32>
    %197 = vector.shape_cast %196 : vector<16xf32> to vector<16x1xf32>
    %cst_119 = arith.constant 3.200000e+01 : f32
    %198 = vector.broadcast %cst_119 : f32 to vector<16x1xf32>
    %199 = arith.divf %197, %198 : vector<16x1xf32>
    %200 = vector.broadcast %192 : vector<16x1xf32> to vector<16x32xf32>
    %201 = arith.subf %186, %200 : vector<16x32xf32>
    %cst_120 = arith.constant 9.99999996E-13 : f32
    %202 = vector.broadcast %cst_120 : f32 to vector<16x1xf32>
    %203 = arith.addf %199, %202 : vector<16x1xf32>
    %204 = math.rsqrt %203 : vector<16x1xf32>
    %205 = vector.broadcast %204 : vector<16x1xf32> to vector<16x32xf32>
    %206 = arith.mulf %201, %205 : vector<16x32xf32>
    %207 = vector.broadcast %187 : vector<1x32xf32> to vector<16x32xf32>
    %208 = arith.mulf %206, %207 : vector<16x32xf32>
    %209 = vector.broadcast %188 : vector<1x32xf32> to vector<16x32xf32>
    %210 = arith.addf %208, %209 : vector<16x32xf32>
    %c0_121 = arith.constant 0 : index
    %c0_122 = arith.constant 0 : index
    %211 = vector.load %arg19[%c0_121, %c0_122] : memref<16x32xf32, #tpu.memory_space<vmem>>, vector<16x32xf32>
    tpu.vector_store %arg19[%c0_121, %c0_122], %210 {strides = array<i32>} : memref<16x32xf32, #tpu.memory_space<vmem>>, vector<16x32xf32>,
    return
  }
  func.func @transform_0(%arg0: i32) -> (i32, i32) {
    %c0_i32 = arith.constant 0 : i32
    %c0_i32_0 = arith.constant 0 : i32
    %c0_i32_1 = arith.constant 0 : i32
    return %c0_i32, %c0_i32_0 : i32, i32
  }
  func.func @transform_1(%arg0: i32) -> (i32, i32, i32) {
    %c0_i32 = arith.constant 0 : i32
    %c0_i32_0 = arith.constant 0 : i32
    %c0_i32_1 = arith.constant 0 : i32
    %c0_i32_2 = arith.constant 0 : i32
    return %c0_i32, %c0_i32_0, %c0_i32_1 : i32, i32, i32
  }
  func.func @transform_2(%arg0: i32) -> (i32, i32, i32) {
    %c0_i32 = arith.constant 0 : i32
    %c0_i32_0 = arith.constant 0 : i32
    %c0_i32_1 = arith.constant 0 : i32
    %c0_i32_2 = arith.constant 0 : i32
    return %c0_i32, %c0_i32_0, %c0_i32_1 : i32, i32, i32
  }
  func.func @transform_3(%arg0: i32) -> (i32, i32, i32) {
    %c0_i32 = arith.constant 0 : i32
    %c0_i32_0 = arith.constant 0 : i32
    %c0_i32_1 = arith.constant 0 : i32
    %c0_i32_2 = arith.constant 0 : i32
    return %c0_i32, %c0_i32_0, %c0_i32_1 : i32, i32, i32
  }
  func.func @transform_4(%arg0: i32) -> (i32, i32, i32) {
    %c0_i32 = arith.constant 0 : i32
    %c0_i32_0 = arith.constant 0 : i32
    %c0_i32_1 = arith.constant 0 : i32
    %c0_i32_2 = arith.constant 0 : i32
    return %c0_i32, %c0_i32_0, %c0_i32_1 : i32, i32, i32
  }
  func.func @transform_5(%arg0: i32) -> (i32, i32, i32) {
    %c0_i32 = arith.constant 0 : i32
    %c0_i32_0 = arith.constant 0 : i32
    %c0_i32_1 = arith.constant 0 : i32
    %c0_i32_2 = arith.constant 0 : i32
    return %c0_i32, %c0_i32_0, %c0_i32_1 : i32, i32, i32
  }
  func.func @transform_6(%arg0: i32) -> (i32, i32, i32) {
    %c0_i32 = arith.constant 0 : i32
    %c0_i32_0 = arith.constant 0 : i32
    %c0_i32_1 = arith.constant 0 : i32
    %c0_i32_2 = arith.constant 0 : i32
    return %c0_i32, %c0_i32_0, %c0_i32_1 : i32, i32, i32
  }
  func.func @transform_7(%arg0: i32) -> (i32, i32, i32) {
    %c0_i32 = arith.constant 0 : i32
    %c0_i32_0 = arith.constant 0 : i32
    %c0_i32_1 = arith.constant 0 : i32
    %c0_i32_2 = arith.constant 0 : i32
    return %c0_i32, %c0_i32_0, %c0_i32_1 : i32, i32, i32
  }
  func.func @transform_8(%arg0: i32) -> (i32, i32, i32) {
    %c0_i32 = arith.constant 0 : i32
    %c0_i32_0 = arith.constant 0 : i32
    %c0_i32_1 = arith.constant 0 : i32
    %c0_i32_2 = arith.constant 0 : i32
    return %c0_i32, %c0_i32_0, %c0_i32_1 : i32, i32, i32
  }
  func.func @transform_9(%arg0: i32) -> (i32, i32) {
    %c0_i32 = arith.constant 0 : i32
    %c0_i32_0 = arith.constant 0 : i32
    %c0_i32_1 = arith.constant 0 : i32
    return %c0_i32, %c0_i32_0 : i32, i32
  }
  func.func @transform_10(%arg0: i32) -> (i32, i32) {
    %c0_i32 = arith.constant 0 : i32
    %c0_i32_0 = arith.constant 0 : i32
    %c0_i32_1 = arith.constant 0 : i32
    return %c0_i32, %c0_i32_0 : i32, i32
  }
  func.func @transform_11(%arg0: i32) -> (i32, i32) {
    %c0_i32 = arith.constant 0 : i32
    %c0_i32_0 = arith.constant 0 : i32
    %c0_i32_1 = arith.constant 0 : i32
    return %c0_i32, %c0_i32_0 : i32, i32
  }
  func.func @transform_12(%arg0: i32) -> (i32, i32) {
    %c0_i32 = arith.constant 0 : i32
    %c0_i32_0 = arith.constant 0 : i32
    %c0_i32_1 = arith.constant 0 : i32
    return %c0_i32, %c0_i32_0 : i32, i32
  }
  func.func @transform_13(%arg0: i32) -> (i32, i32) {
    %c0_i32 = arith.constant 0 : i32
    %c0_i32_0 = arith.constant 0 : i32
    %c0_i32_1 = arith.constant 0 : i32
    return %c0_i32, %c0_i32_0 : i32, i32
  }
  func.func @transform_14(%arg0: i32) -> (i32, i32) {
    %c0_i32 = arith.constant 0 : i32
    %c0_i32_0 = arith.constant 0 : i32
    %c0_i32_1 = arith.constant 0 : i32
    return %c0_i32, %c0_i32_0 : i32, i32
  }
  func.func @transform_15(%arg0: i32) -> (i32, i32) {
    %c0_i32 = arith.constant 0 : i32
    %c0_i32_0 = arith.constant 0 : i32
    %c0_i32_1 = arith.constant 0 : i32
    return %c0_i32, %c0_i32_0 : i32, i32
  }
  func.func @transform_16(%arg0: i32) -> (i32, i32) {
    %c0_i32 = arith.constant 0 : i32
    %c0_i32_0 = arith.constant 0 : i32
    %c0_i32_1 = arith.constant 0 : i32
    return %c0_i32, %c0_i32_0 : i32, i32
  }
  func.func @transform_17(%arg0: i32) -> (i32, i32) {
    %c0_i32 = arith.constant 0 : i32
    %c0_i32_0 = arith.constant 0 : i32
    %c0_i32_1 = arith.constant 0 : i32
    return %c0_i32, %c0_i32_0 : i32, i32
  }
  func.func @transform_18(%arg0: i32) -> (i32, i32) {
    %c0_i32 = arith.constant 0 : i32
    %c0_i32_0 = arith.constant 0 : i32
    %c0_i32_1 = arith.constant 0 : i32
    return %c0_i32, %c0_i32_0 : i32, i32
  }
}

module attributes {stable_mosaic.version = 11 : i64} {
  func.func @_classifier_kernel(%arg0: i32, %arg1: memref<16x32xf32, #tpu.memory_space<vmem>>, %arg2: memref<32x11xf32, #tpu.memory_space<vmem>>, %arg3: memref<1x11xf32, #tpu.memory_space<vmem>>, %arg4: memref<16x11xf32, #tpu.memory_space<vmem>>) attributes {dimension_semantics = [#tpu.dimension_semantics<arbitrary>], iteration_bounds = array<i64: 1>, scalar_prefetch = 0 : i64, scratch_operands = 0 : i64, tpu.core_type = #tpu.core_type<tc>, window_params = [{pipeline_mode = #tpu.pipeline_mode<synchronous>, transform_indices = @transform_0, window_bounds = array<i64: 16, 32>}, {pipeline_mode = #tpu.pipeline_mode<synchronous>, transform_indices = @transform_1, window_bounds = array<i64: 32, 11>}, {pipeline_mode = #tpu.pipeline_mode<synchronous>, transform_indices = @transform_2, window_bounds = array<i64: 1, 11>}, {pipeline_mode = #tpu.pipeline_mode<synchronous>, transform_indices = @transform_3, window_bounds = array<i64: 16, 11>}]} {
    %c0 = arith.constant 0 : index
    %c0_0 = arith.constant 0 : index
    %0 = vector.load %arg1[%c0, %c0_0] : memref<16x32xf32, #tpu.memory_space<vmem>>, vector<16x32xf32>
    %c0_1 = arith.constant 0 : index
    %c0_2 = arith.constant 0 : index
    %1 = vector.load %arg2[%c0_1, %c0_2] : memref<32x11xf32, #tpu.memory_space<vmem>>, vector<32x11xf32>
    %cst = arith.constant dense<0.000000e+00> : vector<16x11xf32>
    %2 = tpu.matmul %0, %1, %cst {dimension_numbers = #tpu.dot_dimension_numbers<[1], [0], [0], [1], [0, 0, 1, 1], [], []>} : vector<16x32xf32>, vector<32x11xf32>, vector<16x11xf32> -> vector<16x11xf32>
    %c0_3 = arith.constant 0 : index
    %c0_4 = arith.constant 0 : index
    %3 = vector.load %arg3[%c0_3, %c0_4] : memref<1x11xf32, #tpu.memory_space<vmem>>, vector<1x11xf32>
    %4 = vector.broadcast %3 : vector<1x11xf32> to vector<16x11xf32>
    %5 = arith.addf %2, %4 : vector<16x11xf32>
    %6 = vector.extract_strided_slice %5 {offsets = [0, 0], sizes = [8, 11], strides = [1, 1]} : vector<16x11xf32> to vector<8x11xf32>
    %cst_5 = arith.constant dense<0xFF800000> : vector<11xf32>
    %7 = vector.multi_reduction <maximumf>, %6, %cst_5 [0] : vector<8x11xf32> to vector<11xf32>
    %8 = vector.shape_cast %7 : vector<11xf32> to vector<1x11xf32>
    %9 = vector.broadcast %8 : vector<1x11xf32> to vector<8x11xf32>
    %10 = arith.subf %6, %9 : vector<8x11xf32>
    %11 = math.exp %10 : vector<8x11xf32>
    %cst_6 = arith.constant dense<0.000000e+00> : vector<11xf32>
    %12 = vector.multi_reduction <add>, %11, %cst_6 [0] : vector<8x11xf32> to vector<11xf32>
    %13 = vector.shape_cast %12 : vector<11xf32> to vector<1x11xf32>
    %14 = math.log %13 : vector<1x11xf32>
    %15 = vector.broadcast %14 : vector<1x11xf32> to vector<8x11xf32>
    %16 = arith.subf %10, %15 : vector<8x11xf32>
    %17 = vector.extract_strided_slice %5 {offsets = [8, 0], sizes = [8, 11], strides = [1, 1]} : vector<16x11xf32> to vector<8x11xf32>
    %cst_7 = arith.constant dense<0xFF800000> : vector<11xf32>
    %18 = vector.multi_reduction <maximumf>, %17, %cst_7 [0] : vector<8x11xf32> to vector<11xf32>
    %19 = vector.shape_cast %18 : vector<11xf32> to vector<1x11xf32>
    %20 = vector.broadcast %19 : vector<1x11xf32> to vector<8x11xf32>
    %21 = arith.subf %17, %20 : vector<8x11xf32>
    %22 = math.exp %21 : vector<8x11xf32>
    %cst_8 = arith.constant dense<0.000000e+00> : vector<11xf32>
    %23 = vector.multi_reduction <add>, %22, %cst_8 [0] : vector<8x11xf32> to vector<11xf32>
    %24 = vector.shape_cast %23 : vector<11xf32> to vector<1x11xf32>
    %25 = math.log %24 : vector<1x11xf32>
    %26 = vector.broadcast %25 : vector<1x11xf32> to vector<8x11xf32>
    %27 = arith.subf %21, %26 : vector<8x11xf32>
    %28 = tpu.concatenate %16, %27 in 0 : vector<8x11xf32>, vector<8x11xf32> -> vector<16x11xf32>
    %c0_9 = arith.constant 0 : index
    %c0_10 = arith.constant 0 : index
    %29 = vector.load %arg4[%c0_9, %c0_10] : memref<16x11xf32, #tpu.memory_space<vmem>>, vector<16x11xf32>
    tpu.vector_store %arg4[%c0_9, %c0_10], %28 {strides = array<i32>} : memref<16x11xf32, #tpu.memory_space<vmem>>, vector<16x11xf32>,
    return
  }
  func.func @transform_0(%arg0: i32) -> (i32, i32) {
    %c0_i32 = arith.constant 0 : i32
    %c0_i32_0 = arith.constant 0 : i32
    %c0_i32_1 = arith.constant 0 : i32
    return %c0_i32, %c0_i32_0 : i32, i32
  }
  func.func @transform_1(%arg0: i32) -> (i32, i32) {
    %c0_i32 = arith.constant 0 : i32
    %c0_i32_0 = arith.constant 0 : i32
    %c0_i32_1 = arith.constant 0 : i32
    return %c0_i32, %c0_i32_0 : i32, i32
  }
  func.func @transform_2(%arg0: i32) -> (i32, i32) {
    %c0_i32 = arith.constant 0 : i32
    %c0_i32_0 = arith.constant 0 : i32
    %c0_i32_1 = arith.constant 0 : i32
    return %c0_i32, %c0_i32_0 : i32, i32
  }
  func.func @transform_3(%arg0: i32) -> (i32, i32) {
    %c0_i32 = arith.constant 0 : i32
    %c0_i32_0 = arith.constant 0 : i32
    %c0_i32_1 = arith.constant 0 : i32
    return %c0_i32, %c0_i32_0 : i32, i32
  }
}

module attributes {stable_mosaic.version = 11 : i64} {
  func.func @_decoder_layer_kernel(%arg0: i32, %arg1: memref<16x32xf32, #tpu.memory_space<vmem>>, %arg2: memref<16x32xf32, #tpu.memory_space<vmem>>, %arg3: memref<2x8x8xf32, #tpu.memory_space<vmem>>, %arg4: memref<1x32xf32, #tpu.memory_space<vmem>>, %arg5: memref<1x32xf32, #tpu.memory_space<vmem>>, %arg6: memref<2x32x16xf32, #tpu.memory_space<vmem>>, %arg7: memref<2x1x16xf32, #tpu.memory_space<vmem>>, %arg8: memref<2x32x16xf32, #tpu.memory_space<vmem>>, %arg9: memref<2x1x16xf32, #tpu.memory_space<vmem>>, %arg10: memref<2x32x16xf32, #tpu.memory_space<vmem>>, %arg11: memref<2x1x16xf32, #tpu.memory_space<vmem>>, %arg12: memref<2x16x32xf32, #tpu.memory_space<vmem>>, %arg13: memref<1x32xf32, #tpu.memory_space<vmem>>, %arg14: memref<1x32xf32, #tpu.memory_space<vmem>>, %arg15: memref<1x32xf32, #tpu.memory_space<vmem>>, %arg16: memref<32x64xf32, #tpu.memory_space<vmem>>, %arg17: memref<1x64xf32, #tpu.memory_space<vmem>>, %arg18: memref<64x32xf32, #tpu.memory_space<vmem>>, %arg19: memref<1x32xf32, #tpu.memory_space<vmem>>, %arg20: memref<1x32xf32, #tpu.memory_space<vmem>>, %arg21: memref<1x32xf32, #tpu.memory_space<vmem>>, %arg22: memref<16x32xf32, #tpu.memory_space<vmem>>) attributes {dimension_semantics = [#tpu.dimension_semantics<arbitrary>], iteration_bounds = array<i64: 1>, scalar_prefetch = 0 : i64, scratch_operands = 0 : i64, tpu.core_type = #tpu.core_type<tc>, window_params = [{pipeline_mode = #tpu.pipeline_mode<synchronous>, transform_indices = @transform_0, window_bounds = array<i64: 16, 32>}, {pipeline_mode = #tpu.pipeline_mode<synchronous>, transform_indices = @transform_1, window_bounds = array<i64: 16, 32>}, {pipeline_mode = #tpu.pipeline_mode<synchronous>, transform_indices = @transform_2, window_bounds = array<i64: 2, 8, 8>}, {pipeline_mode = #tpu.pipeline_mode<synchronous>, transform_indices = @transform_3, window_bounds = array<i64: 1, 32>}, {pipeline_mode = #tpu.pipeline_mode<synchronous>, transform_indices = @transform_4, window_bounds = array<i64: 1, 32>}, {pipeline_mode = #tpu.pipeline_mode<synchronous>, transform_indices = @transform_5, window_bounds = array<i64: 2, 32, 16>}, {pipeline_mode = #tpu.pipeline_mode<synchronous>, transform_indices = @transform_6, window_bounds = array<i64: 2, 1, 16>}, {pipeline_mode = #tpu.pipeline_mode<synchronous>, transform_indices = @transform_7, window_bounds = array<i64: 2, 32, 16>}, {pipeline_mode = #tpu.pipeline_mode<synchronous>, transform_indices = @transform_8, window_bounds = array<i64: 2, 1, 16>}, {pipeline_mode = #tpu.pipeline_mode<synchronous>, transform_indices = @transform_9, window_bounds = array<i64: 2, 32, 16>}, {pipeline_mode = #tpu.pipeline_mode<synchronous>, transform_indices = @transform_10, window_bounds = array<i64: 2, 1, 16>}, {pipeline_mode = #tpu.pipeline_mode<synchronous>, transform_indices = @transform_11, window_bounds = array<i64: 2, 16, 32>}, {pipeline_mode = #tpu.pipeline_mode<synchronous>, transform_indices = @transform_12, window_bounds = array<i64: 1, 32>}, {pipeline_mode = #tpu.pipeline_mode<synchronous>, transform_indices = @transform_13, window_bounds = array<i64: 1, 32>}, {pipeline_mode = #tpu.pipeline_mode<synchronous>, transform_indices = @transform_14, window_bounds = array<i64: 1, 32>}, {pipeline_mode = #tpu.pipeline_mode<synchronous>, transform_indices = @transform_15, window_bounds = array<i64: 32, 64>}, {pipeline_mode = #tpu.pipeline_mode<synchronous>, transform_indices = @transform_16, window_bounds = array<i64: 1, 64>}, {pipeline_mode = #tpu.pipeline_mode<synchronous>, transform_indices = @transform_17, window_bounds = array<i64: 64, 32>}, {pipeline_mode = #tpu.pipeline_mode<synchronous>, transform_indices = @transform_18, window_bounds = array<i64: 1, 32>}, {pipeline_mode = #tpu.pipeline_mode<synchronous>, transform_indices = @transform_19, window_bounds = array<i64: 1, 32>}, {pipeline_mode = #tpu.pipeline_mode<synchronous>, transform_indices = @transform_20, window_bounds = array<i64: 1, 32>}, {pipeline_mode = #tpu.pipeline_mode<synchronous>, transform_indices = @transform_21, window_bounds = array<i64: 16, 32>}]} {
    %c0 = arith.constant 0 : index
    %c0_0 = arith.constant 0 : index
    %0 = vector.load %arg1[%c0, %c0_0] : memref<16x32xf32, #tpu.memory_space<vmem>>, vector<16x32xf32>
    %c0_1 = arith.constant 0 : index
    %c0_2 = arith.constant 0 : index
    %1 = vector.load %arg4[%c0_1, %c0_2] : memref<1x32xf32, #tpu.memory_space<vmem>>, vector<1x32xf32>
    %c0_3 = arith.constant 0 : index
    %c0_4 = arith.constant 0 : index
    %2 = vector.load %arg5[%c0_3, %c0_4] : memref<1x32xf32, #tpu.memory_space<vmem>>, vector<1x32xf32>
    %cst = arith.constant dense<0.000000e+00> : vector<16xf32>
    %3 = vector.multi_reduction <add>, %0, %cst [1] : vector<16x32xf32> to vector<16xf32>
    %4 = vector.shape_cast %3 : vector<16xf32> to vector<16x1xf32>
    %cst_5 = arith.constant 3.200000e+01 : f32
    %5 = vector.broadcast %cst_5 : f32 to vector<16x1xf32>
    %6 = arith.divf %4, %5 : vector<16x1xf32>
    %7 = vector.broadcast %6 : vector<16x1xf32> to vector<16x32xf32>
    %8 = arith.subf %0, %7 : vector<16x32xf32>
    %9 = arith.mulf %8, %8 : vector<16x32xf32>
    %cst_6 = arith.constant dense<0.000000e+00> : vector<16xf32>
    %10 = vector.multi_reduction <add>, %9, %cst_6 [1] : vector<16x32xf32> to vector<16xf32>
    %11 = vector.shape_cast %10 : vector<16xf32> to vector<16x1xf32>
    %cst_7 = arith.constant 3.200000e+01 : f32
    %12 = vector.broadcast %cst_7 : f32 to vector<16x1xf32>
    %13 = arith.divf %11, %12 : vector<16x1xf32>
    %14 = vector.broadcast %6 : vector<16x1xf32> to vector<16x32xf32>
    %15 = arith.subf %0, %14 : vector<16x32xf32>
    %cst_8 = arith.constant 9.99999996E-13 : f32
    %16 = vector.broadcast %cst_8 : f32 to vector<16x1xf32>
    %17 = arith.addf %13, %16 : vector<16x1xf32>
    %18 = math.rsqrt %17 : vector<16x1xf32>
    %19 = vector.broadcast %18 : vector<16x1xf32> to vector<16x32xf32>
    %20 = arith.mulf %15, %19 : vector<16x32xf32>
    %21 = vector.broadcast %1 : vector<1x32xf32> to vector<16x32xf32>
    %22 = arith.mulf %20, %21 : vector<16x32xf32>
    %23 = vector.broadcast %2 : vector<1x32xf32> to vector<16x32xf32>
    %24 = arith.addf %22, %23 : vector<16x32xf32>
    %c0_9 = arith.constant 0 : index
    %c0_10 = arith.constant 0 : index
    %25 = vector.load %arg2[%c0_9, %c0_10] : memref<16x32xf32, #tpu.memory_space<vmem>>, vector<16x32xf32>
    %cst_11 = arith.constant 0.000000e+00 : f32
    %26 = vector.broadcast %cst_11 : f32 to vector<16x32xf32>
    %c0_12 = arith.constant 0 : index
    %c0_13 = arith.constant 0 : index
    %27 = vector.load %arg13[%c0_12, %c0_13] : memref<1x32xf32, #tpu.memory_space<vmem>>, vector<1x32xf32>
    %28 = vector.broadcast %27 : vector<1x32xf32> to vector<16x32xf32>
    %29 = arith.addf %26, %28 : vector<16x32xf32>
    %c0_14 = arith.constant 0 : index
    %c0_15 = arith.constant 0 : index
    %c0_16 = arith.constant 0 : index
    %30 = vector.load %arg6[%c0_14, %c0_15, %c0_16] : memref<2x32x16xf32, #tpu.memory_space<vmem>>, vector<1x32x16xf32>
    %31 = vector.shape_cast %30 : vector<1x32x16xf32> to vector<32x16xf32>
    %cst_17 = arith.constant dense<0.000000e+00> : vector<16x16xf32>
    %32 = tpu.matmul %24, %31, %cst_17 {dimension_numbers = #tpu.dot_dimension_numbers<[1], [0], [0], [1], [0, 0, 1, 1], [], []>} : vector<16x32xf32>, vector<32x16xf32>, vector<16x16xf32> -> vector<16x16xf32>
    %c0_18 = arith.constant 0 : index
    %c0_19 = arith.constant 0 : index
    %c0_20 = arith.constant 0 : index
    %33 = vector.load %arg7[%c0_18, %c0_19, %c0_20] : memref<2x1x16xf32, #tpu.memory_space<vmem>>, vector<1x1x16xf32>
    %34 = vector.shape_cast %33 : vector<1x1x16xf32> to vector<1x16xf32>
    %35 = vector.broadcast %34 : vector<1x16xf32> to vector<16x16xf32>
    %36 = arith.addf %32, %35 : vector<16x16xf32>
    %c0_21 = arith.constant 0 : index
    %c0_22 = arith.constant 0 : index
    %c0_23 = arith.constant 0 : index
    %37 = vector.load %arg8[%c0_21, %c0_22, %c0_23] : memref<2x32x16xf32, #tpu.memory_space<vmem>>, vector<1x32x16xf32>
    %38 = vector.shape_cast %37 : vector<1x32x16xf32> to vector<32x16xf32>
    %cst_24 = arith.constant dense<0.000000e+00> : vector<16x16xf32>
    %39 = tpu.matmul %25, %38, %cst_24 {dimension_numbers = #tpu.dot_dimension_numbers<[1], [0], [0], [1], [0, 0, 1, 1], [], []>} : vector<16x32xf32>, vector<32x16xf32>, vector<16x16xf32> -> vector<16x16xf32>
    %c0_25 = arith.constant 0 : index
    %c0_26 = arith.constant 0 : index
    %c0_27 = arith.constant 0 : index
    %40 = vector.load %arg9[%c0_25, %c0_26, %c0_27] : memref<2x1x16xf32, #tpu.memory_space<vmem>>, vector<1x1x16xf32>
    %41 = vector.shape_cast %40 : vector<1x1x16xf32> to vector<1x16xf32>
    %42 = vector.broadcast %41 : vector<1x16xf32> to vector<16x16xf32>
    %43 = arith.addf %39, %42 : vector<16x16xf32>
    %c0_28 = arith.constant 0 : index
    %c0_29 = arith.constant 0 : index
    %c0_30 = arith.constant 0 : index
    %44 = vector.load %arg10[%c0_28, %c0_29, %c0_30] : memref<2x32x16xf32, #tpu.memory_space<vmem>>, vector<1x32x16xf32>
    %45 = vector.shape_cast %44 : vector<1x32x16xf32> to vector<32x16xf32>
    %cst_31 = arith.constant dense<0.000000e+00> : vector<16x16xf32>
    %46 = tpu.matmul %25, %45, %cst_31 {dimension_numbers = #tpu.dot_dimension_numbers<[1], [0], [0], [1], [0, 0, 1, 1], [], []>} : vector<16x32xf32>, vector<32x16xf32>, vector<16x16xf32> -> vector<16x16xf32>
    %c0_32 = arith.constant 0 : index
    %c0_33 = arith.constant 0 : index
    %c0_34 = arith.constant 0 : index
    %47 = vector.load %arg11[%c0_32, %c0_33, %c0_34] : memref<2x1x16xf32, #tpu.memory_space<vmem>>, vector<1x1x16xf32>
    %48 = vector.shape_cast %47 : vector<1x1x16xf32> to vector<1x16xf32>
    %49 = vector.broadcast %48 : vector<1x16xf32> to vector<16x16xf32>
    %50 = arith.addf %46, %49 : vector<16x16xf32>
    %51 = vector.extract_strided_slice %36 {offsets = [0, 0], sizes = [8, 16], strides = [1, 1]} : vector<16x16xf32> to vector<8x16xf32>
    %52 = vector.extract_strided_slice %43 {offsets = [0, 0], sizes = [8, 16], strides = [1, 1]} : vector<16x16xf32> to vector<8x16xf32>
    %53 = vector.extract_strided_slice %50 {offsets = [0, 0], sizes = [8, 16], strides = [1, 1]} : vector<16x16xf32> to vector<8x16xf32>
    %cst_35 = arith.constant dense<0.000000e+00> : vector<8x8xf32>
    %54 = tpu.matmul %51, %52, %cst_35 {dimension_numbers = #tpu.dot_dimension_numbers<[1], [1], [0], [0], [0, 0, 1, 0], [], []>} : vector<8x16xf32>, vector<8x16xf32>, vector<8x8xf32> -> vector<8x8xf32>
    %cst_36 = arith.constant 2.500000e-01 : f32
    %55 = vector.broadcast %cst_36 : f32 to vector<8x8xf32>
    %56 = arith.mulf %54, %55 : vector<8x8xf32>
    %c0_37 = arith.constant 0 : index
    %c0_38 = arith.constant 0 : index
    %c0_39 = arith.constant 0 : index
    %57 = vector.load %arg3[%c0_37, %c0_38, %c0_39] : memref<2x8x8xf32, #tpu.memory_space<vmem>>, vector<1x8x8xf32>
    %58 = vector.shape_cast %57 : vector<1x8x8xf32> to vector<8x8xf32>
    %cst_40 = arith.constant 5.000000e-01 : f32
    %59 = vector.broadcast %cst_40 : f32 to vector<8x8xf32>
    %60 = arith.cmpf ogt, %58, %59 : vector<8x8xf32>
    %cst_41 = arith.constant -1.000000e+09 : f32
    %61 = vector.broadcast %cst_41 : f32 to vector<8x8xf32>
    %62 = arith.select %60, %61, %56 : vector<8x8xi1>, vector<8x8xf32>
    %cst_42 = arith.constant dense<0xFF800000> : vector<8xf32>
    %63 = vector.multi_reduction <maximumf>, %62, %cst_42 [1] : vector<8x8xf32> to vector<8xf32>
    %64 = vector.shape_cast %63 : vector<8xf32> to vector<8x1xf32>
    %65 = vector.broadcast %64 : vector<8x1xf32> to vector<8x8xf32>
    %66 = arith.subf %62, %65 : vector<8x8xf32>
    %67 = math.exp %66 : vector<8x8xf32>
    %cst_43 = arith.constant dense<0.000000e+00> : vector<8xf32>
    %68 = vector.multi_reduction <add>, %67, %cst_43 [1] : vector<8x8xf32> to vector<8xf32>
    %69 = vector.shape_cast %68 : vector<8xf32> to vector<8x1xf32>
    %70 = tpu.reciprocal %69 {approx = true} : vector<8x1xf32> -> vector<8x1xf32>
    %71 = vector.broadcast %70 : vector<8x1xf32> to vector<8x8xf32>
    %72 = arith.mulf %67, %71 : vector<8x8xf32>
    %cst_44 = arith.constant dense<0.000000e+00> : vector<8x16xf32>
    %73 = tpu.matmul %72, %53, %cst_44 {dimension_numbers = #tpu.dot_dimension_numbers<[1], [0], [0], [1], [0, 0, 1, 1], [], []>} : vector<8x8xf32>, vector<8x16xf32>, vector<8x16xf32> -> vector<8x16xf32>
    %74 = vector.extract_strided_slice %36 {offsets = [8, 0], sizes = [8, 16], strides = [1, 1]} : vector<16x16xf32> to vector<8x16xf32>
    %75 = vector.extract_strided_slice %43 {offsets = [8, 0], sizes = [8, 16], strides = [1, 1]} : vector<16x16xf32> to vector<8x16xf32>
    %76 = vector.extract_strided_slice %50 {offsets = [8, 0], sizes = [8, 16], strides = [1, 1]} : vector<16x16xf32> to vector<8x16xf32>
    %cst_45 = arith.constant dense<0.000000e+00> : vector<8x8xf32>
    %77 = tpu.matmul %74, %75, %cst_45 {dimension_numbers = #tpu.dot_dimension_numbers<[1], [1], [0], [0], [0, 0, 1, 0], [], []>} : vector<8x16xf32>, vector<8x16xf32>, vector<8x8xf32> -> vector<8x8xf32>
    %cst_46 = arith.constant 2.500000e-01 : f32
    %78 = vector.broadcast %cst_46 : f32 to vector<8x8xf32>
    %79 = arith.mulf %77, %78 : vector<8x8xf32>
    %c1 = arith.constant 1 : index
    %c0_47 = arith.constant 0 : index
    %c0_48 = arith.constant 0 : index
    %80 = vector.load %arg3[%c1, %c0_47, %c0_48] : memref<2x8x8xf32, #tpu.memory_space<vmem>>, vector<1x8x8xf32>
    %81 = vector.shape_cast %80 : vector<1x8x8xf32> to vector<8x8xf32>
    %cst_49 = arith.constant 5.000000e-01 : f32
    %82 = vector.broadcast %cst_49 : f32 to vector<8x8xf32>
    %83 = arith.cmpf ogt, %81, %82 : vector<8x8xf32>
    %cst_50 = arith.constant -1.000000e+09 : f32
    %84 = vector.broadcast %cst_50 : f32 to vector<8x8xf32>
    %85 = arith.select %83, %84, %79 : vector<8x8xi1>, vector<8x8xf32>
    %cst_51 = arith.constant dense<0xFF800000> : vector<8xf32>
    %86 = vector.multi_reduction <maximumf>, %85, %cst_51 [1] : vector<8x8xf32> to vector<8xf32>
    %87 = vector.shape_cast %86 : vector<8xf32> to vector<8x1xf32>
    %88 = vector.broadcast %87 : vector<8x1xf32> to vector<8x8xf32>
    %89 = arith.subf %85, %88 : vector<8x8xf32>
    %90 = math.exp %89 : vector<8x8xf32>
    %cst_52 = arith.constant dense<0.000000e+00> : vector<8xf32>
    %91 = vector.multi_reduction <add>, %90, %cst_52 [1] : vector<8x8xf32> to vector<8xf32>
    %92 = vector.shape_cast %91 : vector<8xf32> to vector<8x1xf32>
    %93 = tpu.reciprocal %92 {approx = true} : vector<8x1xf32> -> vector<8x1xf32>
    %94 = vector.broadcast %93 : vector<8x1xf32> to vector<8x8xf32>
    %95 = arith.mulf %90, %94 : vector<8x8xf32>
    %cst_53 = arith.constant dense<0.000000e+00> : vector<8x16xf32>
    %96 = tpu.matmul %95, %76, %cst_53 {dimension_numbers = #tpu.dot_dimension_numbers<[1], [0], [0], [1], [0, 0, 1, 1], [], []>} : vector<8x8xf32>, vector<8x16xf32>, vector<8x16xf32> -> vector<8x16xf32>
    %97 = tpu.concatenate %73, %96 in 0 : vector<8x16xf32>, vector<8x16xf32> -> vector<16x16xf32>
    %c0_54 = arith.constant 0 : index
    %c0_55 = arith.constant 0 : index
    %c0_56 = arith.constant 0 : index
    %98 = vector.load %arg12[%c0_54, %c0_55, %c0_56] : memref<2x16x32xf32, #tpu.memory_space<vmem>>, vector<1x16x32xf32>
    %99 = vector.shape_cast %98 : vector<1x16x32xf32> to vector<16x32xf32>
    %cst_57 = arith.constant dense<0.000000e+00> : vector<16x32xf32>
    %100 = tpu.matmul %97, %99, %cst_57 {dimension_numbers = #tpu.dot_dimension_numbers<[1], [0], [0], [1], [0, 0, 1, 1], [], []>} : vector<16x16xf32>, vector<16x32xf32>, vector<16x32xf32> -> vector<16x32xf32>
    %101 = arith.addf %29, %100 : vector<16x32xf32>
    %c1_58 = arith.constant 1 : index
    %c0_59 = arith.constant 0 : index
    %c0_60 = arith.constant 0 : index
    %102 = vector.load %arg6[%c1_58, %c0_59, %c0_60] : memref<2x32x16xf32, #tpu.memory_space<vmem>>, vector<1x32x16xf32>
    %103 = vector.shape_cast %102 : vector<1x32x16xf32> to vector<32x16xf32>
    %cst_61 = arith.constant dense<0.000000e+00> : vector<16x16xf32>
    %104 = tpu.matmul %24, %103, %cst_61 {dimension_numbers = #tpu.dot_dimension_numbers<[1], [0], [0], [1], [0, 0, 1, 1], [], []>} : vector<16x32xf32>, vector<32x16xf32>, vector<16x16xf32> -> vector<16x16xf32>
    %c1_62 = arith.constant 1 : index
    %c0_63 = arith.constant 0 : index
    %c0_64 = arith.constant 0 : index
    %105 = vector.load %arg7[%c1_62, %c0_63, %c0_64] : memref<2x1x16xf32, #tpu.memory_space<vmem>>, vector<1x1x16xf32>
    %106 = vector.shape_cast %105 : vector<1x1x16xf32> to vector<1x16xf32>
    %107 = vector.broadcast %106 : vector<1x16xf32> to vector<16x16xf32>
    %108 = arith.addf %104, %107 : vector<16x16xf32>
    %c1_65 = arith.constant 1 : index
    %c0_66 = arith.constant 0 : index
    %c0_67 = arith.constant 0 : index
    %109 = vector.load %arg8[%c1_65, %c0_66, %c0_67] : memref<2x32x16xf32, #tpu.memory_space<vmem>>, vector<1x32x16xf32>
    %110 = vector.shape_cast %109 : vector<1x32x16xf32> to vector<32x16xf32>
    %cst_68 = arith.constant dense<0.000000e+00> : vector<16x16xf32>
    %111 = tpu.matmul %25, %110, %cst_68 {dimension_numbers = #tpu.dot_dimension_numbers<[1], [0], [0], [1], [0, 0, 1, 1], [], []>} : vector<16x32xf32>, vector<32x16xf32>, vector<16x16xf32> -> vector<16x16xf32>
    %c1_69 = arith.constant 1 : index
    %c0_70 = arith.constant 0 : index
    %c0_71 = arith.constant 0 : index
    %112 = vector.load %arg9[%c1_69, %c0_70, %c0_71] : memref<2x1x16xf32, #tpu.memory_space<vmem>>, vector<1x1x16xf32>
    %113 = vector.shape_cast %112 : vector<1x1x16xf32> to vector<1x16xf32>
    %114 = vector.broadcast %113 : vector<1x16xf32> to vector<16x16xf32>
    %115 = arith.addf %111, %114 : vector<16x16xf32>
    %c1_72 = arith.constant 1 : index
    %c0_73 = arith.constant 0 : index
    %c0_74 = arith.constant 0 : index
    %116 = vector.load %arg10[%c1_72, %c0_73, %c0_74] : memref<2x32x16xf32, #tpu.memory_space<vmem>>, vector<1x32x16xf32>
    %117 = vector.shape_cast %116 : vector<1x32x16xf32> to vector<32x16xf32>
    %cst_75 = arith.constant dense<0.000000e+00> : vector<16x16xf32>
    %118 = tpu.matmul %25, %117, %cst_75 {dimension_numbers = #tpu.dot_dimension_numbers<[1], [0], [0], [1], [0, 0, 1, 1], [], []>} : vector<16x32xf32>, vector<32x16xf32>, vector<16x16xf32> -> vector<16x16xf32>
    %c1_76 = arith.constant 1 : index
    %c0_77 = arith.constant 0 : index
    %c0_78 = arith.constant 0 : index
    %119 = vector.load %arg11[%c1_76, %c0_77, %c0_78] : memref<2x1x16xf32, #tpu.memory_space<vmem>>, vector<1x1x16xf32>
    %120 = vector.shape_cast %119 : vector<1x1x16xf32> to vector<1x16xf32>
    %121 = vector.broadcast %120 : vector<1x16xf32> to vector<16x16xf32>
    %122 = arith.addf %118, %121 : vector<16x16xf32>
    %123 = vector.extract_strided_slice %108 {offsets = [0, 0], sizes = [8, 16], strides = [1, 1]} : vector<16x16xf32> to vector<8x16xf32>
    %124 = vector.extract_strided_slice %115 {offsets = [0, 0], sizes = [8, 16], strides = [1, 1]} : vector<16x16xf32> to vector<8x16xf32>
    %125 = vector.extract_strided_slice %122 {offsets = [0, 0], sizes = [8, 16], strides = [1, 1]} : vector<16x16xf32> to vector<8x16xf32>
    %cst_79 = arith.constant dense<0.000000e+00> : vector<8x8xf32>
    %126 = tpu.matmul %123, %124, %cst_79 {dimension_numbers = #tpu.dot_dimension_numbers<[1], [1], [0], [0], [0, 0, 1, 0], [], []>} : vector<8x16xf32>, vector<8x16xf32>, vector<8x8xf32> -> vector<8x8xf32>
    %cst_80 = arith.constant 2.500000e-01 : f32
    %127 = vector.broadcast %cst_80 : f32 to vector<8x8xf32>
    %128 = arith.mulf %126, %127 : vector<8x8xf32>
    %c0_81 = arith.constant 0 : index
    %c0_82 = arith.constant 0 : index
    %c0_83 = arith.constant 0 : index
    %129 = vector.load %arg3[%c0_81, %c0_82, %c0_83] : memref<2x8x8xf32, #tpu.memory_space<vmem>>, vector<1x8x8xf32>
    %130 = vector.shape_cast %129 : vector<1x8x8xf32> to vector<8x8xf32>
    %cst_84 = arith.constant 5.000000e-01 : f32
    %131 = vector.broadcast %cst_84 : f32 to vector<8x8xf32>
    %132 = arith.cmpf ogt, %130, %131 : vector<8x8xf32>
    %cst_85 = arith.constant -1.000000e+09 : f32
    %133 = vector.broadcast %cst_85 : f32 to vector<8x8xf32>
    %134 = arith.select %132, %133, %128 : vector<8x8xi1>, vector<8x8xf32>
    %cst_86 = arith.constant dense<0xFF800000> : vector<8xf32>
    %135 = vector.multi_reduction <maximumf>, %134, %cst_86 [1] : vector<8x8xf32> to vector<8xf32>
    %136 = vector.shape_cast %135 : vector<8xf32> to vector<8x1xf32>
    %137 = vector.broadcast %136 : vector<8x1xf32> to vector<8x8xf32>
    %138 = arith.subf %134, %137 : vector<8x8xf32>
    %139 = math.exp %138 : vector<8x8xf32>
    %cst_87 = arith.constant dense<0.000000e+00> : vector<8xf32>
    %140 = vector.multi_reduction <add>, %139, %cst_87 [1] : vector<8x8xf32> to vector<8xf32>
    %141 = vector.shape_cast %140 : vector<8xf32> to vector<8x1xf32>
    %142 = tpu.reciprocal %141 {approx = true} : vector<8x1xf32> -> vector<8x1xf32>
    %143 = vector.broadcast %142 : vector<8x1xf32> to vector<8x8xf32>
    %144 = arith.mulf %139, %143 : vector<8x8xf32>
    %cst_88 = arith.constant dense<0.000000e+00> : vector<8x16xf32>
    %145 = tpu.matmul %144, %125, %cst_88 {dimension_numbers = #tpu.dot_dimension_numbers<[1], [0], [0], [1], [0, 0, 1, 1], [], []>} : vector<8x8xf32>, vector<8x16xf32>, vector<8x16xf32> -> vector<8x16xf32>
    %146 = vector.extract_strided_slice %108 {offsets = [8, 0], sizes = [8, 16], strides = [1, 1]} : vector<16x16xf32> to vector<8x16xf32>
    %147 = vector.extract_strided_slice %115 {offsets = [8, 0], sizes = [8, 16], strides = [1, 1]} : vector<16x16xf32> to vector<8x16xf32>
    %148 = vector.extract_strided_slice %122 {offsets = [8, 0], sizes = [8, 16], strides = [1, 1]} : vector<16x16xf32> to vector<8x16xf32>
    %cst_89 = arith.constant dense<0.000000e+00> : vector<8x8xf32>
    %149 = tpu.matmul %146, %147, %cst_89 {dimension_numbers = #tpu.dot_dimension_numbers<[1], [1], [0], [0], [0, 0, 1, 0], [], []>} : vector<8x16xf32>, vector<8x16xf32>, vector<8x8xf32> -> vector<8x8xf32>
    %cst_90 = arith.constant 2.500000e-01 : f32
    %150 = vector.broadcast %cst_90 : f32 to vector<8x8xf32>
    %151 = arith.mulf %149, %150 : vector<8x8xf32>
    %c1_91 = arith.constant 1 : index
    %c0_92 = arith.constant 0 : index
    %c0_93 = arith.constant 0 : index
    %152 = vector.load %arg3[%c1_91, %c0_92, %c0_93] : memref<2x8x8xf32, #tpu.memory_space<vmem>>, vector<1x8x8xf32>
    %153 = vector.shape_cast %152 : vector<1x8x8xf32> to vector<8x8xf32>
    %cst_94 = arith.constant 5.000000e-01 : f32
    %154 = vector.broadcast %cst_94 : f32 to vector<8x8xf32>
    %155 = arith.cmpf ogt, %153, %154 : vector<8x8xf32>
    %cst_95 = arith.constant -1.000000e+09 : f32
    %156 = vector.broadcast %cst_95 : f32 to vector<8x8xf32>
    %157 = arith.select %155, %156, %151 : vector<8x8xi1>, vector<8x8xf32>
    %cst_96 = arith.constant dense<0xFF800000> : vector<8xf32>
    %158 = vector.multi_reduction <maximumf>, %157, %cst_96 [1] : vector<8x8xf32> to vector<8xf32>
    %159 = vector.shape_cast %158 : vector<8xf32> to vector<8x1xf32>
    %160 = vector.broadcast %159 : vector<8x1xf32> to vector<8x8xf32>
    %161 = arith.subf %157, %160 : vector<8x8xf32>
    %162 = math.exp %161 : vector<8x8xf32>
    %cst_97 = arith.constant dense<0.000000e+00> : vector<8xf32>
    %163 = vector.multi_reduction <add>, %162, %cst_97 [1] : vector<8x8xf32> to vector<8xf32>
    %164 = vector.shape_cast %163 : vector<8xf32> to vector<8x1xf32>
    %165 = tpu.reciprocal %164 {approx = true} : vector<8x1xf32> -> vector<8x1xf32>
    %166 = vector.broadcast %165 : vector<8x1xf32> to vector<8x8xf32>
    %167 = arith.mulf %162, %166 : vector<8x8xf32>
    %cst_98 = arith.constant dense<0.000000e+00> : vector<8x16xf32>
    %168 = tpu.matmul %167, %148, %cst_98 {dimension_numbers = #tpu.dot_dimension_numbers<[1], [0], [0], [1], [0, 0, 1, 1], [], []>} : vector<8x8xf32>, vector<8x16xf32>, vector<8x16xf32> -> vector<8x16xf32>
    %169 = tpu.concatenate %145, %168 in 0 : vector<8x16xf32>, vector<8x16xf32> -> vector<16x16xf32>
    %c1_99 = arith.constant 1 : index
    %c0_100 = arith.constant 0 : index
    %c0_101 = arith.constant 0 : index
    %170 = vector.load %arg12[%c1_99, %c0_100, %c0_101] : memref<2x16x32xf32, #tpu.memory_space<vmem>>, vector<1x16x32xf32>
    %171 = vector.shape_cast %170 : vector<1x16x32xf32> to vector<16x32xf32>
    %cst_102 = arith.constant dense<0.000000e+00> : vector<16x32xf32>
    %172 = tpu.matmul %169, %171, %cst_102 {dimension_numbers = #tpu.dot_dimension_numbers<[1], [0], [0], [1], [0, 0, 1, 1], [], []>} : vector<16x16xf32>, vector<16x32xf32>, vector<16x32xf32> -> vector<16x32xf32>
    %173 = arith.addf %101, %172 : vector<16x32xf32>
    %c0_103 = arith.constant 0 : index
    %c0_104 = arith.constant 0 : index
    %174 = vector.load %arg14[%c0_103, %c0_104] : memref<1x32xf32, #tpu.memory_space<vmem>>, vector<1x32xf32>
    %c0_105 = arith.constant 0 : index
    %c0_106 = arith.constant 0 : index
    %175 = vector.load %arg15[%c0_105, %c0_106] : memref<1x32xf32, #tpu.memory_space<vmem>>, vector<1x32xf32>
    %cst_107 = arith.constant dense<0.000000e+00> : vector<16xf32>
    %176 = vector.multi_reduction <add>, %173, %cst_107 [1] : vector<16x32xf32> to vector<16xf32>
    %177 = vector.shape_cast %176 : vector<16xf32> to vector<16x1xf32>
    %cst_108 = arith.constant 3.200000e+01 : f32
    %178 = vector.broadcast %cst_108 : f32 to vector<16x1xf32>
    %179 = arith.divf %177, %178 : vector<16x1xf32>
    %180 = vector.broadcast %179 : vector<16x1xf32> to vector<16x32xf32>
    %181 = arith.subf %173, %180 : vector<16x32xf32>
    %182 = arith.mulf %181, %181 : vector<16x32xf32>
    %cst_109 = arith.constant dense<0.000000e+00> : vector<16xf32>
    %183 = vector.multi_reduction <add>, %182, %cst_109 [1] : vector<16x32xf32> to vector<16xf32>
    %184 = vector.shape_cast %183 : vector<16xf32> to vector<16x1xf32>
    %cst_110 = arith.constant 3.200000e+01 : f32
    %185 = vector.broadcast %cst_110 : f32 to vector<16x1xf32>
    %186 = arith.divf %184, %185 : vector<16x1xf32>
    %187 = vector.broadcast %179 : vector<16x1xf32> to vector<16x32xf32>
    %188 = arith.subf %173, %187 : vector<16x32xf32>
    %cst_111 = arith.constant 9.99999996E-13 : f32
    %189 = vector.broadcast %cst_111 : f32 to vector<16x1xf32>
    %190 = arith.addf %186, %189 : vector<16x1xf32>
    %191 = math.rsqrt %190 : vector<16x1xf32>
    %192 = vector.broadcast %191 : vector<16x1xf32> to vector<16x32xf32>
    %193 = arith.mulf %188, %192 : vector<16x32xf32>
    %194 = vector.broadcast %174 : vector<1x32xf32> to vector<16x32xf32>
    %195 = arith.mulf %193, %194 : vector<16x32xf32>
    %196 = vector.broadcast %175 : vector<1x32xf32> to vector<16x32xf32>
    %197 = arith.addf %195, %196 : vector<16x32xf32>
    %c0_112 = arith.constant 0 : index
    %c0_113 = arith.constant 0 : index
    %198 = vector.load %arg16[%c0_112, %c0_113] : memref<32x64xf32, #tpu.memory_space<vmem>>, vector<32x64xf32>
    %cst_114 = arith.constant dense<0.000000e+00> : vector<16x64xf32>
    %199 = tpu.matmul %197, %198, %cst_114 {dimension_numbers = #tpu.dot_dimension_numbers<[1], [0], [0], [1], [0, 0, 1, 1], [], []>} : vector<16x32xf32>, vector<32x64xf32>, vector<16x64xf32> -> vector<16x64xf32>
    %c0_115 = arith.constant 0 : index
    %c0_116 = arith.constant 0 : index
    %200 = vector.load %arg17[%c0_115, %c0_116] : memref<1x64xf32, #tpu.memory_space<vmem>>, vector<1x64xf32>
    %201 = vector.broadcast %200 : vector<1x64xf32> to vector<16x64xf32>
    %202 = arith.addf %199, %201 : vector<16x64xf32>
    %cst_117 = arith.constant 0.000000e+00 : f32
    %203 = vector.broadcast %cst_117 : f32 to vector<16x64xf32>
    %204 = arith.maximumf %202, %203 : vector<16x64xf32>
    %c0_118 = arith.constant 0 : index
    %c0_119 = arith.constant 0 : index
    %205 = vector.load %arg18[%c0_118, %c0_119] : memref<64x32xf32, #tpu.memory_space<vmem>>, vector<64x32xf32>
    %cst_120 = arith.constant dense<0.000000e+00> : vector<16x32xf32>
    %206 = tpu.matmul %204, %205, %cst_120 {dimension_numbers = #tpu.dot_dimension_numbers<[1], [0], [0], [1], [0, 0, 1, 1], [], []>} : vector<16x64xf32>, vector<64x32xf32>, vector<16x32xf32> -> vector<16x32xf32>
    %c0_121 = arith.constant 0 : index
    %c0_122 = arith.constant 0 : index
    %207 = vector.load %arg19[%c0_121, %c0_122] : memref<1x32xf32, #tpu.memory_space<vmem>>, vector<1x32xf32>
    %208 = vector.broadcast %207 : vector<1x32xf32> to vector<16x32xf32>
    %209 = arith.addf %206, %208 : vector<16x32xf32>
    %c0_123 = arith.constant 0 : index
    %c0_124 = arith.constant 0 : index
    %210 = vector.load %arg20[%c0_123, %c0_124] : memref<1x32xf32, #tpu.memory_space<vmem>>, vector<1x32xf32>
    %c0_125 = arith.constant 0 : index
    %c0_126 = arith.constant 0 : index
    %211 = vector.load %arg21[%c0_125, %c0_126] : memref<1x32xf32, #tpu.memory_space<vmem>>, vector<1x32xf32>
    %cst_127 = arith.constant dense<0.000000e+00> : vector<16xf32>
    %212 = vector.multi_reduction <add>, %209, %cst_127 [1] : vector<16x32xf32> to vector<16xf32>
    %213 = vector.shape_cast %212 : vector<16xf32> to vector<16x1xf32>
    %cst_128 = arith.constant 3.200000e+01 : f32
    %214 = vector.broadcast %cst_128 : f32 to vector<16x1xf32>
    %215 = arith.divf %213, %214 : vector<16x1xf32>
    %216 = vector.broadcast %215 : vector<16x1xf32> to vector<16x32xf32>
    %217 = arith.subf %209, %216 : vector<16x32xf32>
    %218 = arith.mulf %217, %217 : vector<16x32xf32>
    %cst_129 = arith.constant dense<0.000000e+00> : vector<16xf32>
    %219 = vector.multi_reduction <add>, %218, %cst_129 [1] : vector<16x32xf32> to vector<16xf32>
    %220 = vector.shape_cast %219 : vector<16xf32> to vector<16x1xf32>
    %cst_130 = arith.constant 3.200000e+01 : f32
    %221 = vector.broadcast %cst_130 : f32 to vector<16x1xf32>
    %222 = arith.divf %220, %221 : vector<16x1xf32>
    %223 = vector.broadcast %215 : vector<16x1xf32> to vector<16x32xf32>
    %224 = arith.subf %209, %223 : vector<16x32xf32>
    %cst_131 = arith.constant 9.99999996E-13 : f32
    %225 = vector.broadcast %cst_131 : f32 to vector<16x1xf32>
    %226 = arith.addf %222, %225 : vector<16x1xf32>
    %227 = math.rsqrt %226 : vector<16x1xf32>
    %228 = vector.broadcast %227 : vector<16x1xf32> to vector<16x32xf32>
    %229 = arith.mulf %224, %228 : vector<16x32xf32>
    %230 = vector.broadcast %210 : vector<1x32xf32> to vector<16x32xf32>
    %231 = arith.mulf %229, %230 : vector<16x32xf32>
    %232 = vector.broadcast %211 : vector<1x32xf32> to vector<16x32xf32>
    %233 = arith.addf %231, %232 : vector<16x32xf32>
    %c0_132 = arith.constant 0 : index
    %c0_133 = arith.constant 0 : index
    %234 = vector.load %arg22[%c0_132, %c0_133] : memref<16x32xf32, #tpu.memory_space<vmem>>, vector<16x32xf32>
    tpu.vector_store %arg22[%c0_132, %c0_133], %233 {strides = array<i32>} : memref<16x32xf32, #tpu.memory_space<vmem>>, vector<16x32xf32>,
    return
  }
  func.func @transform_0(%arg0: i32) -> (i32, i32) {
    %c0_i32 = arith.constant 0 : i32
    %c0_i32_0 = arith.constant 0 : i32
    %c0_i32_1 = arith.constant 0 : i32
    return %c0_i32, %c0_i32_0 : i32, i32
  }
  func.func @transform_1(%arg0: i32) -> (i32, i32) {
    %c0_i32 = arith.constant 0 : i32
    %c0_i32_0 = arith.constant 0 : i32
    %c0_i32_1 = arith.constant 0 : i32
    return %c0_i32, %c0_i32_0 : i32, i32
  }
  func.func @transform_2(%arg0: i32) -> (i32, i32, i32) {
    %c0_i32 = arith.constant 0 : i32
    %c0_i32_0 = arith.constant 0 : i32
    %c0_i32_1 = arith.constant 0 : i32
    %c0_i32_2 = arith.constant 0 : i32
    return %c0_i32, %c0_i32_0, %c0_i32_1 : i32, i32, i32
  }
  func.func @transform_3(%arg0: i32) -> (i32, i32) {
    %c0_i32 = arith.constant 0 : i32
    %c0_i32_0 = arith.constant 0 : i32
    %c0_i32_1 = arith.constant 0 : i32
    return %c0_i32, %c0_i32_0 : i32, i32
  }
  func.func @transform_4(%arg0: i32) -> (i32, i32) {
    %c0_i32 = arith.constant 0 : i32
    %c0_i32_0 = arith.constant 0 : i32
    %c0_i32_1 = arith.constant 0 : i32
    return %c0_i32, %c0_i32_0 : i32, i32
  }
  func.func @transform_5(%arg0: i32) -> (i32, i32, i32) {
    %c0_i32 = arith.constant 0 : i32
    %c0_i32_0 = arith.constant 0 : i32
    %c0_i32_1 = arith.constant 0 : i32
    %c0_i32_2 = arith.constant 0 : i32
    return %c0_i32, %c0_i32_0, %c0_i32_1 : i32, i32, i32
  }
  func.func @transform_6(%arg0: i32) -> (i32, i32, i32) {
    %c0_i32 = arith.constant 0 : i32
    %c0_i32_0 = arith.constant 0 : i32
    %c0_i32_1 = arith.constant 0 : i32
    %c0_i32_2 = arith.constant 0 : i32
    return %c0_i32, %c0_i32_0, %c0_i32_1 : i32, i32, i32
  }
  func.func @transform_7(%arg0: i32) -> (i32, i32, i32) {
    %c0_i32 = arith.constant 0 : i32
    %c0_i32_0 = arith.constant 0 : i32
    %c0_i32_1 = arith.constant 0 : i32
    %c0_i32_2 = arith.constant 0 : i32
    return %c0_i32, %c0_i32_0, %c0_i32_1 : i32, i32, i32
  }
  func.func @transform_8(%arg0: i32) -> (i32, i32, i32) {
    %c0_i32 = arith.constant 0 : i32
    %c0_i32_0 = arith.constant 0 : i32
    %c0_i32_1 = arith.constant 0 : i32
    %c0_i32_2 = arith.constant 0 : i32
    return %c0_i32, %c0_i32_0, %c0_i32_1 : i32, i32, i32
  }
  func.func @transform_9(%arg0: i32) -> (i32, i32, i32) {
    %c0_i32 = arith.constant 0 : i32
    %c0_i32_0 = arith.constant 0 : i32
    %c0_i32_1 = arith.constant 0 : i32
    %c0_i32_2 = arith.constant 0 : i32
    return %c0_i32, %c0_i32_0, %c0_i32_1 : i32, i32, i32
  }
  func.func @transform_10(%arg0: i32) -> (i32, i32, i32) {
    %c0_i32 = arith.constant 0 : i32
    %c0_i32_0 = arith.constant 0 : i32
    %c0_i32_1 = arith.constant 0 : i32
    %c0_i32_2 = arith.constant 0 : i32
    return %c0_i32, %c0_i32_0, %c0_i32_1 : i32, i32, i32
  }
  func.func @transform_11(%arg0: i32) -> (i32, i32, i32) {
    %c0_i32 = arith.constant 0 : i32
    %c0_i32_0 = arith.constant 0 : i32
    %c0_i32_1 = arith.constant 0 : i32
    %c0_i32_2 = arith.constant 0 : i32
    return %c0_i32, %c0_i32_0, %c0_i32_1 : i32, i32, i32
  }
  func.func @transform_12(%arg0: i32) -> (i32, i32) {
    %c0_i32 = arith.constant 0 : i32
    %c0_i32_0 = arith.constant 0 : i32
    %c0_i32_1 = arith.constant 0 : i32
    return %c0_i32, %c0_i32_0 : i32, i32
  }
  func.func @transform_13(%arg0: i32) -> (i32, i32) {
    %c0_i32 = arith.constant 0 : i32
    %c0_i32_0 = arith.constant 0 : i32
    %c0_i32_1 = arith.constant 0 : i32
    return %c0_i32, %c0_i32_0 : i32, i32
  }
  func.func @transform_14(%arg0: i32) -> (i32, i32) {
    %c0_i32 = arith.constant 0 : i32
    %c0_i32_0 = arith.constant 0 : i32
    %c0_i32_1 = arith.constant 0 : i32
    return %c0_i32, %c0_i32_0 : i32, i32
  }
  func.func @transform_15(%arg0: i32) -> (i32, i32) {
    %c0_i32 = arith.constant 0 : i32
    %c0_i32_0 = arith.constant 0 : i32
    %c0_i32_1 = arith.constant 0 : i32
    return %c0_i32, %c0_i32_0 : i32, i32
  }
  func.func @transform_16(%arg0: i32) -> (i32, i32) {
    %c0_i32 = arith.constant 0 : i32
    %c0_i32_0 = arith.constant 0 : i32
    %c0_i32_1 = arith.constant 0 : i32
    return %c0_i32, %c0_i32_0 : i32, i32
  }
  func.func @transform_17(%arg0: i32) -> (i32, i32) {
    %c0_i32 = arith.constant 0 : i32
    %c0_i32_0 = arith.constant 0 : i32
    %c0_i32_1 = arith.constant 0 : i32
    return %c0_i32, %c0_i32_0 : i32, i32
  }
  func.func @transform_18(%arg0: i32) -> (i32, i32) {
    %c0_i32 = arith.constant 0 : i32
    %c0_i32_0 = arith.constant 0 : i32
    %c0_i32_1 = arith.constant 0 : i32
    return %c0_i32, %c0_i32_0 : i32, i32
  }
  func.func @transform_19(%arg0: i32) -> (i32, i32) {
    %c0_i32 = arith.constant 0 : i32
    %c0_i32_0 = arith.constant 0 : i32
    %c0_i32_1 = arith.constant 0 : i32
    return %c0_i32, %c0_i32_0 : i32, i32
  }
  func.func @transform_20(%arg0: i32) -> (i32, i32) {
    %c0_i32 = arith.constant 0 : i32
    %c0_i32_0 = arith.constant 0 : i32
    %c0_i32_1 = arith.constant 0 : i32
    return %c0_i32, %c0_i32_0 : i32, i32
  }
  func.func @transform_21(%arg0: i32) -> (i32, i32) {
    %c0_i32 = arith.constant 0 : i32
    %c0_i32_0 = arith.constant 0 : i32
    %c0_i32_1 = arith.constant 0 : i32
    return %c0_i32, %c0_i32_0 : i32, i32
  }
}

</mosaic_0001>

<bundles_post_ra>
// kernel: _lambda_.9
= control target key start
LH: loop header
LB: loop body
LE: loop exit
PB: predicated region body
PF: predicated region fallthrough
CT: control target
= control target key end

     0   :  { %s213_s0 = inlined_call_operand.vmem [shape: f32[16,32], index: 0, kind: input, shape index: {}]   ;;  %s214_s1 = inlined_call_operand.vmem [shape: f32[32,11], index: 1, kind: input, shape index: {}]   ;;  %s215_s2 = inlined_call_operand.vmem [shape: f32[1,11], index: 2, kind: input, shape index: {}]   ;;  %s216_s3 = inlined_call_operand.hbm [shape: f32[16,11], index: 3, kind: output, shape index: {}]  }
   0x1   :  { %v20_v0 = vld [vmem:[%s214_s1 + $0x18] sm:$0xff]  ;;  %v19_v1 = vld [vmem:[%s214_s1 + $0x10] sm:$0xff]  ;;  %v18_v2 = vld [vmem:[%s214_s1 + $0x8] sm:$0xff] }
   0x2   :  { %44 = vmatpush.msra.mxu0 %v20_v0  ;;  %118 = vmatpush.msra.mxu1 %v20_v0 }
   0x3   :  { %8 = vsyncpa [#allocation3], 0  ;;  %v17_v3 = vld [vmem:[%s214_s1] sm:$0xff]  ;;  %vm25_vm0 = vcmask 261120   ;;  %v16_v5 = vld [vmem:[%s213_s0 + $0x8] sm:$0xff]  ;;  %vm55_vm1 = vcmask 89088  }
   0x4   :  { %45 = vmatpush.msra.mxu0 %v19_v1  ;;  %119 = vmatpush.msra.mxu1 %v19_v1  ;;  %v15_v4 = vld [vmem:[%s213_s0] sm:$0xff]  ;;  %s160_s0 = smov [#allocation2]   ;;  %s104_s27 = sshll.u32 %s216_s3, 4  ;;  %s105_s27 = int_to_ptr.hbm [resolvable:$true] %s104_s27 }
   0x5   :  { %v125_v6 = vld [vmem:[%s215_s2] ss:$0 sm:$0xff]  ;;  %s102_s1 = sshll.u32 %s160_s0, 4  ;;  %s161_s28 = smov 128   ;;  %s103_s1 = int_to_ptr.vmem [resolvable:$true] %s102_s1 }
   0x6   :  { %46 = vmatpush.msra.mxu0 %v18_v2  ;;  %120 = vmatpush.msra.mxu1 %v18_v2  ;;  %s162_s29 = smov 8  }
   0x8   :  { %47 = vmatpush.msra.mxu0 %v17_v3  ;;  %121 = vmatpush.msra.mxu1 %v17_v3 }
   0x9   :  { %116 = vmatmul.msk.f32.vlgmr.msra.gmra.mxu0 %vm25_vm0, %v15_v4  ;;  %117 = vmatmul.msk.f32.vlgmr.msra.gmra.mxu1 %vm25_vm0, %v16_v5 }
  0x86   :  { %v49_v7 = vpop.f32.mrf.mxu0  ;;  %v52_v8 = vpop.f32.mrf.mxu1 }
  0x87   :  { %v50_v9 = vadd.f32 %v125_v6, %v49_v7  ;;  %v53_v10 = vadd.f32 %v125_v6, %v52_v8 }
  0x89   :  { %v56_v11 = vsel %vm55_vm1, %v50_v9, -inf  ;;  %v76_v12 = vsel %vm55_vm1, %v53_v10, -inf }
  0x8a   :  { %v57_v13 = vrot.slane %v56_v11, 4  ;;  %v77_v14 = vrot.slane %v76_v12, 4 }
  0x8c   :  { %v58_v15 = vmax.f32 %v56_v11, %v57_v13  ;;  %v78_v16 = vmax.f32 %v76_v12, %v77_v14 }
  0x8e   :  { %v59_v17 = vrot.slane %v58_v15, 2  ;;  %v79_v18 = vrot.slane %v78_v16, 2 }
  0x90   :  { %v60_v19 = vmax.f32 %v58_v15, %v59_v17  ;;  %v80_v20 = vmax.f32 %v78_v16, %v79_v18 }
  0x92   :  { %v61_v21 = vrot.slane %v60_v19, 1  ;;  %v81_v22 = vrot.slane %v80_v20, 1 }
  0x94   :  { %v62_v23 = vmax.f32 %v60_v19, %v61_v21  ;;  %v82_v24 = vmax.f32 %v80_v20, %v81_v22 }
  0x96   :  { %v63_v25 = vsub.f32 %v50_v9, %v62_v23  ;;  %v83_v26 = vsub.f32 %v53_v10, %v82_v24 }
  0x98   :  { %v64_v27 = vmul.f32 1.442695, %v63_v25  ;;  %v84_v28 = vmul.f32 1.442695, %v83_v26 }
  0x9a   :  { %126 = vpow2.f32 %v64_v27 }
  0x9b   :  { %128 = vpow2.f32 %v84_v28 }
  0xa0   :  { %v127_v29 = vpop.eup %126 }
  0xa1   :  { %v129_v30 = vpop.eup %128  ;;  %v66_v31 = vsel %vm55_vm1, %v127_v29, 0.0 }
  0xa2   :  { %v67_v32 = vrot.slane %v66_v31, 4  ;;  %v86_v33 = vsel %vm55_vm1, %v129_v30, 0.0 }
  0xa3   :  { %v87_v34 = vrot.slane %v86_v33, 4 }
  0xa4   :  { %v68_v35 = vadd.f32 %v67_v32, %v66_v31 }
  0xa5   :  { %v88_v36 = vadd.f32 %v87_v34, %v86_v33 }
  0xa6   :  { %v69_v37 = vrot.slane %v68_v35, 2 }
  0xa7   :  { %v89_v38 = vrot.slane %v88_v36, 2 }
  0xa8   :  { %v70_v39 = vadd.f32 %v69_v37, %v68_v35 }
  0xa9   :  { %v90_v40 = vadd.f32 %v89_v38, %v88_v36 }
  0xaa   :  { %v71_v41 = vrot.slane %v70_v39, 1 }
  0xab   :  { %v91_v42 = vrot.slane %v90_v40, 1 }
  0xac   :  { %v72_v43 = vadd.f32 %v71_v41, %v70_v39 }
  0xad   :  { %v92_v44 = vadd.f32 %v91_v42, %v90_v40 }
  0xae   :  { %130 = vlog2.f32 %v72_v43 }
  0xaf   :  { %132 = vlog2.f32 %v92_v44 }
  0xb4   :  { %v131_v45 = vpop.eup %130 }
  0xb5   :  { %v133_v46 = vpop.eup %132  ;;  %v74_v47 = vmul.f32 0.6931472, %v131_v45 }
  0xb6   :  { %v94_v48 = vmul.f32 0.6931472, %v133_v46 }
  0xb7   :  { %v75_v49 = vsub.f32 %v63_v25, %v74_v47 }
  0xb8   :  { %v95_v50 = vsub.f32 %v83_v26, %v94_v48 }
  0xb9   :  { %96 = vst.msk [vmem:[#allocation2] sm:$0xff] %vm55_vm1, %v75_v49 }
  0xba   :  { %97 = vst.msk [vmem:[#allocation2 + $0x8] sm:$0xff] %vm55_vm1, %v95_v50 }
  0xbb   :  { %110 = dma.vmem_to_hbm [thread:$0]  %s103_s1, 256, %s105_s27, [#allocation3], %s161_s28, %s161_s28, %s162_s29  }
  0xbc   :  { %158 = dma.done.wait [#allocation3], 256  }
  0xbd   :  { %159 = vsyncadd [#allocation3], 4294967040 }
  0xbe   :  { %115 = vsyncpa [#allocation3], 1 }

// kernel: _lambda_.5
= control target key start
LH: loop header
LB: loop body
LE: loop exit
PB: predicated region body
PF: predicated region fallthrough
CT: control target
= control target key end

     0   :  { %vm74_vm0 = vcmask 261120   ;;  %vm166_vm1 = vcmask 130048   ;;  %vm197_vm3 = vcmask 64512   ;;  %vm703_vm12 = vcmask 523264   ;;  %s1255_s4 = inlined_call_operand.vmem [shape: f32[2,32,16], index: 4, kind: input, shape index: {}]   ;;  %s1256_s2 = inlined_call_operand.vmem [shape: f32[2,32,16], index: 2, kind: input, shape index: {}]   ;;  %s1257_s0 = inlined_call_operand.vmem [shape: f32[16,32], index: 0, kind: input, shape index: {}]   ;;  %s1258_s5 = inlined_call_operand.vmem [shape: f32[2,1,16], index: 5, kind: input, shape index: {}]   ;;  %s1259_s3 = inlined_call_operand.vmem [shape: f32[2,1,16], index: 3, kind: input, shape index: {}]   ;;  %s1260_s6 = inlined_call_operand.vmem [shape: f32[2,32,16], index: 6, kind: input, shape index: {}]   ;;  %s1261_s1 = inlined_call_operand.vmem [shape: f32[2,8,8], index: 1, kind: input, shape index: {}]   ;;  %s1262_s7 = inlined_call_operand.vmem [shape: f32[2,1,16], index: 7, kind: input, shape index: {}]   ;;  %s1263_s8 = inlined_call_operand.vmem [shape: f32[2,16,32], index: 8, kind: input, shape index: {}]   ;;  %s1264_s9 = inlined_call_operand.vmem [shape: f32[1,32], index: 9, kind: input, shape index: {}]   ;;  %s1265_s10 = inlined_call_operand.vmem [shape: f32[1,32], index: 10, kind: input, shape index: {}]   ;;  %s1266_s11 = inlined_call_operand.vmem [shape: f32[1,32], index: 11, kind: input, shape index: {}]   ;;  %s1267_s13 = inlined_call_operand.vmem [shape: f32[1,64], index: 13, kind: input, shape index: {}]   ;;  %s1268_s12 = inlined_call_operand.vmem [shape: f32[32,64], index: 12, kind: input, shape index: {}]   ;;  %s1269_s14 = inlined_call_operand.vmem [shape: f32[64,32], index: 14, kind: input, shape index: {}]   ;;  %s1270_s15 = inlined_call_operand.vmem [shape: f32[1,32], index: 15, kind: input, shape index: {}]   ;;  %s1271_s16 = inlined_call_operand.vmem [shape: f32[1,32], index: 16, kind: input, shape index: {}]   ;;  %s1272_s17 = inlined_call_operand.vmem [shape: f32[1,32], index: 17, kind: input, shape index: {}]   ;;  %s1273_s18 = inlined_call_operand.vmem [shape: f32[16,32], index: 18, kind: output, shape index: {}]  }
   0x1   :  { %1277 = sst [smem:[#allocation2_spill]] %s1255_s4  ;;  %v848_v9 = vld [vmem:[%s1258_s5] ss:$0 sm:$0xff]  ;;  %v138_v15 = vld [vmem:[%s1260_s6 + $0x18] sm:$0xff]  ;;  %v137_v16 = vld [vmem:[%s1260_s6 + $0x10] sm:$0xff] }
   0x2   :  { %1278 = sst [smem:[#allocation3_spill]] %s1256_s2  ;;  %v849_v10 = vld [vmem:[%s1259_s3] ss:$0 sm:$0xff]  ;;  %155 = vmatpush.msra.mxu2 %v138_v15  ;;  %v136_v17 = vld [vmem:[%s1260_s6 + $0x8] sm:$0xff]  ;;  %v829_v63 = vld [vmem:[%s1260_s6 + $0x38] sm:$0xff] }
   0x3   :  { %1279 = sst [smem:[#allocation4_spill]] %s1257_s0  ;;  %v135_v18 = vld [vmem:[%s1260_s6] sm:$0xff]  ;;  %v298_v35 = vld [vmem:[%s1263_s8 + $0x8] sm:$0xff] }
   0x4   :  { %s1280_s29 = sld [smem:[#allocation2_spill]]  ;;  %156 = vmatpush.msra.mxu2 %v137_v16  ;;  %v1041_v19 = vld [vmem:[%s1261_s1] sm:$0xff]  ;;  %v1075_v43 = vld [vmem:[%s1261_s1 + $0x8] sm:$0xff] }
   0x5   :  { %s1281_s20 = sld [smem:[#allocation3_spill]]  ;;  %vm195_vm2 = vcmp.gt.f32.partialorder %v1041_v19, 0.5  ;;  %v850_v25 = vld [vmem:[%s1262_s7] ss:$0 sm:$0xff]  ;;  %vm261_vm4 = vcmp.gt.f32.partialorder %v1075_v43, 0.5  ;;  %v840_v43 = vld [vmem:[%s1263_s8 + $0x18] sm:$0xff] }
   0x6   :  { %s1282_s2 = sld [smem:[#allocation4_spill]]  ;;  %157 = vmatpush.msra.mxu2 %v136_v17  ;;  %v297_v41 = vld [vmem:[%s1263_s8] sm:$0xff] }
   0x8   :  { %158 = vmatpush.msra.mxu2 %v135_v18 }
   0xa   :  { %v107_v0 = vld [vmem:[%s1280_s29 + $0x18] sm:$0xff]  ;;  %v106_v1 = vld [vmem:[%s1280_s29 + $0x10] sm:$0xff]  ;;  %v105_v4 = vld [vmem:[%s1280_s29 + $0x8] sm:$0xff] }
   0xb   :  { %v69_v2 = vld [vmem:[%s1281_s20 + $0x18] sm:$0xff]  ;;  %124 = vmatpush.msra.mxu1 %v107_v0  ;;  %v68_v3 = vld [vmem:[%s1281_s20 + $0x10] sm:$0xff]  ;;  %v67_v5 = vld [vmem:[%s1281_s20 + $0x8] sm:$0xff] }
   0xc   :  { %93 = vmatpush.msra.mxu0 %v69_v2  ;;  %v104_v6 = vld [vmem:[%s1280_s29] sm:$0xff]  ;;  %v1050_v24 = vld [vmem:[%s1282_s2 + $0x8] sm:$0xff]  ;;  %v822_v48 = vld [vmem:[%s1280_s29 + $0x38] sm:$0xff] }
   0xd   :  { %125 = vmatpush.msra.mxu1 %v106_v1  ;;  %v66_v7 = vld [vmem:[%s1281_s20] sm:$0xff]  ;;  %v821_v49 = vld [vmem:[%s1280_s29 + $0x30] sm:$0xff]  ;;  %v815_v52 = vld [vmem:[%s1281_s20 + $0x38] sm:$0xff] }
   0xe   :  { %94 = vmatpush.msra.mxu0 %v68_v3  ;;  %v1010_v8 = vld [vmem:[%s1282_s2] sm:$0xff]  ;;  %v814_v53 = vld [vmem:[%s1281_s20 + $0x30] sm:$0xff]  ;;  %v820_v54 = vld [vmem:[%s1280_s29 + $0x28] sm:$0xff]  ;;  %352 = vmatpush.msrb.mxu2 %v815_v52 }
   0xf   :  { %126 = vmatpush.msra.mxu1 %v105_v4  ;;  %801 = vmatmul.msk.f32.vlgmr.msra.gmra.mxu2 %vm74_vm0, %v1010_v8  ;;  %v819_v55 = vld [vmem:[%s1280_s29 + $0x20] sm:$0xff]  ;;  %v813_v61 = vld [vmem:[%s1281_s20 + $0x28] sm:$0xff]  ;;  %v828_v0 = vld [vmem:[%s1260_s6 + $0x30] sm:$0xff] }
  0x10   :  { %95 = vmatpush.msra.mxu0 %v67_v5  ;;  %353 = vmatpush.msrb.mxu2 %v814_v53  ;;  %v812_v62 = vld [vmem:[%s1281_s20 + $0x20] sm:$0xff]  ;;  %v827_v1 = vld [vmem:[%s1260_s6 + $0x28] sm:$0xff] }
  0x11   :  { %127 = vmatpush.msra.mxu1 %v104_v6  ;;  %v852_v2 = vld [vmem:[%s1258_s5 + $0x1] ss:$0 sm:$0xff] }
  0x12   :  { %96 = vmatpush.msra.mxu0 %v66_v7  ;;  %799 = vmatmul.msk.f32.vlgmr.msra.gmra.mxu1 %vm74_vm0, %v1010_v8 }
  0x13   :  { %797 = vmatmul.msk.f32.vlgmr.msra.gmra.mxu0 %vm74_vm0, %v1010_v8  ;;  %319 = vmatpush.msrb.mxu1 %v298_v35 }
  0x14   :  { %354 = vmatpush.msrb.mxu2 %v813_v61 }
  0x15   :  { %320 = vmatpush.msrb.mxu1 %v297_v41 }
  0x16   :  { %355 = vmatpush.msrb.mxu2 %v812_v62 }
  0x17   :  { %802 = vmatmul.msk.f32.gmra.mxu2 %vm74_vm0, %v1050_v24 }
  0x1a   :  { %800 = vmatmul.msk.f32.gmra.mxu1 %vm74_vm0, %v1050_v24 }
  0x1b   :  { %798 = vmatmul.msk.f32.gmra.mxu0 %vm74_vm0, %v1050_v24 }
  0x1f   :  { %817 = vmatmul.msk.f32.vlgmr.msrb.gmra.mxu2 %vm74_vm0, %v1010_v8 }
  0x27   :  { %818 = vmatmul.msk.f32.gmra.mxu2 %vm74_vm0, %v1050_v24 }
  0x8f   :  { %v129_v11 = vpop.f32.mrf.mxu1 }
  0x90   :  { %v98_v12 = vpop.f32.mrf.mxu0  ;;  %v130_v13 = vadd.f32 %v848_v9, %v129_v11 }
  0x91   :  { %v99_v14 = vadd.f32 %v849_v10, %v98_v12 }
  0x92   :  { %803 = vmatpush.xpose.msk.msra.mxu3 %vm166_vm1, %v130_v13  ;;  %v160_v26 = vpop.f32.mrf.mxu2 }
  0x93   :  { %v161_v27 = vadd.f32 %v850_v25, %v160_v26 }
  0x95   :  { %804 = vmatmul.msk.f32.vlgmr.msra.gmra.mxu3 %vm166_vm1, %v99_v14  ;;  %v853_v14 = vld [vmem:[%s1259_s3 + $0x1] ss:$0 sm:$0xff] }
  0x96   :  { %227 = vmatpush.msrb.mxu3 %v161_v27 }
  0x97   :  { %v132_v33 = vpop.f32.mrf.mxu1 }
  0x98   :  { %v133_v34 = vadd.f32 %v848_v9, %v132_v33  ;;  %v101_v39 = vpop.f32.mrf.mxu0  ;;  %v826_v9 = vld [vmem:[%s1260_s6 + $0x20] sm:$0xff] }
  0x99   :  { %v102_v40 = vadd.f32 %v849_v10, %v101_v39 }
  0x9a   :  { %806 = vmatpush.xpose.msk.msra.mxu3 %vm166_vm1, %v133_v34  ;;  %v163_v50 = vpop.f32.mrf.mxu2 }
  0x9b   :  { %v164_v51 = vadd.f32 %v850_v25, %v163_v50 }
  0x9d   :  { %292 = vmatpush.msrb.mxu0 %v164_v51 }
  0x9f   :  { %418 = vmatpush.msra.mxu0 %v829_v63 }
  0xa1   :  { %419 = vmatpush.msra.mxu0 %v828_v0 }
  0xa2   :  { %v357_v11 = vpop.f32.mrf.mxu2 }
  0xa3   :  { %420 = vmatpush.msra.mxu0 %v827_v1  ;;  %v358_v17 = vadd.f32 %v853_v14, %v357_v11  ;;  %v887_v1 = vmov 32.0  }
  0xa5   :  { %421 = vmatpush.msra.mxu0 %v826_v9 }
  0xaa   :  { %v360_v13 = vpop.f32.mrf.mxu2 }
  0xab   :  { %v361_v15 = vadd.f32 %v853_v14, %v360_v13 }
 0x118   :  { %v190_v20 = vpop.f32.mrf.mxu3 }
 0x119   :  { %v193_v21 = vmul.f32 0.25, %v190_v20  ;;  %v854_v20 = vld [vmem:[%s1262_s7 + $0x1] ss:$0 sm:$0xff] }
 0x11b   :  { %v196_v22 = vsel %vm195_vm2, -1e+09, %v193_v21 }
 0x11c   :  { %v198_v23 = vsel %vm197_vm3, %v196_v22, -inf }
 0x11d   :  { %199 = vmax.xlane.f32.xlu0 %v198_v23 }
 0x190   :  { %v200_v28 = vpop.xlane.xlu0 %199 }
 0x191   :  { %v201_v29 = vsub.f32 %v196_v22, %v200_v28 }
 0x193   :  { %v202_v30 = vmul.f32 1.442695, %v201_v29 }
 0x195   :  { %861 = vpow2.f32 %v202_v30 }
 0x19b   :  { %v862_v31 = vpop.eup %861 }
 0x19c   :  { %v204_v32 = vsel %vm197_vm3, %v862_v31, 0.0 }
 0x19d   :  { %205 = vadd.xlane.f32.xlu0 %v204_v32 }
 0x210   :  { %v206_v36 = vpop.xlane.xlu0 %205 }
 0x211   :  { %863 = vrcp.f32 %v206_v36 }
 0x217   :  { %v864_v37 = vpop.eup %863 }
 0x218   :  { %v208_v38 = vmul.f32 %v864_v37, %v862_v31 }
 0x21a   :  { %805 = vmatmul.msk.f32.vlgmr.msrb.gmra.mxu3 %vm197_vm3, %v208_v38 }
 0x21b   :  { %385 = vmatpush.msrb.mxu3 %v822_v48 }
 0x21d   :  { %386 = vmatpush.msrb.mxu3 %v821_v49 }
 0x21f   :  { %387 = vmatpush.msrb.mxu3 %v820_v54  ;;  %v851_v54 = vld [vmem:[%s1264_s9] ss:$0 sm:$0xff] }
 0x221   :  { %388 = vmatpush.msrb.mxu3 %v819_v55 }
 0x222   :  { %807 = vmatmul.msk.f32.vlgmr.msra.gmra.mxu3 %vm166_vm1, %v102_v40 }
 0x22a   :  { %824 = vmatmul.msk.f32.vlgmr.msrb.gmra.mxu3 %vm74_vm0, %v1010_v8 }
 0x232   :  { %825 = vmatmul.msk.f32.gmra.mxu3 %vm74_vm0, %v1050_v24 }
 0x29d   :  { %v229_v42 = vpop.f32.mrf.mxu3 }
 0x29e   :  { %810 = vmatmul.msk.f32.vlgmr.msrb.gmra.mxu1 %vm166_vm1, %v229_v42 }
 0x2a5   :  { %v255_v44 = vpop.f32.mrf.mxu3 }
 0x2a6   :  { %v258_v45 = vmul.f32 0.25, %v255_v44 }
 0x2a8   :  { %v262_v46 = vsel %vm261_vm4, -1e+09, %v258_v45  ;;  %v839_v45 = vld [vmem:[%s1263_s8 + $0x10] sm:$0xff] }
 0x2a9   :  { %v263_v47 = vsel %vm197_vm3, %v262_v46, -inf }
 0x2aa   :  { %264 = vmax.xlane.f32.xlu1 %v263_v47 }
 0x2ad   :  { %v390_v3 = vpop.f32.mrf.mxu3 }
 0x2ae   :  { %v391_v4 = vadd.f32 %v852_v2, %v390_v3 }
 0x2b0   :  { %833 = vmatpush.xpose.msk.msra.mxu1 %vm166_vm1, %v391_v4 }
 0x2b4   :  { %576 = vmatpush.msrb.mxu1 %v840_v43 }
 0x2b5   :  { %v393_v10 = vpop.f32.mrf.mxu3 }
 0x2b6   :  { %v394_v12 = vadd.f32 %v852_v2, %v393_v10  ;;  %577 = vmatpush.msrb.mxu1 %v839_v45 }
 0x31b   :  { %v322_v25 = vpop.f32.mrf.mxu1 }
 0x31c   :  { %v328_v55 = vadd.f32 %v851_v54, %v322_v25 }
 0x31d   :  { %v265_v56 = vpop.xlane.xlu1 %264 }
 0x31e   :  { %v266_v57 = vsub.f32 %v262_v46, %v265_v56 }
 0x320   :  { %v267_v58 = vmul.f32 1.442695, %v266_v57 }
 0x322   :  { %865 = vpow2.f32 %v267_v58 }
 0x328   :  { %v866_v59 = vpop.eup %865 }
 0x329   :  { %v269_v60 = vsel %vm197_vm3, %v866_v59, 0.0 }
 0x32a   :  { %270 = vadd.xlane.f32.xlu1 %v269_v60 }
 0x39d   :  { %v271_v5 = vpop.xlane.xlu1 %270 }
 0x39e   :  { %867 = vrcp.f32 %v271_v5 }
 0x3a4   :  { %v868_v6 = vpop.eup %867 }
 0x3a5   :  { %v273_v7 = vmul.f32 %v868_v6, %v866_v59 }
 0x3a7   :  { %809 = vmatmul.msk.f32.vlgmr.msrb.gmra.mxu0 %vm197_vm3, %v273_v7 }
 0x3a8   :  { %836 = vmatpush.xpose.msk.msrb.mxu0 %vm166_vm1, %v394_v12 }
 0x3af   :  { %831 = vmatmul.msk.f32.vlgmr.msra.gmra.mxu0 %vm74_vm0, %v1010_v8 }
 0x3b7   :  { %832 = vmatmul.msk.f32.gmra.mxu0 %vm74_vm0, %v1050_v24 }
 0x3bf   :  { %837 = vmatmul.msk.f32.vlgmr.msrb.gmra.mxu0 %vm166_vm1, %v361_v15 }
 0x424   :  { %v294_v16 = vpop.f32.mrf.mxu0 }
 0x425   :  { %811 = vmatmul.msk.f32.gmra.mxu1 %vm166_vm1, %v294_v16 }
 0x42c   :  { %v423_v18 = vpop.f32.mrf.mxu0 }
 0x42d   :  { %834 = vmatmul.msk.f32.vlgmr.msra.gmra.mxu1 %vm166_vm1, %v358_v17  ;;  %v424_v21 = vadd.f32 %v854_v20, %v423_v18  ;;  %v655_v17 = vld [vmem:[%s1268_s12 + $0x18] sm:$0xff]  ;;  %v654_v18 = vld [vmem:[%s1268_s12 + $0x10] sm:$0xff] }
 0x42f   :  { %486 = vmatpush.msra.mxu2 %v424_v21  ;;  %v652_v21 = vld [vmem:[%s1268_s12] sm:$0xff] }
 0x431   :  { %678 = vmatpush.msrb.mxu2 %v655_v17 }
 0x433   :  { %679 = vmatpush.msrb.mxu2 %v654_v18 }
 0x434   :  { %v426_v22 = vpop.f32.mrf.mxu0 }
 0x435   :  { %v427_v23 = vadd.f32 %v854_v20, %v426_v22  ;;  %v653_v20 = vld [vmem:[%s1268_s12 + $0x8] sm:$0xff] }
 0x436   :  { %680 = vmatpush.msrb.mxu2 %v653_v20 }
 0x437   :  { %548 = vmatpush.msra.mxu0 %v427_v23 }
 0x438   :  { %681 = vmatpush.msrb.mxu2 %v652_v21 }
 0x43c   :  { %v514_v28 = vpop.f32.mrf.mxu0 }
 0x43d   :  { %v517_v31 = vmul.f32 0.25, %v514_v28  ;;  %v696_v28 = vld [vmem:[%s1269_s14 + $0x28] sm:$0xff] }
 0x43f   :  { %v518_v33 = vsel %vm261_vm4, -1e+09, %v517_v31  ;;  %v695_v31 = vld [vmem:[%s1269_s14 + $0x20] sm:$0xff] }
 0x440   :  { %v519_v34 = vsel %vm197_vm3, %v518_v33, -inf }
 0x4a2   :  { %v325_v26 = vpop.f32.mrf.mxu1 }
 0x4a3   :  { %v329_v60 = vadd.f32 %v851_v54, %v325_v26  ;;  %v698_v26 = vld [vmem:[%s1269_s14 + $0x38] sm:$0xff] }
 0x4a4   :  { %718 = vmatpush.msra.mxu3 %v698_v26 }
 0x4aa   :  { %v452_v27 = vpop.f32.mrf.mxu1 }
 0x4ab   :  { %v455_v29 = vmul.f32 0.25, %v452_v27  ;;  %v697_v27 = vld [vmem:[%s1269_s14 + $0x30] sm:$0xff] }
 0x4ac   :  { %719 = vmatpush.msra.mxu3 %v697_v27 }
 0x4ad   :  { %v456_v30 = vsel %vm195_vm2, -1e+09, %v455_v29 }
 0x4ae   :  { %v457_v32 = vsel %vm197_vm3, %v456_v30, -inf  ;;  %720 = vmatpush.msra.mxu3 %v696_v28 }
 0x4af   :  { %458 = vmax.xlane.f32.xlu2 %v457_v32 }
 0x4b0   :  { %721 = vmatpush.msra.mxu3 %v695_v31 }
 0x4b7   :  { %520 = vmax.xlane.f32.xlu2 %v519_v34  ;;  %v694_v34 = vld [vmem:[%s1269_s14 + $0x18] sm:$0xff] }
 0x4b8   :  { %722 = vmatpush.msra.mxu3 %v694_v34 }
 0x522   :  { %v459_v35 = vpop.xlane.xlu2 %458 }
 0x523   :  { %v460_v36 = vsub.f32 %v456_v30, %v459_v35 }
 0x525   :  { %v461_v37 = vmul.f32 1.442695, %v460_v36  ;;  %v693_v36 = vld [vmem:[%s1269_s14 + $0x10] sm:$0xff] }
 0x526   :  { %723 = vmatpush.msra.mxu3 %v693_v36  ;;  %v859_v36 = vld [vmem:[%s1271_s16] ss:$0 sm:$0xff] }
 0x527   :  { %869 = vpow2.f32 %v461_v37 }
 0x52a   :  { %v521_v38 = vpop.xlane.xlu2 %520 }
 0x52b   :  { %v522_v39 = vsub.f32 %v518_v33, %v521_v38 }
 0x52d   :  { %v870_v40 = vpop.eup %869  ;;  %v523_v41 = vmul.f32 1.442695, %v522_v39 }
 0x52e   :  { %v463_v19 = vsel %vm197_vm3, %v870_v40, 0.0 }
 0x52f   :  { %871 = vpow2.f32 %v523_v41  ;;  %464 = vadd.xlane.f32.xlu0 %v463_v19 }
 0x535   :  { %v872_v42 = vpop.eup %871 }
 0x536   :  { %v525_v44 = vsel %vm197_vm3, %v872_v42, 0.0 }
 0x537   :  { %526 = vadd.xlane.f32.xlu1 %v525_v44 }
 0x5a2   :  { %v465_v46 = vpop.xlane.xlu0 %464 }
 0x5a3   :  { %873 = vrcp.f32 %v465_v46  ;;  %v856_v46 = vld [vmem:[%s1266_s11] ss:$0 sm:$0xff] }
 0x5a9   :  { %v874_v47 = vpop.eup %873 }
 0x5aa   :  { %v467_v48 = vmul.f32 %v874_v47, %v870_v40  ;;  %v527_v49 = vpop.xlane.xlu1 %526 }
 0x5ab   :  { %875 = vrcp.f32 %v527_v49 }
 0x5ac   :  { %835 = vmatmul.msk.f32.vlgmr.msra.gmra.mxu2 %vm197_vm3, %v467_v48  ;;  %877 = vrcp.f32 %v887_v1  ;;  %v858_v1 = vld [vmem:[%s1270_s15] ss:$0 sm:$0xff] }
 0x5b1   :  { %v876_v50 = vpop.eup %875 }
 0x5b2   :  { %v529_v51 = vmul.f32 %v876_v50, %v872_v42  ;;  %v878_v2 = vpop.eup %877  ;;  %v855_v42 = vld [vmem:[%s1265_s10] ss:$0 sm:$0xff] }
 0x5b3   :  { %v598_v3 = vmul.f32 32.0, %v878_v2  ;;  %vm602_vm5 = vweird.f32 %v878_v2 }
 0x5b4   :  { %838 = vmatmul.msk.f32.vlgmr.msra.gmra.mxu0 %vm197_vm3, %v529_v51 }
 0x5b5   :  { %v599_v4 = vsub.f32 1.0, %v598_v3 }
 0x5b7   :  { %v600_v5 = vmul.f32 %v878_v2, %v599_v4 }
 0x5b9   :  { %v601_v6 = vadd.f32 %v878_v2, %v600_v5 }
 0x62f   :  { %v488_v52 = vpop.f32.mrf.mxu2 }
 0x630   :  { %841 = vmatmul.msk.f32.vlgmr.msrb.gmra.mxu1 %vm166_vm1, %v488_v52 }
 0x631   :  { %v550_v53 = vpop.f32.mrf.mxu0 }
 0x638   :  { %842 = vmatmul.msk.f32.gmra.mxu1 %vm166_vm1, %v550_v53 }
 0x6ad   :  { %v579_v56 = vpop.f32.mrf.mxu1 }
 0x6ae   :  { %v585_v57 = vadd.f32 %v579_v56, %v328_v55  ;;  %v692_v56 = vld [vmem:[%s1269_s14 + $0x8] sm:$0xff] }
 0x6af   :  { %724 = vmatpush.msra.mxu3 %v692_v56 }
 0x6b0   :  { %v587_v58 = vadd.f32 %v585_v57, %v1010_v8  ;;  %v1170_v8 = vsel %vm602_vm5, %v878_v2, %v601_v6  ;;  %v691_v57 = vld [vmem:[%s1269_s14] sm:$0xff] }
 0x6b1   :  { %725 = vmatpush.msra.mxu3 %v691_v57 }
 0x6b2   :  { %v591_v59 = vsel %vm74_vm0, %v587_v58, 0.0 }
 0x6b3   :  { %592 = vadd.xlane.f32.xlu2 %v591_v59 }
 0x6b5   :  { %v582_v61 = vpop.f32.mrf.mxu1 }
 0x6b6   :  { %v586_v62 = vadd.f32 %v582_v61, %v329_v60 }
 0x6b8   :  { %v588_v63 = vadd.f32 %v586_v62, %v1050_v24 }
 0x6ba   :  { %v594_v0 = vsel %vm74_vm0, %v588_v63, 0.0 }
 0x6bb   :  { %595 = vadd.xlane.f32.xlu0 %v594_v0 }
 0x726   :  { %v593_v7 = vpop.xlane.xlu2 %592 }
 0x727   :  { %v604_v9 = vmul.f32 %v1170_v8, %v593_v7 }
 0x729   :  { %v606_v10 = vsub.f32 %v587_v58, %v604_v9  ;;  %v857_v58 = vld [vmem:[%s1267_s13] ss:$0 sm:$0xff] }
 0x72b   :  { %v608_v11 = vmul.f32 %v606_v10, %v606_v10 }
 0x72d   :  { %v610_v24 = vsel %vm74_vm0, %v608_v11, 0.0 }
 0x72e   :  { %611 = vadd.xlane.f32.xlu1 %v610_v24  ;;  %v596_v12 = vpop.xlane.xlu0 %595 }
 0x72f   :  { %v605_v13 = vmul.f32 %v1170_v8, %v596_v12 }
 0x731   :  { %v1175_v14 = vsub.f32 %v588_v63, %v605_v13 }
 0x733   :  { %v609_v15 = vmul.f32 %v1175_v14, %v1175_v14 }
 0x735   :  { %v613_v16 = vsel %vm74_vm0, %v609_v15, 0.0 }
 0x736   :  { %614 = vadd.xlane.f32.xlu2 %v613_v16 }
 0x7a1   :  { %v612_v22 = vpop.xlane.xlu1 %611 }
 0x7a2   :  { %v616_v23 = vmul.f32 %v612_v22, %v1170_v8 }
 0x7a4   :  { %v618_v25 = vadd.f32 1e-12, %v616_v23 }
 0x7a6   :  { %879 = vrsqrt.f32 %v618_v25  ;;  %vm626_vm7 = vweird.f32 %v618_v25 }
 0x7a9   :  { %v615_v29 = vpop.xlane.xlu2 %614 }
 0x7aa   :  { %v617_v30 = vmul.f32 %v615_v29, %v1170_v8 }
 0x7ac   :  { %v880_v32 = vpop.eup %879  ;;  %v619_v33 = vadd.f32 1e-12, %v617_v30 }
 0x7ad   :  { %v621_v35 = vmul.f32 %v880_v32, %v618_v25  ;;  %vm627_vm6 = vweird.f32 %v880_v32 }
 0x7ae   :  { %881 = vrsqrt.f32 %v619_v33  ;;  %vm628_vm8 = vmor %vm626_vm7, %vm627_vm6  ;;  %vm636_vm10 = vweird.f32 %v619_v33 }
 0x7af   :  { %v622_v37 = vmul.f32 %v880_v32, %v621_v35 }
 0x7b1   :  { %v623_v38 = vmul.f32 0.5, %v622_v37 }
 0x7b3   :  { %v624_v39 = vsub.f32 1.5, %v623_v38 }
 0x7b4   :  { %v882_v40 = vpop.eup %881 }
 0x7b5   :  { %v625_v41 = vmul.f32 %v880_v32, %v624_v39  ;;  %v631_v19 = vmul.f32 %v882_v40, %v619_v33  ;;  %vm637_vm9 = vweird.f32 %v882_v40 }
 0x7b6   :  { %vm638_vm11 = vmor %vm636_vm10, %vm637_vm9 }
 0x7b7   :  { %v629_v44 = vsel %vm628_vm8, %v880_v32, %v625_v41  ;;  %v632_v43 = vmul.f32 %v882_v40, %v631_v19 }
 0x7b8   :  { %v640_v45 = vmul.f32 %v629_v44, %v606_v10 }
 0x7b9   :  { %v633_v47 = vmul.f32 0.5, %v632_v43 }
 0x7ba   :  { %v645_v48 = vmul.f32 %v855_v42, %v640_v45 }
 0x7bb   :  { %v634_v49 = vsub.f32 1.5, %v633_v47 }
 0x7bc   :  { %v650_v50 = vadd.f32 %v856_v46, %v645_v48 }
 0x7bd   :  { %v635_v51 = vmul.f32 %v882_v40, %v634_v49 }
 0x7be   :  { %843 = vmatmul.msk.f32.vlgmr.msrb.gmra.mxu2 %vm74_vm0, %v650_v50 }
 0x7bf   :  { %v639_v52 = vsel %vm638_vm11, %v882_v40, %v635_v51 }
 0x7c0   :  { %v641_v53 = vmul.f32 %v639_v52, %v1175_v14 }
 0x7c2   :  { %v646_v54 = vmul.f32 %v855_v42, %v641_v53 }
 0x7c4   :  { %v651_v55 = vadd.f32 %v856_v46, %v646_v54 }
 0x7c6   :  { %844 = vmatmul.msk.f32.gmra.mxu2 %vm74_vm0, %v651_v55 }
 0x841   :  { %v683_v59 = vpop.f32.mrf.mxu2 }
 0x842   :  { %v684_v60 = vadd.f32 %v857_v58, %v683_v59 }
 0x844   :  { %v689_v61 = vmax.f32 %v684_v60, 0.0 }
 0x846   :  { %845 = vmatmul.msk.f32.vlgmr.msra.gmra.mxu3 %vm703_vm12, %v689_v61 }
 0x849   :  { %v686_v62 = vpop.f32.mrf.mxu2 }
 0x84a   :  { %v687_v63 = vadd.f32 %v857_v58, %v686_v62 }
 0x84c   :  { %v690_v0 = vmax.f32 %v687_v63, 0.0 }
 0x84e   :  { %846 = vmatmul.msk.f32.gmra.mxu3 %vm703_vm12, %v690_v0 }
 0x8c9   :  { %v727_v2 = vpop.f32.mrf.mxu3 }
 0x8ca   :  { %v728_v3 = vadd.f32 %v858_v1, %v727_v2 }
 0x8cc   :  { %v733_v4 = vadd.f32 %v728_v3, %v650_v50 }
 0x8ce   :  { %v737_v5 = vsel %vm74_vm0, %v733_v4, 0.0 }
 0x8cf   :  { %738 = vadd.xlane.f32.xlu0 %v737_v5 }
 0x8d1   :  { %v730_v6 = vpop.f32.mrf.mxu3 }
 0x8d2   :  { %v731_v7 = vadd.f32 %v858_v1, %v730_v6 }
 0x8d4   :  { %v734_v9 = vadd.f32 %v731_v7, %v651_v55 }
 0x8d6   :  { %v740_v10 = vsel %vm74_vm0, %v734_v9, 0.0 }
 0x8d7   :  { %741 = vadd.xlane.f32.xlu1 %v740_v10 }
 0x942   :  { %v739_v11 = vpop.xlane.xlu0 %738 }
 0x943   :  { %v743_v24 = vmul.f32 %v739_v11, %v1170_v8 }
 0x945   :  { %v745_v12 = vsub.f32 %v733_v4, %v743_v24 }
 0x947   :  { %v747_v13 = vmul.f32 %v745_v12, %v745_v12 }
 0x949   :  { %v749_v14 = vsel %vm74_vm0, %v747_v13, 0.0 }
 0x94a   :  { %v742_v15 = vpop.xlane.xlu1 %741  ;;  %750 = vadd.xlane.f32.xlu2 %v749_v14 }
 0x94b   :  { %v744_v16 = vmul.f32 %v742_v15, %v1170_v8 }
 0x94d   :  { %v746_v17 = vsub.f32 %v734_v9, %v744_v16 }
 0x94f   :  { %v748_v18 = vmul.f32 %v746_v17, %v746_v17 }
 0x951   :  { %v752_v20 = vsel %vm74_vm0, %v748_v18, 0.0 }
 0x952   :  { %753 = vadd.xlane.f32.xlu0 %v752_v20 }
 0x9bd   :  { %v751_v21 = vpop.xlane.xlu2 %750 }
 0x9be   :  { %v755_v22 = vmul.f32 %v751_v21, %v1170_v8 }
 0x9c0   :  { %v757_v23 = vadd.f32 1e-12, %v755_v22 }
 0x9c2   :  { %883 = vrsqrt.f32 %v757_v23  ;;  %vm765_vm14 = vweird.f32 %v757_v23 }
 0x9c5   :  { %v754_v25 = vpop.xlane.xlu0 %753 }
 0x9c6   :  { %v756_v26 = vmul.f32 %v754_v25, %v1170_v8  ;;  %v860_v8 = vld [vmem:[%s1272_s17] ss:$0 sm:$0xff] }
 0x9c8   :  { %v884_v27 = vpop.eup %883  ;;  %v758_v28 = vadd.f32 1e-12, %v756_v26 }
 0x9c9   :  { %v760_v29 = vmul.f32 %v884_v27, %v757_v23  ;;  %vm766_vm13 = vweird.f32 %v884_v27 }
 0x9ca   :  { %885 = vrsqrt.f32 %v758_v28  ;;  %vm767_vm15 = vmor %vm765_vm14, %vm766_vm13  ;;  %vm775_vm2 = vweird.f32 %v758_v28 }
 0x9cb   :  { %v761_v30 = vmul.f32 %v884_v27, %v760_v29 }
 0x9cd   :  { %v762_v31 = vmul.f32 0.5, %v761_v30 }
 0x9cf   :  { %v763_v32 = vsub.f32 1.5, %v762_v31 }
 0x9d0   :  { %v886_v33 = vpop.eup %885 }
 0x9d1   :  { %v764_v34 = vmul.f32 %v884_v27, %v763_v32  ;;  %v770_v35 = vmul.f32 %v886_v33, %v758_v28  ;;  %vm776_vm1 = vweird.f32 %v886_v33 }
 0x9d2   :  { %vm777_vm3 = vmor %vm775_vm2, %vm776_vm1 }
 0x9d3   :  { %v768_v37 = vsel %vm767_vm15, %v884_v27, %v764_v34  ;;  %v771_v38 = vmul.f32 %v886_v33, %v770_v35 }
 0x9d4   :  { %v779_v39 = vmul.f32 %v768_v37, %v745_v12 }
 0x9d5   :  { %v772_v40 = vmul.f32 0.5, %v771_v38 }
 0x9d6   :  { %v784_v41 = vmul.f32 %v859_v36, %v779_v39 }
 0x9d7   :  { %v773_v19 = vsub.f32 1.5, %v772_v40 }
 0x9d8   :  { %v789_v42 = vadd.f32 %v860_v8, %v784_v41 }
 0x9d9   :  { %v774_v44 = vmul.f32 %v886_v33, %v773_v19 }
 0x9da   :  { %791 = vst.msk [vmem:[%s1273_s18] sm:$0xff] %vm74_vm0, %v789_v42 }
 0x9db   :  { %v778_v43 = vsel %vm777_vm3, %v886_v33, %v774_v44 }
 0x9dc   :  { %v780_v45 = vmul.f32 %v778_v43, %v746_v17 }
 0x9de   :  { %v785_v46 = vmul.f32 %v859_v36, %v780_v45 }
 0x9e0   :  { %v790_v47 = vadd.f32 %v860_v8, %v785_v46 }
 0x9e2   :  { %792 = vst.msk [vmem:[%s1273_s18 + $0x8] sm:$0xff] %vm74_vm0, %v790_v47 }

// kernel: _lambda_.7
= control target key start
LH: loop header
LB: loop body
LE: loop exit
PB: predicated region body
PF: predicated region fallthrough
CT: control target
= control target key end

     0   :  { %vm72_vm0 = vcmask 261120   ;;  %v962_v2 = vmov 32.0   ;;  %vm246_vm5 = vcmask 130048   ;;  %vm277_vm10 = vcmask 64512   ;;  %s1364_s0 = inlined_call_operand.vmem [shape: f32[16,32], index: 0, kind: input, shape index: {}]   ;;  %s1365_s3 = inlined_call_operand.vmem [shape: f32[1,32], index: 3, kind: input, shape index: {}]   ;;  %s1366_s4 = inlined_call_operand.vmem [shape: f32[1,32], index: 4, kind: input, shape index: {}]   ;;  %s1367_s9 = inlined_call_operand.vmem [shape: f32[2,32,16], index: 9, kind: input, shape index: {}]   ;;  %s1368_s1 = inlined_call_operand.vmem [shape: f32[16,32], index: 1, kind: input, shape index: {}]   ;;  %s1369_s10 = inlined_call_operand.vmem [shape: f32[2,1,16], index: 10, kind: input, shape index: {}]   ;;  %s1370_s7 = inlined_call_operand.vmem [shape: f32[2,32,16], index: 7, kind: input, shape index: {}]   ;;  %s1371_s8 = inlined_call_operand.vmem [shape: f32[2,1,16], index: 8, kind: input, shape index: {}]   ;;  %s1372_s5 = inlined_call_operand.vmem [shape: f32[2,32,16], index: 5, kind: input, shape index: {}]   ;;  %s1373_s6 = inlined_call_operand.vmem [shape: f32[2,1,16], index: 6, kind: input, shape index: {}]   ;;  %s1374_s2 = inlined_call_operand.vmem [shape: f32[2,8,8], index: 2, kind: input, shape index: {}]   ;;  %s1375_s11 = inlined_call_operand.vmem [shape: f32[2,16,32], index: 11, kind: input, shape index: {}]   ;;  %s1376_s12 = inlined_call_operand.vmem [shape: f32[1,32], index: 12, kind: input, shape index: {}]   ;;  %s1377_s13 = inlined_call_operand.vmem [shape: f32[1,32], index: 13, kind: input, shape index: {}]   ;;  %s1378_s14 = inlined_call_operand.vmem [shape: f32[1,32], index: 14, kind: input, shape index: {}]   ;;  %s1379_s16 = inlined_call_operand.vmem [shape: f32[1,64], index: 16, kind: input, shape index: {}]   ;;  %s1380_s15 = inlined_call_operand.vmem [shape: f32[32,64], index: 15, kind: input, shape index: {}]   ;;  %s1381_s17 = inlined_call_operand.vmem [shape: f32[64,32], index: 17, kind: input, shape index: {}]   ;;  %s1382_s18 = inlined_call_operand.vmem [shape: f32[1,32], index: 18, kind: input, shape index: {}]   ;;  %s1383_s19 = inlined_call_operand.vmem [shape: f32[1,32], index: 19, kind: input, shape index: {}]   ;;  %s1384_s20 = inlined_call_operand.vmem [shape: f32[1,32], index: 20, kind: input, shape index: {}]   ;;  %s1385_s21 = inlined_call_operand.vmem [shape: f32[16,32], index: 21, kind: output, shape index: {}]  }
   0x1   :  { %1390 = sst [smem:[#allocation2_spill]] %s1364_s0  ;;  %932 = vrcp.f32 %v962_v2  ;;  %v181_v21 = vld [vmem:[%s1370_s7 + $0x18] sm:$0xff]  ;;  %v180_v22 = vld [vmem:[%s1370_s7 + $0x10] sm:$0xff]  ;;  %v179_v26 = vld [vmem:[%s1370_s7 + $0x8] sm:$0xff] }
   0x2   :  { %1391 = sst [smem:[#allocation3_spill]] %s1365_s3  ;;  %204 = vmatpush.msra.mxu1 %v181_v21  ;;  %v144_v24 = vld [vmem:[%s1372_s5 + $0x18] sm:$0xff]  ;;  %v143_v27 = vld [vmem:[%s1372_s5 + $0x10] sm:$0xff]  ;;  %v178_v29 = vld [vmem:[%s1370_s7] sm:$0xff] }
   0x3   :  { %1392 = sst [smem:[#allocation4_spill]] %s1366_s4  ;;  %v884_v25 = vld [vmem:[%s1372_s5 + $0x38] sm:$0xff]  ;;  %167 = vmatpush.msra.mxu0 %v144_v24  ;;  %v883_v28 = vld [vmem:[%s1372_s5 + $0x30] sm:$0xff]  ;;  %v142_v30 = vld [vmem:[%s1372_s5 + $0x8] sm:$0xff] }
   0x4   :  { %1393 = sst [smem:[#allocation5_spill]] %s1367_s9  ;;  %205 = vmatpush.msra.mxu1 %v180_v22  ;;  %v882_v31 = vld [vmem:[%s1372_s5 + $0x28] sm:$0xff]  ;;  %v141_v32 = vld [vmem:[%s1372_s5] sm:$0xff] }
   0x5   :  { %1394 = sst [smem:[#allocation6_spill]] %s1368_s1  ;;  %168 = vmatpush.msra.mxu0 %v143_v27  ;;  %v881_v33 = vld [vmem:[%s1372_s5 + $0x20] sm:$0xff] }
   0x6   :  { %1395 = sst [smem:[#allocation7_spill]] %s1369_s10  ;;  %206 = vmatpush.msra.mxu1 %v179_v26  ;;  %v920_v56 = vld [vmem:[%s1371_s8] ss:$0 sm:$0xff] }
   0x7   :  { %s1396_s26 = sld [smem:[#allocation2_spill]]  ;;  %v933_v3 = vpop.eup %932  ;;  %169 = vmatpush.msra.mxu0 %v142_v30  ;;  %v921_v62 = vld [vmem:[%s1373_s6] ss:$0 sm:$0xff] }
   0x8   :  { %v80_v4 = vmul.f32 32.0, %v933_v3  ;;  %vm84_vm1 = vweird.f32 %v933_v3  ;;  %s1397_s28 = sld [smem:[#allocation5_spill]]  ;;  %207 = vmatpush.msra.mxu1 %v178_v29  ;;  %v378_v29 = vld [vmem:[%s1375_s11 + $0x8] sm:$0xff] }
   0x9   :  { %s1398_s24 = sld [smem:[#allocation6_spill]]  ;;  %170 = vmatpush.msra.mxu0 %v141_v32 }
   0xa   :  { %v81_v5 = vsub.f32 1.0, %v80_v4  ;;  %s1399_s25 = sld [smem:[#allocation3_spill]]  ;;  %399 = vmatpush.msrb.mxu1 %v378_v29 }
   0xb   :  { %s1400_s29 = sld [smem:[#allocation4_spill]] }
   0xc   :  { %v82_v6 = vmul.f32 %v933_v3, %v81_v5  ;;  %s1401_s30 = sld [smem:[#allocation7_spill]] }
   0xd   :  { %v68_v0 = vld [vmem:[%s1396_s26] sm:$0xff]  ;;  %v69_v19 = vld [vmem:[%s1396_s26 + $0x8] sm:$0xff] }
   0xe   :  { %v73_v1 = vsel %vm72_vm0, %v68_v0, 0.0  ;;  %v83_v7 = vadd.f32 %v933_v3, %v82_v6  ;;  %v218_v14 = vld [vmem:[%s1397_s28 + $0x18] sm:$0xff]  ;;  %v217_v15 = vld [vmem:[%s1397_s28 + $0x10] sm:$0xff]  ;;  %v216_v16 = vld [vmem:[%s1397_s28 + $0x8] sm:$0xff]  ;;  %v76_v20 = vsel %vm72_vm0, %v69_v19, 0.0 }
   0xf   :  { %74 = vadd.xlane.f32.xlu0 %v73_v1  ;;  %235 = vmatpush.msra.mxu2 %v218_v14  ;;  %v215_v17 = vld [vmem:[%s1397_s28] sm:$0xff]  ;;  %v1117_v23 = vld [vmem:[%s1398_s24 + $0x8] sm:$0xff] }
  0x10   :  { %v1077_v8 = vsel %vm84_vm1, %v933_v3, %v83_v7  ;;  %v1100_v18 = vld [vmem:[%s1398_s24] sm:$0xff]  ;;  %77 = vadd.xlane.f32.xlu1 %v76_v20 }
  0x11   :  { %236 = vmatpush.msra.mxu2 %v217_v15  ;;  %868 = vmatmul.msk.f32.vlgmr.msra.gmra.mxu1 %vm72_vm0, %v1100_v18  ;;  %v917_v43 = vld [vmem:[%s1399_s25] ss:$0 sm:$0xff] }
  0x12   :  { %v918_v46 = vld [vmem:[%s1400_s29] ss:$0 sm:$0xff] }
  0x13   :  { %237 = vmatpush.msra.mxu2 %v216_v16  ;;  %v919_v55 = vld [vmem:[%s1401_s30] ss:$0 sm:$0xff] }
  0x14   :  { %v1184_v15 = vld [vmem:[%s1374_s2] sm:$0xff] }
  0x15   :  { %238 = vmatpush.msra.mxu2 %v215_v17  ;;  %vm275_vm9 = vcmp.gt.f32.partialorder %v1184_v15, 0.5 }
  0x16   :  { %870 = vmatmul.msk.f32.vlgmr.msra.gmra.mxu2 %vm72_vm0, %v1100_v18 }
  0x17   :  { %432 = vmatpush.msrb.mxu2 %v884_v25 }
  0x19   :  { %433 = vmatpush.msrb.mxu2 %v883_v28  ;;  %869 = vmatmul.msk.f32.gmra.mxu1 %vm72_vm0, %v1117_v23 }
  0x1b   :  { %434 = vmatpush.msrb.mxu2 %v882_v31 }
  0x1d   :  { %435 = vmatpush.msrb.mxu2 %v881_v33 }
  0x1e   :  { %871 = vmatmul.msk.f32.gmra.mxu2 %vm72_vm0, %v1117_v23 }
  0x82   :  { %v75_v9 = vpop.xlane.xlu0 %74 }
  0x83   :  { %v86_v10 = vmul.f32 %v1077_v8, %v75_v9  ;;  %v78_v49 = vpop.xlane.xlu1 %77 }
  0x84   :  { %v87_v50 = vmul.f32 %v1077_v8, %v78_v49 }
  0x85   :  { %v1080_v11 = vsub.f32 %v68_v0, %v86_v10 }
  0x86   :  { %v89_v51 = vsub.f32 %v69_v19, %v87_v50 }
  0x87   :  { %v90_v12 = vmul.f32 %v1080_v11, %v1080_v11 }
  0x88   :  { %v91_v52 = vmul.f32 %v89_v51, %v89_v51 }
  0x89   :  { %v92_v13 = vsel %vm72_vm0, %v90_v12, 0.0 }
  0x8a   :  { %93 = vadd.xlane.f32.xlu0 %v92_v13  ;;  %v95_v53 = vsel %vm72_vm0, %v91_v52, 0.0  ;;  %v897_v52 = vld [vmem:[%s1397_s28 + $0x30] sm:$0xff] }
  0x8b   :  { %96 = vadd.xlane.f32.xlu1 %v95_v53  ;;  %v896_v53 = vld [vmem:[%s1397_s28 + $0x28] sm:$0xff] }
  0x8e   :  { %v209_v58 = vpop.f32.mrf.mxu1 }
  0x8f   :  { %v210_v59 = vadd.f32 %v920_v56, %v209_v58 }
  0x91   :  { %872 = vmatpush.xpose.msk.msra.mxu3 %vm246_vm5, %v210_v59 }
  0x96   :  { %v212_v27 = vpop.f32.mrf.mxu1 }
  0x97   :  { %v213_v28 = vadd.f32 %v920_v56, %v212_v27 }
  0x99   :  { %v240_v54 = vpop.f32.mrf.mxu2 }
  0x9a   :  { %v241_v57 = vadd.f32 %v919_v55, %v240_v54  ;;  %v895_v54 = vld [vmem:[%s1397_s28 + $0x20] sm:$0xff] }
  0x9c   :  { %307 = vmatpush.msrb.mxu3 %v241_v57 }
  0xa1   :  { %v243_v60 = vpop.f32.mrf.mxu2 }
  0xa2   :  { %v244_v61 = vadd.f32 %v919_v55, %v243_v60  ;;  %v924_v55 = vld [vmem:[%s1371_s8 + $0x1] ss:$0 sm:$0xff] }
  0xa4   :  { %372 = vmatpush.msrb.mxu0 %v244_v61 }
  0xfd   :  { %v94_v34 = vpop.xlane.xlu0 %93 }
  0xfe   :  { %v98_v35 = vmul.f32 %v94_v34, %v1077_v8  ;;  %v97_v1 = vpop.xlane.xlu1 %96 }
  0xff   :  { %v99_v2 = vmul.f32 %v97_v1, %v1077_v8  ;;  %v922_v1 = vld [vmem:[%s1373_s6 + $0x1] ss:$0 sm:$0xff] }
 0x100   :  { %v100_v36 = vadd.f32 1e-12, %v98_v35  ;;  %v377_v35 = vld [vmem:[%s1375_s11] sm:$0xff] }
 0x101   :  { %v101_v3 = vadd.f32 1e-12, %v99_v2  ;;  %400 = vmatpush.msrb.mxu1 %v377_v35  ;;  %v908_v35 = vld [vmem:[%s1375_s11 + $0x10] sm:$0xff] }
 0x102   :  { %934 = vrsqrt.f32 %v100_v36  ;;  %vm108_vm3 = vweird.f32 %v100_v36 }
 0x103   :  { %936 = vrsqrt.f32 %v101_v3  ;;  %vm118_vm6 = vweird.f32 %v101_v3 }
 0x108   :  { %v935_v37 = vpop.eup %934 }
 0x109   :  { %v103_v38 = vmul.f32 %v935_v37, %v100_v36  ;;  %vm109_vm2 = vweird.f32 %v935_v37  ;;  %v937_v4 = vpop.eup %936 }
 0x10a   :  { %vm110_vm4 = vmor %vm108_vm3, %vm109_vm2  ;;  %v113_v5 = vmul.f32 %v937_v4, %v101_v3  ;;  %vm119_vm7 = vweird.f32 %v937_v4  ;;  %vm774_vm3 = vcmask 523264  }
 0x10b   :  { %v104_v39 = vmul.f32 %v935_v37, %v103_v38  ;;  %vm120_vm8 = vmor %vm118_vm6, %vm119_vm7 }
 0x10c   :  { %v114_v6 = vmul.f32 %v937_v4, %v113_v5 }
 0x10d   :  { %v105_v40 = vmul.f32 0.5, %v104_v39 }
 0x10e   :  { %v115_v7 = vmul.f32 0.5, %v114_v6 }
 0x10f   :  { %v106_v41 = vsub.f32 1.5, %v105_v40 }
 0x110   :  { %v116_v9 = vsub.f32 1.5, %v115_v7 }
 0x111   :  { %v107_v42 = vmul.f32 %v935_v37, %v106_v41 }
 0x112   :  { %v117_v10 = vmul.f32 %v937_v4, %v116_v9 }
 0x113   :  { %v111_v44 = vsel %vm110_vm4, %v935_v37, %v107_v42  ;;  %v1204_v37 = vld [vmem:[%s1374_s2 + $0x8] sm:$0xff]  ;;  %v891_v42 = vld [vmem:[%s1370_s7 + $0x38] sm:$0xff] }
 0x114   :  { %v122_v45 = vmul.f32 %v111_v44, %v1080_v11  ;;  %v121_v11 = vsel %vm120_vm8, %v937_v4, %v117_v10  ;;  %vm341_vm11 = vcmp.gt.f32.partialorder %v1204_v37, 0.5  ;;  %v889_v44 = vld [vmem:[%s1370_s7 + $0x28] sm:$0xff]  ;;  %v925_v4 = vld [vmem:[%s1401_s30 + $0x1] ss:$0 sm:$0xff] }
 0x115   :  { %v123_v12 = vmul.f32 %v121_v11, %v89_v51  ;;  %v898_v51 = vld [vmem:[%s1397_s28 + $0x38] sm:$0xff] }
 0x116   :  { %v127_v47 = vmul.f32 %v917_v43, %v122_v45  ;;  %v888_v45 = vld [vmem:[%s1370_s7 + $0x20] sm:$0xff] }
 0x117   :  { %v128_v13 = vmul.f32 %v917_v43, %v123_v12  ;;  %v890_v43 = vld [vmem:[%s1370_s7 + $0x30] sm:$0xff] }
 0x118   :  { %v132_v48 = vadd.f32 %v918_v46, %v127_v47 }
 0x119   :  { %v133_v14 = vadd.f32 %v918_v46, %v128_v13 }
 0x11a   :  { %866 = vmatmul.msk.f32.vlgmr.msra.gmra.mxu0 %vm72_vm0, %v132_v48  ;;  %886 = vmatmul.msk.f32.vlgmr.msrb.gmra.mxu2 %vm72_vm0, %v132_v48 }
 0x11b   :  { %498 = vmatpush.msra.mxu0 %v898_v51 }
 0x11d   :  { %499 = vmatpush.msra.mxu0 %v897_v52 }
 0x11f   :  { %500 = vmatpush.msra.mxu0 %v896_v53 }
 0x121   :  { %501 = vmatpush.msra.mxu0 %v895_v54 }
 0x122   :  { %867 = vmatmul.msk.f32.gmra.mxu0 %vm72_vm0, %v133_v14  ;;  %887 = vmatmul.msk.f32.gmra.mxu2 %vm72_vm0, %v133_v14 }
 0x197   :  { %v172_v63 = vpop.f32.mrf.mxu0 }
 0x198   :  { %v173_v0 = vadd.f32 %v921_v62, %v172_v63 }
 0x19a   :  { %873 = vmatmul.msk.f32.vlgmr.msra.gmra.mxu3 %vm246_vm5, %v173_v0 }
 0x19b   :  { %875 = vmatpush.xpose.msk.msra.mxu3 %vm246_vm5, %v213_v28 }
 0x19d   :  { %v437_v63 = vpop.f32.mrf.mxu2 }
 0x19f   :  { %v175_v33 = vpop.f32.mrf.mxu0 }
 0x1a0   :  { %v176_v34 = vadd.f32 %v921_v62, %v175_v33 }
 0x1a5   :  { %v440_v0 = vpop.f32.mrf.mxu2 }
 0x1a6   :  { %v441_v2 = vadd.f32 %v922_v1, %v440_v0 }
 0x21d   :  { %v270_v16 = vpop.f32.mrf.mxu3 }
 0x21e   :  { %v273_v17 = vmul.f32 0.25, %v270_v16 }
 0x220   :  { %v276_v19 = vsel %vm275_vm9, -1e+09, %v273_v17 }
 0x221   :  { %v278_v20 = vsel %vm277_vm10, %v276_v19, -inf }
 0x222   :  { %279 = vmax.xlane.f32.xlu2 %v278_v20 }
 0x295   :  { %v280_v21 = vpop.xlane.xlu2 %279 }
 0x296   :  { %v281_v22 = vsub.f32 %v276_v19, %v280_v21 }
 0x298   :  { %v282_v24 = vmul.f32 1.442695, %v281_v22 }
 0x29a   :  { %938 = vpow2.f32 %v282_v24 }
 0x2a0   :  { %v939_v25 = vpop.eup %938 }
 0x2a1   :  { %v284_v26 = vsel %vm277_vm10, %v939_v25, 0.0 }
 0x2a2   :  { %285 = vadd.xlane.f32.xlu2 %v284_v26 }
 0x315   :  { %v286_v30 = vpop.xlane.xlu2 %285 }
 0x316   :  { %940 = vrcp.f32 %v286_v30 }
 0x31c   :  { %v941_v31 = vpop.eup %940 }
 0x31d   :  { %v288_v32 = vmul.f32 %v941_v31, %v939_v25 }
 0x31f   :  { %874 = vmatmul.msk.f32.vlgmr.msrb.gmra.mxu3 %vm277_vm10, %v288_v32 }
 0x320   :  { %465 = vmatpush.msrb.mxu3 %v891_v42 }
 0x322   :  { %466 = vmatpush.msrb.mxu3 %v890_v43 }
 0x324   :  { %467 = vmatpush.msrb.mxu3 %v889_v44 }
 0x326   :  { %468 = vmatpush.msrb.mxu3 %v888_v45 }
 0x327   :  { %876 = vmatmul.msk.f32.vlgmr.msra.gmra.mxu3 %vm246_vm5, %v176_v34  ;;  %v909_v34 = vld [vmem:[%s1375_s11 + $0x18] sm:$0xff] }
 0x32f   :  { %893 = vmatmul.msk.f32.vlgmr.msrb.gmra.mxu3 %vm72_vm0, %v1100_v18 }
 0x337   :  { %894 = vmatmul.msk.f32.gmra.mxu3 %vm72_vm0, %v1117_v23 }
 0x3a2   :  { %v309_v36 = vpop.f32.mrf.mxu3 }
 0x3a3   :  { %879 = vmatmul.msk.f32.vlgmr.msrb.gmra.mxu1 %vm246_vm5, %v309_v36 }
 0x3aa   :  { %v335_v38 = vpop.f32.mrf.mxu3 }
 0x3ab   :  { %v338_v39 = vmul.f32 0.25, %v335_v38 }
 0x3ad   :  { %v342_v40 = vsel %vm341_vm11, -1e+09, %v338_v39 }
 0x3ae   :  { %v343_v41 = vsel %vm277_vm10, %v342_v40, -inf }
 0x3af   :  { %344 = vmax.xlane.f32.xlu0 %v343_v41  ;;  %v923_v41 = vld [vmem:[%s1376_s12] ss:$0 sm:$0xff] }
 0x3b2   :  { %v470_v56 = vpop.f32.mrf.mxu3 }
 0x3b3   :  { %v471_v57 = vadd.f32 %v924_v55, %v470_v56 }
 0x3b5   :  { %902 = vmatpush.xpose.msk.msra.mxu1 %vm246_vm5, %v471_v57 }
 0x3b9   :  { %656 = vmatpush.msrb.mxu1 %v909_v34 }
 0x3ba   :  { %v473_v59 = vpop.f32.mrf.mxu3 }
 0x3bb   :  { %v474_v61 = vadd.f32 %v924_v55, %v473_v59  ;;  %657 = vmatpush.msrb.mxu1 %v908_v35  ;;  %v763_v35 = vld [vmem:[%s1381_s17 + $0x8] sm:$0xff] }
 0x420   :  { %v402_v13 = vpop.f32.mrf.mxu1 }
 0x421   :  { %v408_v42 = vadd.f32 %v923_v41, %v402_v13 }
 0x422   :  { %v345_v46 = vpop.xlane.xlu0 %344 }
 0x423   :  { %v346_v47 = vsub.f32 %v342_v40, %v345_v46 }
 0x425   :  { %v347_v48 = vmul.f32 1.442695, %v346_v47 }
 0x427   :  { %942 = vpow2.f32 %v347_v48 }
 0x42d   :  { %v943_v49 = vpop.eup %942 }
 0x42e   :  { %v349_v50 = vsel %vm277_vm10, %v943_v49, 0.0 }
 0x42f   :  { %350 = vadd.xlane.f32.xlu1 %v349_v50 }
 0x4a2   :  { %v351_v58 = vpop.xlane.xlu1 %350 }
 0x4a3   :  { %944 = vrcp.f32 %v351_v58 }
 0x4a9   :  { %v945_v60 = vpop.eup %944 }
 0x4aa   :  { %v353_v62 = vmul.f32 %v945_v60, %v943_v49  ;;  %v726_v60 = vld [vmem:[%s1380_s15 + $0x18] sm:$0xff] }
 0x4ac   :  { %878 = vmatmul.msk.f32.vlgmr.msrb.gmra.mxu0 %vm277_vm10, %v353_v62  ;;  %v724_v62 = vld [vmem:[%s1380_s15 + $0x8] sm:$0xff] }
 0x4ad   :  { %905 = vmatpush.xpose.msk.msrb.mxu0 %vm246_vm5, %v474_v61  ;;  %v725_v61 = vld [vmem:[%s1380_s15 + $0x10] sm:$0xff] }
 0x4b4   :  { %900 = vmatmul.msk.f32.vlgmr.msra.gmra.mxu0 %vm72_vm0, %v1100_v18  ;;  %v438_v18 = vadd.f32 %v922_v1, %v437_v63  ;;  %v723_v63 = vld [vmem:[%s1380_s15] sm:$0xff] }
 0x4bc   :  { %901 = vmatmul.msk.f32.gmra.mxu0 %vm72_vm0, %v1117_v23 }
 0x4c4   :  { %906 = vmatmul.msk.f32.vlgmr.msrb.gmra.mxu0 %vm246_vm5, %v441_v2 }
 0x529   :  { %v374_v3 = vpop.f32.mrf.mxu0 }
 0x52a   :  { %880 = vmatmul.msk.f32.gmra.mxu1 %vm246_vm5, %v374_v3  ;;  %v769_v3 = vld [vmem:[%s1381_s17 + $0x38] sm:$0xff] }
 0x52b   :  { %789 = vmatpush.msra.mxu3 %v769_v3 }
 0x531   :  { %v503_v5 = vpop.f32.mrf.mxu0 }
 0x532   :  { %v504_v6 = vadd.f32 %v925_v4, %v503_v5  ;;  %903 = vmatmul.msk.f32.vlgmr.msra.gmra.mxu1 %vm246_vm5, %v438_v18  ;;  %v767_v18 = vld [vmem:[%s1381_s17 + $0x28] sm:$0xff] }
 0x534   :  { %566 = vmatpush.msra.mxu2 %v504_v6 }
 0x536   :  { %749 = vmatpush.msrb.mxu2 %v726_v60 }
 0x538   :  { %750 = vmatpush.msrb.mxu2 %v725_v61 }
 0x539   :  { %v506_v23 = vpop.f32.mrf.mxu0 }
 0x53a   :  { %v507_v7 = vadd.f32 %v925_v4, %v506_v23  ;;  %751 = vmatpush.msrb.mxu2 %v724_v62  ;;  %v768_v4 = vld [vmem:[%s1381_s17 + $0x30] sm:$0xff]  ;;  %v766_v23 = vld [vmem:[%s1381_s17 + $0x20] sm:$0xff] }
 0x53b   :  { %790 = vmatpush.msra.mxu3 %v768_v4 }
 0x53c   :  { %628 = vmatpush.msra.mxu0 %v507_v7  ;;  %752 = vmatpush.msrb.mxu2 %v723_v63 }
 0x53d   :  { %791 = vmatpush.msra.mxu3 %v767_v18 }
 0x53f   :  { %792 = vmatpush.msra.mxu3 %v766_v23 }
 0x541   :  { %v594_v9 = vpop.f32.mrf.mxu0 }
 0x542   :  { %v597_v10 = vmul.f32 0.25, %v594_v9 }
 0x544   :  { %v598_v11 = vsel %vm341_vm11, -1e+09, %v597_v10  ;;  %v765_v10 = vld [vmem:[%s1381_s17 + $0x18] sm:$0xff] }
 0x545   :  { %v599_v12 = vsel %vm277_vm10, %v598_v11, -inf  ;;  %793 = vmatpush.msra.mxu3 %v765_v10  ;;  %v930_v10 = vld [vmem:[%s1383_s19] ss:$0 sm:$0xff] }
 0x546   :  { %600 = vmax.xlane.f32.xlu0 %v599_v12  ;;  %v764_v12 = vld [vmem:[%s1381_s17 + $0x10] sm:$0xff] }
 0x547   :  { %794 = vmatpush.msra.mxu3 %v764_v12 }
 0x549   :  { %795 = vmatpush.msra.mxu3 %v763_v35 }
 0x5a7   :  { %v405_v14 = vpop.f32.mrf.mxu1 }
 0x5a8   :  { %v409_v46 = vadd.f32 %v923_v41, %v405_v14 }
 0x5af   :  { %v532_v16 = vpop.f32.mrf.mxu1 }
 0x5b0   :  { %v535_v17 = vmul.f32 0.25, %v532_v16 }
 0x5b2   :  { %v536_v19 = vsel %vm275_vm9, -1e+09, %v535_v17 }
 0x5b3   :  { %v537_v20 = vsel %vm277_vm10, %v536_v19, -inf }
 0x5b4   :  { %538 = vmax.xlane.f32.xlu2 %v537_v20 }
 0x5b9   :  { %v601_v21 = vpop.xlane.xlu0 %600 }
 0x5ba   :  { %v602_v22 = vsub.f32 %v598_v11, %v601_v21  ;;  %v926_v21 = vld [vmem:[%s1377_s13] ss:$0 sm:$0xff] }
 0x5bc   :  { %v603_v24 = vmul.f32 1.442695, %v602_v22 }
 0x5be   :  { %946 = vpow2.f32 %v603_v24 }
 0x5c4   :  { %v947_v25 = vpop.eup %946 }
 0x5c5   :  { %v605_v26 = vsel %vm277_vm10, %v947_v25, 0.0 }
 0x5c6   :  { %606 = vadd.xlane.f32.xlu2 %v605_v26  ;;  %v927_v26 = vld [vmem:[%s1378_s14] ss:$0 sm:$0xff] }
 0x627   :  { %v539_v27 = vpop.xlane.xlu2 %538 }
 0x628   :  { %v540_v28 = vsub.f32 %v536_v19, %v539_v27 }
 0x62a   :  { %v541_v29 = vmul.f32 1.442695, %v540_v28 }
 0x62c   :  { %948 = vpow2.f32 %v541_v29 }
 0x632   :  { %v949_v30 = vpop.eup %948 }
 0x633   :  { %v543_v31 = vsel %vm277_vm10, %v949_v30, 0.0 }
 0x634   :  { %544 = vadd.xlane.f32.xlu1 %v543_v31 }
 0x639   :  { %v607_v15 = vpop.xlane.xlu2 %606 }
 0x63a   :  { %950 = vrcp.f32 %v607_v15 }
 0x640   :  { %v951_v32 = vpop.eup %950 }
 0x641   :  { %v609_v33 = vmul.f32 %v951_v32, %v947_v25 }
 0x643   :  { %907 = vmatmul.msk.f32.vlgmr.msra.gmra.mxu0 %vm277_vm10, %v609_v33 }
 0x6a7   :  { %v545_v36 = vpop.xlane.xlu1 %544 }
 0x6a8   :  { %952 = vrcp.f32 %v545_v36  ;;  %v762_v36 = vld [vmem:[%s1381_s17] sm:$0xff] }
 0x6a9   :  { %796 = vmatpush.msra.mxu3 %v762_v36 }
 0x6ae   :  { %v953_v37 = vpop.eup %952 }
 0x6af   :  { %v547_v38 = vmul.f32 %v953_v37, %v949_v30  ;;  %v928_v37 = vld [vmem:[%s1379_s16] ss:$0 sm:$0xff] }
 0x6b1   :  { %904 = vmatmul.msk.f32.vlgmr.msra.gmra.mxu2 %vm277_vm10, %v547_v38 }
 0x6c0   :  { %v630_v40 = vpop.f32.mrf.mxu0 }
 0x734   :  { %v568_v39 = vpop.f32.mrf.mxu2 }
 0x735   :  { %910 = vmatmul.msk.f32.vlgmr.msrb.gmra.mxu1 %vm246_vm5, %v568_v39 }
 0x73d   :  { %911 = vmatmul.msk.f32.gmra.mxu1 %vm246_vm5, %v630_v40 }
 0x7b2   :  { %v659_v43 = vpop.f32.mrf.mxu1 }
 0x7b3   :  { %v665_v44 = vadd.f32 %v659_v43, %v408_v42 }
 0x7b5   :  { %v669_v45 = vsel %vm72_vm0, %v665_v44, 0.0 }
 0x7b6   :  { %670 = vadd.xlane.f32.xlu0 %v669_v45 }
 0x7ba   :  { %v662_v47 = vpop.f32.mrf.mxu1 }
 0x7bb   :  { %v666_v48 = vadd.f32 %v662_v47, %v409_v46 }
 0x7bd   :  { %v672_v49 = vsel %vm72_vm0, %v666_v48, 0.0 }
 0x7be   :  { %673 = vadd.xlane.f32.xlu1 %v672_v49 }
 0x829   :  { %v671_v50 = vpop.xlane.xlu0 %670 }
 0x82a   :  { %v675_v51 = vmul.f32 %v671_v50, %v1077_v8 }
 0x82c   :  { %v677_v52 = vsub.f32 %v665_v44, %v675_v51  ;;  %v929_v44 = vld [vmem:[%s1382_s18] ss:$0 sm:$0xff] }
 0x82e   :  { %v679_v53 = vmul.f32 %v677_v52, %v677_v52 }
 0x830   :  { %v681_v54 = vsel %vm72_vm0, %v679_v53, 0.0 }
 0x831   :  { %682 = vadd.xlane.f32.xlu2 %v681_v54  ;;  %v674_v55 = vpop.xlane.xlu1 %673 }
 0x832   :  { %v676_v56 = vmul.f32 %v674_v55, %v1077_v8 }
 0x834   :  { %v1284_v57 = vsub.f32 %v666_v48, %v676_v56 }
 0x836   :  { %v680_v58 = vmul.f32 %v1284_v57, %v1284_v57 }
 0x838   :  { %v684_v59 = vsel %vm72_vm0, %v680_v58, 0.0 }
 0x839   :  { %685 = vadd.xlane.f32.xlu0 %v684_v59 }
 0x8a4   :  { %v683_v0 = vpop.xlane.xlu2 %682 }
 0x8a5   :  { %v687_v1 = vmul.f32 %v683_v0, %v1077_v8 }
 0x8a7   :  { %v689_v2 = vadd.f32 1e-12, %v687_v1 }
 0x8a9   :  { %954 = vrsqrt.f32 %v689_v2  ;;  %vm697_vm13 = vweird.f32 %v689_v2 }
 0x8ac   :  { %v686_v5 = vpop.xlane.xlu0 %685 }
 0x8ad   :  { %v688_v6 = vmul.f32 %v686_v5, %v1077_v8 }
 0x8af   :  { %v955_v7 = vpop.eup %954  ;;  %v690_v9 = vadd.f32 1e-12, %v688_v6 }
 0x8b0   :  { %v692_v11 = vmul.f32 %v955_v7, %v689_v2  ;;  %vm698_vm12 = vweird.f32 %v955_v7 }
 0x8b1   :  { %956 = vrsqrt.f32 %v690_v9  ;;  %vm699_vm14 = vmor %vm697_vm13, %vm698_vm12  ;;  %vm707_vm1 = vweird.f32 %v690_v9 }
 0x8b2   :  { %v693_v13 = vmul.f32 %v955_v7, %v692_v11 }
 0x8b4   :  { %v694_v14 = vmul.f32 0.5, %v693_v13 }
 0x8b6   :  { %v695_v16 = vsub.f32 1.5, %v694_v14 }
 0x8b7   :  { %v957_v17 = vpop.eup %956 }
 0x8b8   :  { %v696_v19 = vmul.f32 %v955_v7, %v695_v16  ;;  %v702_v20 = vmul.f32 %v957_v17, %v690_v9  ;;  %vm708_vm15 = vweird.f32 %v957_v17 }
 0x8b9   :  { %vm709_vm2 = vmor %vm707_vm1, %vm708_vm15 }
 0x8ba   :  { %v700_v22 = vsel %vm699_vm14, %v955_v7, %v696_v19  ;;  %v703_v24 = vmul.f32 %v957_v17, %v702_v20 }
 0x8bb   :  { %v711_v25 = vmul.f32 %v700_v22, %v677_v52 }
 0x8bc   :  { %v704_v27 = vmul.f32 0.5, %v703_v24 }
 0x8bd   :  { %v716_v28 = vmul.f32 %v926_v21, %v711_v25 }
 0x8be   :  { %v705_v29 = vsub.f32 1.5, %v704_v27 }
 0x8bf   :  { %v721_v30 = vadd.f32 %v927_v26, %v716_v28 }
 0x8c0   :  { %v706_v31 = vmul.f32 %v957_v17, %v705_v29 }
 0x8c1   :  { %912 = vmatmul.msk.f32.vlgmr.msrb.gmra.mxu2 %vm72_vm0, %v721_v30 }
 0x8c2   :  { %v710_v15 = vsel %vm709_vm2, %v957_v17, %v706_v31 }
 0x8c3   :  { %v712_v32 = vmul.f32 %v710_v15, %v1284_v57 }
 0x8c5   :  { %v717_v33 = vmul.f32 %v926_v21, %v712_v32 }
 0x8c7   :  { %v722_v34 = vadd.f32 %v927_v26, %v717_v33 }
 0x8c9   :  { %913 = vmatmul.msk.f32.gmra.mxu2 %vm72_vm0, %v722_v34 }
 0x944   :  { %v754_v38 = vpop.f32.mrf.mxu2 }
 0x945   :  { %v755_v39 = vadd.f32 %v928_v37, %v754_v38 }
 0x947   :  { %v760_v40 = vmax.f32 %v755_v39, 0.0 }
 0x949   :  { %914 = vmatmul.msk.f32.vlgmr.msra.gmra.mxu3 %vm774_vm3, %v760_v40 }
 0x94c   :  { %v757_v41 = vpop.f32.mrf.mxu2 }
 0x94d   :  { %v758_v42 = vadd.f32 %v928_v37, %v757_v41 }
 0x94f   :  { %v761_v43 = vmax.f32 %v758_v42, 0.0 }
 0x951   :  { %915 = vmatmul.msk.f32.gmra.mxu3 %vm774_vm3, %v761_v43 }
 0x9cc   :  { %v798_v45 = vpop.f32.mrf.mxu3 }
 0x9cd   :  { %v799_v46 = vadd.f32 %v929_v44, %v798_v45 }
 0x9cf   :  { %v806_v47 = vsel %vm72_vm0, %v799_v46, 0.0 }
 0x9d0   :  { %807 = vadd.xlane.f32.xlu1 %v806_v47 }
 0x9d4   :  { %v801_v48 = vpop.f32.mrf.mxu3 }
 0x9d5   :  { %v802_v49 = vadd.f32 %v929_v44, %v801_v48 }
 0x9d7   :  { %v809_v50 = vsel %vm72_vm0, %v802_v49, 0.0 }
 0x9d8   :  { %810 = vadd.xlane.f32.xlu2 %v809_v50 }
 0xa43   :  { %v808_v51 = vpop.xlane.xlu1 %807 }
 0xa44   :  { %v812_v52 = vmul.f32 %v808_v51, %v1077_v8 }
 0xa46   :  { %v814_v53 = vsub.f32 %v799_v46, %v812_v52 }
 0xa48   :  { %v816_v54 = vmul.f32 %v814_v53, %v814_v53 }
 0xa4a   :  { %v818_v55 = vsel %vm72_vm0, %v816_v54, 0.0 }
 0xa4b   :  { %v811_v56 = vpop.xlane.xlu2 %810  ;;  %819 = vadd.xlane.f32.xlu0 %v818_v55 }
 0xa4c   :  { %v813_v57 = vmul.f32 %v811_v56, %v1077_v8 }
 0xa4e   :  { %v815_v58 = vsub.f32 %v802_v49, %v813_v57 }
 0xa50   :  { %v817_v59 = vmul.f32 %v815_v58, %v815_v58 }
 0xa52   :  { %v821_v60 = vsel %vm72_vm0, %v817_v59, 0.0 }
 0xa53   :  { %822 = vadd.xlane.f32.xlu1 %v821_v60 }
 0xabe   :  { %v820_v61 = vpop.xlane.xlu0 %819 }
 0xabf   :  { %v824_v62 = vmul.f32 %v820_v61, %v1077_v8 }
 0xac1   :  { %v826_v63 = vadd.f32 1e-12, %v824_v62 }
 0xac3   :  { %958 = vrsqrt.f32 %v826_v63  ;;  %vm834_vm5 = vweird.f32 %v826_v63 }
 0xac6   :  { %v823_v0 = vpop.xlane.xlu1 %822 }
 0xac7   :  { %v825_v1 = vmul.f32 %v823_v0, %v1077_v8  ;;  %v931_v8 = vld [vmem:[%s1384_s20] ss:$0 sm:$0xff] }
 0xac9   :  { %v959_v2 = vpop.eup %958  ;;  %v827_v3 = vadd.f32 1e-12, %v825_v1 }
 0xaca   :  { %v829_v4 = vmul.f32 %v959_v2, %v826_v63  ;;  %vm835_vm4 = vweird.f32 %v959_v2 }
 0xacb   :  { %960 = vrsqrt.f32 %v827_v3  ;;  %vm836_vm6 = vmor %vm834_vm5, %vm835_vm4  ;;  %vm844_vm8 = vweird.f32 %v827_v3 }
 0xacc   :  { %v830_v18 = vmul.f32 %v959_v2, %v829_v4 }
 0xace   :  { %v831_v5 = vmul.f32 0.5, %v830_v18 }
 0xad0   :  { %v832_v6 = vsub.f32 1.5, %v831_v5 }
 0xad1   :  { %v961_v23 = vpop.eup %960 }
 0xad2   :  { %v833_v7 = vmul.f32 %v959_v2, %v832_v6  ;;  %v839_v9 = vmul.f32 %v961_v23, %v827_v3  ;;  %vm845_vm7 = vweird.f32 %v961_v23 }
 0xad3   :  { %vm846_vm9 = vmor %vm844_vm8, %vm845_vm7 }
 0xad4   :  { %v837_v11 = vsel %vm836_vm6, %v959_v2, %v833_v7  ;;  %v840_v12 = vmul.f32 %v961_v23, %v839_v9 }
 0xad5   :  { %v848_v13 = vmul.f32 %v837_v11, %v814_v53 }
 0xad6   :  { %v841_v14 = vmul.f32 0.5, %v840_v12 }
 0xad7   :  { %v853_v16 = vmul.f32 %v930_v10, %v848_v13 }
 0xad8   :  { %v842_v17 = vsub.f32 1.5, %v841_v14 }
 0xad9   :  { %v858_v19 = vadd.f32 %v931_v8, %v853_v16 }
 0xada   :  { %v843_v20 = vmul.f32 %v961_v23, %v842_v17 }
 0xadb   :  { %860 = vst.msk [vmem:[%s1385_s21] sm:$0xff] %vm72_vm0, %v858_v19 }
 0xadc   :  { %v847_v21 = vsel %vm846_vm9, %v961_v23, %v843_v20 }
 0xadd   :  { %v849_v22 = vmul.f32 %v847_v21, %v815_v58 }
 0xadf   :  { %v854_v24 = vmul.f32 %v930_v10, %v849_v22 }
 0xae1   :  { %v859_v25 = vadd.f32 %v931_v8, %v854_v24 }
 0xae3   :  { %861 = vst.msk [vmem:[%s1385_s21 + $0x8] sm:$0xff] %vm72_vm0, %v859_v25 }

</bundles_post_ra>
